<compile_context>
chip_gen: v6e
topology: v6e:2x2x1
jax: 0.10.0
libtpu: 0.0.40
codegen_flags: <defaults>
</compile_context>

<pallas_src>
import jax
import jax.numpy as jnp
from jax.experimental import pallas as pl
from jax.experimental.pallas import tpu as pltpu

_HI = jax.lax.Precision.HIGHEST


# ---------------------------------------------------------------------------
# Fused kernel: all RNN layers + Linear head, single invocation (no grid).
# ---------------------------------------------------------------------------
def _make_fused_rnn_kernel(num_layers, batch, seq, hidden, out_dim):
    """Ref layout (in order):
         x_ref      : (batch*seq, input_size)    rows in (b, t) order
         h0_ref     : (num_layers, batch, hidden)
         per layer  : wih_T (in_l, hidden), whh_T (hidden, hidden), b (1, hidden)
         wout_ref   : (hidden, out_dim)
         bout_ref   : (1, out_dim)
         out_ref    : (batch*seq, out_dim)       rows in (b, t) order (PyTorch)
         seq_scr    : VMEM (batch, seq, hidden) f32 -- current layer's outputs
    """

    def kernel(*refs):
        x_ref, h0_ref = refs[0], refs[1]
        layer_refs = refs[2:2 + 3 * num_layers]
        wout_ref = refs[2 + 3 * num_layers]
        bout_ref = refs[3 + 3 * num_layers]
        out_ref = refs[4 + 3 * num_layers]
        seq_scr = refs[5 + 3 * num_layers]

        for l in range(num_layers):
            wih = layer_refs[3 * l][...]        # (in_l, hidden)
            whh = layer_refs[3 * l + 1][...]    # (hidden, hidden)
            b = layer_refs[3 * l + 2][...]      # (1, hidden)  (= b_ih + b_hh)

            # Layer input, flattened to (batch*seq, in_l), rows in (b, t) order.
            if l == 0:
                src = x_ref[...]
            else:
                src = seq_scr[...].reshape(batch * seq, hidden)

            # Hoisted input projection for every timestep at once (one GEMM,
            # M = batch*seq), removed from the serial recurrence.
            xproj = jnp.dot(src, wih,
                            preferred_element_type=jnp.float32,
                            precision=_HI) + b
            xproj = xproj.reshape(batch, seq, hidden)

            # Sequential recurrence: one (batch,hidden)x(hidden,hidden) matmul
            # + tanh per step; h carried in f32 (never leaves VMEM/vregs).
            h = h0_ref[l].astype(jnp.float32)   # (batch, hidden)
            for t in range(seq):                # statically unrolled (seq small)
                h = jnp.tanh(
                    xproj[:, t, :]
                    + jnp.dot(h, whh,
                              preferred_element_type=jnp.float32,
                              precision=_HI))
                # Whole-batch writeback of this step's output (next layer's
                # input / head input).
                seq_scr[:, pl.ds(t, 1), :] = h[:, None, :]

        # Linear head over all (batch*seq) rows in one GEMM; rows are already
        # in PyTorch's .view(-1, hidden) order, so one full store suffices.
        h_all = seq_scr[...].reshape(batch * seq, hidden)
        y = jnp.dot(h_all, wout_ref[...],
                    preferred_element_type=jnp.float32,
                    precision=_HI) + bout_ref[...]
        out_ref[...] = y.astype(out_ref.dtype)

    return kernel


# ---------------------------------------------------------------------------
# Forward pass matching PyTorch RNNNetwork.forward semantics.
#   X:       (batch, seq, input_size)   [batch_first]
#   h_state: (num_layers, batch, hidden_size)
# returns (outs, hidden_size): outs is (batch*seq, output_size).
# ---------------------------------------------------------------------------
def rnn_network_forward(X, h_state, params):
    batch, seq, input_size = X.shape
    num_layers, _, hidden = h_state.shape
    w_out_T, b_out = params["out"]
    out_dim = w_out_T.shape[-1]

    # Free contiguous row-major flatten: rows are (b*seq + t), exactly
    # PyTorch's batch_first memory order.  No transpose anywhere.
    x_flat = X.reshape(batch * seq, input_size)

    inputs = [x_flat, h_state]
    for (wih_T, whh_T, b) in params["rnn"]:
        inputs += [wih_T, whh_T, b]
    inputs += [w_out_T, b_out]

    kernel = _make_fused_rnn_kernel(num_layers, batch, seq, hidden, out_dim)
    outs = pl.pallas_call(
        kernel,
        out_shape=jax.ShapeDtypeStruct((batch * seq, out_dim), jnp.float32),
        scratch_shapes=[pltpu.VMEM((batch, seq, hidden), jnp.float32)],
    )(*inputs)
    return outs, hidden


# ---------------------------------------------------------------------------
# Deterministic parameter init (PyTorch nn.RNN / nn.Linear shapes).
# Weights are pre-transposed and the two RNN biases are combined.
# ---------------------------------------------------------------------------
def init_params(key, input_size, hidden_size, num_layers, output_size):
    keys = jax.random.split(key, 4 * num_layers + 2)
    rnn_params = []
    k = 0
    for l in range(num_layers):
        in_dim = input_size if l == 0 else hidden_size
        w_ih = 0.1 * jax.random.normal(keys[k], (hidden_size, in_dim), jnp.float32); k += 1
        w_hh = 0.1 * jax.random.normal(keys[k], (hidden_size, hidden_size), jnp.float32); k += 1
        b_ih = 0.1 * jax.random.normal(keys[k], (hidden_size,), jnp.float32); k += 1
        b_hh = 0.1 * jax.random.normal(keys[k], (hidden_size,), jnp.float32); k += 1
        rnn_params.append((w_ih.T, w_hh.T, (b_ih + b_hh).reshape(1, hidden_size)))
    w_out = 0.1 * jax.random.normal(keys[k], (output_size, hidden_size), jnp.float32); k += 1
    b_out = 0.1 * jax.random.normal(keys[k], (output_size,), jnp.float32)
    return {"rnn": rnn_params, "out": (w_out.T, b_out.reshape(1, output_size))}


def reference_forward(X, h_state, params):
    """Pure-JAX reference (mirrors torch.nn.RNN with tanh), exact-f32 matmuls."""
    x = X
    for l, (wih_T, whh_T, b) in enumerate(params["rnn"]):
        h = h_state[l]
        outs = []
        for t in range(x.shape[1]):
            h = jnp.tanh(jnp.dot(x[:, t, :], wih_T, precision=_HI)
                         + jnp.dot(h, whh_T, precision=_HI) + b[0])
            outs.append(h)
        x = jnp.stack(outs, axis=1)
    hidden = h_state.shape[-1]
    flat = x.reshape(-1, hidden)
    w_out_T, b_out = params["out"]
    return jnp.dot(flat, w_out_T, precision=_HI) + b_out[0]


if __name__ == "__main__":
    input_size, hidden_size, num_layers, output_size = 4, 32, 2, 4
    batch, seq = 2, 8

    key = jax.random.PRNGKey(0)
    kx, kh, kp = jax.random.split(key, 3)
    X = jax.random.normal(kx, (batch, seq, input_size), jnp.float32)
    h_state = jax.random.normal(kh, (num_layers, batch, hidden_size), jnp.float32)
    params = init_params(kp, input_size, hidden_size, num_layers, output_size)

    outs, hs = rnn_network_forward(X, h_state, params)
    outs = jax.block_until_ready(outs)

    assert outs.shape == (batch * seq, output_size)
    assert hs == hidden_size

    ref = reference_forward(X, h_state, params)
    max_err = float(jnp.max(jnp.abs(outs - ref)))
    assert jnp.allclose(outs, ref, atol=1e-3, rtol=1e-3), (
        f"mismatch vs JAX reference (max abs err {max_err:.3e})")

    print("KERNEL_OK")
</pallas_src>

<mosaic_0001>
module attributes {stable_mosaic.version = 11 : i64} {
  func.func @kernel(%arg0: memref<16x4xf32, #tpu.memory_space<vmem>>, %arg1: memref<2x2x32xf32, #tpu.memory_space<vmem>>, %arg2: memref<4x32xf32, #tpu.memory_space<vmem>>, %arg3: memref<32x32xf32, #tpu.memory_space<vmem>>, %arg4: memref<1x32xf32, #tpu.memory_space<vmem>>, %arg5: memref<32x32xf32, #tpu.memory_space<vmem>>, %arg6: memref<32x32xf32, #tpu.memory_space<vmem>>, %arg7: memref<1x32xf32, #tpu.memory_space<vmem>>, %arg8: memref<32x4xf32, #tpu.memory_space<vmem>>, %arg9: memref<1x4xf32, #tpu.memory_space<vmem>>, %arg10: memref<16x4xf32, #tpu.memory_space<vmem>>, %arg11: memref<2x8x32xf32, #tpu.memory_space<vmem>>) attributes {dimension_semantics = [], scalar_prefetch = 0 : i64, scratch_operands = 1 : i64, tpu.core_type = #tpu.core_type<tc>} {
    %c0 = arith.constant 0 : index
    %c0_0 = arith.constant 0 : index
    %0 = vector.load %arg2[%c0, %c0_0] : memref<4x32xf32, #tpu.memory_space<vmem>>, vector<4x32xf32>
    %c0_1 = arith.constant 0 : index
    %c0_2 = arith.constant 0 : index
    %1 = vector.load %arg3[%c0_1, %c0_2] : memref<32x32xf32, #tpu.memory_space<vmem>>, vector<32x32xf32>
    %c0_3 = arith.constant 0 : index
    %c0_4 = arith.constant 0 : index
    %2 = vector.load %arg4[%c0_3, %c0_4] : memref<1x32xf32, #tpu.memory_space<vmem>>, vector<1x32xf32>
    %c0_5 = arith.constant 0 : index
    %c0_6 = arith.constant 0 : index
    %3 = vector.load %arg0[%c0_5, %c0_6] : memref<16x4xf32, #tpu.memory_space<vmem>>, vector<16x4xf32>
    %cst = arith.constant dense<0.000000e+00> : vector<16x32xf32>
    %4 = tpu.matmul %3, %0, %cst {dimension_numbers = #tpu.dot_dimension_numbers<[1], [0], [0], [1], [0, 0, 1, 1], [], []>, precision = #tpu.contract_precision<fp32>} : vector<16x4xf32>, vector<4x32xf32>, vector<16x32xf32> -> vector<16x32xf32>
    %5 = vector.broadcast %2 : vector<1x32xf32> to vector<16x32xf32>
    %6 = arith.addf %4, %5 : vector<16x32xf32>
    %7 = vector.shape_cast %6 : vector<16x32xf32> to vector<2x8x32xf32>
    %c0_7 = arith.constant 0 : index
    %c0_8 = arith.constant 0 : index
    %c0_9 = arith.constant 0 : index
    %8 = vector.load %arg1[%c0_7, %c0_8, %c0_9] : memref<2x2x32xf32, #tpu.memory_space<vmem>>, vector<1x2x32xf32>
    %9 = vector.shape_cast %8 : vector<1x2x32xf32> to vector<2x32xf32>
    %10 = vector.extract_strided_slice %7 {offsets = [0, 0, 0], sizes = [2, 1, 32], strides = [1, 1, 1]} : vector<2x8x32xf32> to vector<2x1x32xf32>
    %11 = vector.shape_cast %10 : vector<2x1x32xf32> to vector<2x32xf32>
    %cst_10 = arith.constant dense<0.000000e+00> : vector<2x32xf32>
    %12 = tpu.matmul %9, %1, %cst_10 {dimension_numbers = #tpu.dot_dimension_numbers<[1], [0], [0], [1], [0, 0, 1, 1], [], []>, precision = #tpu.contract_precision<fp32>} : vector<2x32xf32>, vector<32x32xf32>, vector<2x32xf32> -> vector<2x32xf32>
    %13 = arith.addf %11, %12 : vector<2x32xf32>
    %14 = math.tanh %13 : vector<2x32xf32>
    %15 = vector.shape_cast %14 : vector<2x32xf32> to vector<2x1x32xf32>
    %c0_11 = arith.constant 0 : index
    %c0_12 = arith.constant 0 : index
    %c0_13 = arith.constant 0 : index
    %16 = vector.load %arg11[%c0_11, %c0_12, %c0_13] : memref<2x8x32xf32, #tpu.memory_space<vmem>>, vector<2x1x32xf32>
    tpu.vector_store %arg11[%c0_11, %c0_12, %c0_13], %15 {strides = array<i32>} : memref<2x8x32xf32, #tpu.memory_space<vmem>>, vector<2x1x32xf32>,
    %17 = vector.extract_strided_slice %7 {offsets = [0, 1, 0], sizes = [2, 1, 32], strides = [1, 1, 1]} : vector<2x8x32xf32> to vector<2x1x32xf32>
    %18 = vector.shape_cast %17 : vector<2x1x32xf32> to vector<2x32xf32>
    %cst_14 = arith.constant dense<0.000000e+00> : vector<2x32xf32>
    %19 = tpu.matmul %14, %1, %cst_14 {dimension_numbers = #tpu.dot_dimension_numbers<[1], [0], [0], [1], [0, 0, 1, 1], [], []>, precision = #tpu.contract_precision<fp32>} : vector<2x32xf32>, vector<32x32xf32>, vector<2x32xf32> -> vector<2x32xf32>
    %20 = arith.addf %18, %19 : vector<2x32xf32>
    %21 = math.tanh %20 : vector<2x32xf32>
    %22 = vector.shape_cast %21 : vector<2x32xf32> to vector<2x1x32xf32>
    %c0_15 = arith.constant 0 : index
    %c1 = arith.constant 1 : index
    %c0_16 = arith.constant 0 : index
    %23 = vector.load %arg11[%c0_15, %c1, %c0_16] : memref<2x8x32xf32, #tpu.memory_space<vmem>>, vector<2x1x32xf32>
    tpu.vector_store %arg11[%c0_15, %c1, %c0_16], %22 {strides = array<i32>} : memref<2x8x32xf32, #tpu.memory_space<vmem>>, vector<2x1x32xf32>,
    %24 = vector.extract_strided_slice %7 {offsets = [0, 2, 0], sizes = [2, 1, 32], strides = [1, 1, 1]} : vector<2x8x32xf32> to vector<2x1x32xf32>
    %25 = vector.shape_cast %24 : vector<2x1x32xf32> to vector<2x32xf32>
    %cst_17 = arith.constant dense<0.000000e+00> : vector<2x32xf32>
    %26 = tpu.matmul %21, %1, %cst_17 {dimension_numbers = #tpu.dot_dimension_numbers<[1], [0], [0], [1], [0, 0, 1, 1], [], []>, precision = #tpu.contract_precision<fp32>} : vector<2x32xf32>, vector<32x32xf32>, vector<2x32xf32> -> vector<2x32xf32>
    %27 = arith.addf %25, %26 : vector<2x32xf32>
    %28 = math.tanh %27 : vector<2x32xf32>
    %29 = vector.shape_cast %28 : vector<2x32xf32> to vector<2x1x32xf32>
    %c0_18 = arith.constant 0 : index
    %c2 = arith.constant 2 : index
    %c0_19 = arith.constant 0 : index
    %30 = vector.load %arg11[%c0_18, %c2, %c0_19] : memref<2x8x32xf32, #tpu.memory_space<vmem>>, vector<2x1x32xf32>
    tpu.vector_store %arg11[%c0_18, %c2, %c0_19], %29 {strides = array<i32>} : memref<2x8x32xf32, #tpu.memory_space<vmem>>, vector<2x1x32xf32>,
    %31 = vector.extract_strided_slice %7 {offsets = [0, 3, 0], sizes = [2, 1, 32], strides = [1, 1, 1]} : vector<2x8x32xf32> to vector<2x1x32xf32>
    %32 = vector.shape_cast %31 : vector<2x1x32xf32> to vector<2x32xf32>
    %cst_20 = arith.constant dense<0.000000e+00> : vector<2x32xf32>
    %33 = tpu.matmul %28, %1, %cst_20 {dimension_numbers = #tpu.dot_dimension_numbers<[1], [0], [0], [1], [0, 0, 1, 1], [], []>, precision = #tpu.contract_precision<fp32>} : vector<2x32xf32>, vector<32x32xf32>, vector<2x32xf32> -> vector<2x32xf32>
    %34 = arith.addf %32, %33 : vector<2x32xf32>
    %35 = math.tanh %34 : vector<2x32xf32>
    %36 = vector.shape_cast %35 : vector<2x32xf32> to vector<2x1x32xf32>
    %c0_21 = arith.constant 0 : index
    %c3 = arith.constant 3 : index
    %c0_22 = arith.constant 0 : index
    %37 = vector.load %arg11[%c0_21, %c3, %c0_22] : memref<2x8x32xf32, #tpu.memory_space<vmem>>, vector<2x1x32xf32>
    tpu.vector_store %arg11[%c0_21, %c3, %c0_22], %36 {strides = array<i32>} : memref<2x8x32xf32, #tpu.memory_space<vmem>>, vector<2x1x32xf32>,
    %38 = vector.extract_strided_slice %7 {offsets = [0, 4, 0], sizes = [2, 1, 32], strides = [1, 1, 1]} : vector<2x8x32xf32> to vector<2x1x32xf32>
    %39 = vector.shape_cast %38 : vector<2x1x32xf32> to vector<2x32xf32>
    %cst_23 = arith.constant dense<0.000000e+00> : vector<2x32xf32>
    %40 = tpu.matmul %35, %1, %cst_23 {dimension_numbers = #tpu.dot_dimension_numbers<[1], [0], [0], [1], [0, 0, 1, 1], [], []>, precision = #tpu.contract_precision<fp32>} : vector<2x32xf32>, vector<32x32xf32>, vector<2x32xf32> -> vector<2x32xf32>
    %41 = arith.addf %39, %40 : vector<2x32xf32>
    %42 = math.tanh %41 : vector<2x32xf32>
    %43 = vector.shape_cast %42 : vector<2x32xf32> to vector<2x1x32xf32>
    %c0_24 = arith.constant 0 : index
    %c4 = arith.constant 4 : index
    %c0_25 = arith.constant 0 : index
    %44 = vector.load %arg11[%c0_24, %c4, %c0_25] : memref<2x8x32xf32, #tpu.memory_space<vmem>>, vector<2x1x32xf32>
    tpu.vector_store %arg11[%c0_24, %c4, %c0_25], %43 {strides = array<i32>} : memref<2x8x32xf32, #tpu.memory_space<vmem>>, vector<2x1x32xf32>,
    %45 = vector.extract_strided_slice %7 {offsets = [0, 5, 0], sizes = [2, 1, 32], strides = [1, 1, 1]} : vector<2x8x32xf32> to vector<2x1x32xf32>
    %46 = vector.shape_cast %45 : vector<2x1x32xf32> to vector<2x32xf32>
    %cst_26 = arith.constant dense<0.000000e+00> : vector<2x32xf32>
    %47 = tpu.matmul %42, %1, %cst_26 {dimension_numbers = #tpu.dot_dimension_numbers<[1], [0], [0], [1], [0, 0, 1, 1], [], []>, precision = #tpu.contract_precision<fp32>} : vector<2x32xf32>, vector<32x32xf32>, vector<2x32xf32> -> vector<2x32xf32>
    %48 = arith.addf %46, %47 : vector<2x32xf32>
    %49 = math.tanh %48 : vector<2x32xf32>
    %50 = vector.shape_cast %49 : vector<2x32xf32> to vector<2x1x32xf32>
    %c0_27 = arith.constant 0 : index
    %c5 = arith.constant 5 : index
    %c0_28 = arith.constant 0 : index
    %51 = vector.load %arg11[%c0_27, %c5, %c0_28] : memref<2x8x32xf32, #tpu.memory_space<vmem>>, vector<2x1x32xf32>
    tpu.vector_store %arg11[%c0_27, %c5, %c0_28], %50 {strides = array<i32>} : memref<2x8x32xf32, #tpu.memory_space<vmem>>, vector<2x1x32xf32>,
    %52 = vector.extract_strided_slice %7 {offsets = [0, 6, 0], sizes = [2, 1, 32], strides = [1, 1, 1]} : vector<2x8x32xf32> to vector<2x1x32xf32>
    %53 = vector.shape_cast %52 : vector<2x1x32xf32> to vector<2x32xf32>
    %cst_29 = arith.constant dense<0.000000e+00> : vector<2x32xf32>
    %54 = tpu.matmul %49, %1, %cst_29 {dimension_numbers = #tpu.dot_dimension_numbers<[1], [0], [0], [1], [0, 0, 1, 1], [], []>, precision = #tpu.contract_precision<fp32>} : vector<2x32xf32>, vector<32x32xf32>, vector<2x32xf32> -> vector<2x32xf32>
    %55 = arith.addf %53, %54 : vector<2x32xf32>
    %56 = math.tanh %55 : vector<2x32xf32>
    %57 = vector.shape_cast %56 : vector<2x32xf32> to vector<2x1x32xf32>
    %c0_30 = arith.constant 0 : index
    %c6 = arith.constant 6 : index
    %c0_31 = arith.constant 0 : index
    %58 = vector.load %arg11[%c0_30, %c6, %c0_31] : memref<2x8x32xf32, #tpu.memory_space<vmem>>, vector<2x1x32xf32>
    tpu.vector_store %arg11[%c0_30, %c6, %c0_31], %57 {strides = array<i32>} : memref<2x8x32xf32, #tpu.memory_space<vmem>>, vector<2x1x32xf32>,
    %59 = vector.extract_strided_slice %7 {offsets = [0, 7, 0], sizes = [2, 1, 32], strides = [1, 1, 1]} : vector<2x8x32xf32> to vector<2x1x32xf32>
    %60 = vector.shape_cast %59 : vector<2x1x32xf32> to vector<2x32xf32>
    %cst_32 = arith.constant dense<0.000000e+00> : vector<2x32xf32>
    %61 = tpu.matmul %56, %1, %cst_32 {dimension_numbers = #tpu.dot_dimension_numbers<[1], [0], [0], [1], [0, 0, 1, 1], [], []>, precision = #tpu.contract_precision<fp32>} : vector<2x32xf32>, vector<32x32xf32>, vector<2x32xf32> -> vector<2x32xf32>
    %62 = arith.addf %60, %61 : vector<2x32xf32>
    %63 = math.tanh %62 : vector<2x32xf32>
    %64 = vector.shape_cast %63 : vector<2x32xf32> to vector<2x1x32xf32>
    %c0_33 = arith.constant 0 : index
    %c7 = arith.constant 7 : index
    %c0_34 = arith.constant 0 : index
    %65 = vector.load %arg11[%c0_33, %c7, %c0_34] : memref<2x8x32xf32, #tpu.memory_space<vmem>>, vector<2x1x32xf32>
    tpu.vector_store %arg11[%c0_33, %c7, %c0_34], %64 {strides = array<i32>} : memref<2x8x32xf32, #tpu.memory_space<vmem>>, vector<2x1x32xf32>,
    %c0_35 = arith.constant 0 : index
    %c0_36 = arith.constant 0 : index
    %66 = vector.load %arg5[%c0_35, %c0_36] : memref<32x32xf32, #tpu.memory_space<vmem>>, vector<32x32xf32>
    %c0_37 = arith.constant 0 : index
    %c0_38 = arith.constant 0 : index
    %67 = vector.load %arg6[%c0_37, %c0_38] : memref<32x32xf32, #tpu.memory_space<vmem>>, vector<32x32xf32>
    %c0_39 = arith.constant 0 : index
    %c0_40 = arith.constant 0 : index
    %68 = vector.load %arg7[%c0_39, %c0_40] : memref<1x32xf32, #tpu.memory_space<vmem>>, vector<1x32xf32>
    %c0_41 = arith.constant 0 : index
    %c0_42 = arith.constant 0 : index
    %c0_43 = arith.constant 0 : index
    %69 = vector.load %arg11[%c0_41, %c0_42, %c0_43] : memref<2x8x32xf32, #tpu.memory_space<vmem>>, vector<2x8x32xf32>
    %70 = vector.shape_cast %69 : vector<2x8x32xf32> to vector<16x32xf32>
    %cst_44 = arith.constant dense<0.000000e+00> : vector<16x32xf32>
    %71 = tpu.matmul %70, %66, %cst_44 {dimension_numbers = #tpu.dot_dimension_numbers<[1], [0], [0], [1], [0, 0, 1, 1], [], []>, precision = #tpu.contract_precision<fp32>} : vector<16x32xf32>, vector<32x32xf32>, vector<16x32xf32> -> vector<16x32xf32>
    %72 = vector.broadcast %68 : vector<1x32xf32> to vector<16x32xf32>
    %73 = arith.addf %71, %72 : vector<16x32xf32>
    %74 = vector.shape_cast %73 : vector<16x32xf32> to vector<2x8x32xf32>
    %c1_45 = arith.constant 1 : index
    %c0_46 = arith.constant 0 : index
    %c0_47 = arith.constant 0 : index
    %75 = vector.load %arg1[%c1_45, %c0_46, %c0_47] : memref<2x2x32xf32, #tpu.memory_space<vmem>>, vector<1x2x32xf32>
    %76 = vector.shape_cast %75 : vector<1x2x32xf32> to vector<2x32xf32>
    %77 = vector.extract_strided_slice %74 {offsets = [0, 0, 0], sizes = [2, 1, 32], strides = [1, 1, 1]} : vector<2x8x32xf32> to vector<2x1x32xf32>
    %78 = vector.shape_cast %77 : vector<2x1x32xf32> to vector<2x32xf32>
    %cst_48 = arith.constant dense<0.000000e+00> : vector<2x32xf32>
    %79 = tpu.matmul %76, %67, %cst_48 {dimension_numbers = #tpu.dot_dimension_numbers<[1], [0], [0], [1], [0, 0, 1, 1], [], []>, precision = #tpu.contract_precision<fp32>} : vector<2x32xf32>, vector<32x32xf32>, vector<2x32xf32> -> vector<2x32xf32>
    %80 = arith.addf %78, %79 : vector<2x32xf32>
    %81 = math.tanh %80 : vector<2x32xf32>
    %82 = vector.shape_cast %81 : vector<2x32xf32> to vector<2x1x32xf32>
    %c0_49 = arith.constant 0 : index
    %c0_50 = arith.constant 0 : index
    %c0_51 = arith.constant 0 : index
    %83 = vector.load %arg11[%c0_49, %c0_50, %c0_51] : memref<2x8x32xf32, #tpu.memory_space<vmem>>, vector<2x1x32xf32>
    tpu.vector_store %arg11[%c0_49, %c0_50, %c0_51], %82 {strides = array<i32>} : memref<2x8x32xf32, #tpu.memory_space<vmem>>, vector<2x1x32xf32>,
    %84 = vector.extract_strided_slice %74 {offsets = [0, 1, 0], sizes = [2, 1, 32], strides = [1, 1, 1]} : vector<2x8x32xf32> to vector<2x1x32xf32>
    %85 = vector.shape_cast %84 : vector<2x1x32xf32> to vector<2x32xf32>
    %cst_52 = arith.constant dense<0.000000e+00> : vector<2x32xf32>
    %86 = tpu.matmul %81, %67, %cst_52 {dimension_numbers = #tpu.dot_dimension_numbers<[1], [0], [0], [1], [0, 0, 1, 1], [], []>, precision = #tpu.contract_precision<fp32>} : vector<2x32xf32>, vector<32x32xf32>, vector<2x32xf32> -> vector<2x32xf32>
    %87 = arith.addf %85, %86 : vector<2x32xf32>
    %88 = math.tanh %87 : vector<2x32xf32>
    %89 = vector.shape_cast %88 : vector<2x32xf32> to vector<2x1x32xf32>
    %c0_53 = arith.constant 0 : index
    %c1_54 = arith.constant 1 : index
    %c0_55 = arith.constant 0 : index
    %90 = vector.load %arg11[%c0_53, %c1_54, %c0_55] : memref<2x8x32xf32, #tpu.memory_space<vmem>>, vector<2x1x32xf32>
    tpu.vector_store %arg11[%c0_53, %c1_54, %c0_55], %89 {strides = array<i32>} : memref<2x8x32xf32, #tpu.memory_space<vmem>>, vector<2x1x32xf32>,
    %91 = vector.extract_strided_slice %74 {offsets = [0, 2, 0], sizes = [2, 1, 32], strides = [1, 1, 1]} : vector<2x8x32xf32> to vector<2x1x32xf32>
    %92 = vector.shape_cast %91 : vector<2x1x32xf32> to vector<2x32xf32>
    %cst_56 = arith.constant dense<0.000000e+00> : vector<2x32xf32>
    %93 = tpu.matmul %88, %67, %cst_56 {dimension_numbers = #tpu.dot_dimension_numbers<[1], [0], [0], [1], [0, 0, 1, 1], [], []>, precision = #tpu.contract_precision<fp32>} : vector<2x32xf32>, vector<32x32xf32>, vector<2x32xf32> -> vector<2x32xf32>
    %94 = arith.addf %92, %93 : vector<2x32xf32>
    %95 = math.tanh %94 : vector<2x32xf32>
    %96 = vector.shape_cast %95 : vector<2x32xf32> to vector<2x1x32xf32>
    %c0_57 = arith.constant 0 : index
    %c2_58 = arith.constant 2 : index
    %c0_59 = arith.constant 0 : index
    %97 = vector.load %arg11[%c0_57, %c2_58, %c0_59] : memref<2x8x32xf32, #tpu.memory_space<vmem>>, vector<2x1x32xf32>
    tpu.vector_store %arg11[%c0_57, %c2_58, %c0_59], %96 {strides = array<i32>} : memref<2x8x32xf32, #tpu.memory_space<vmem>>, vector<2x1x32xf32>,
    %98 = vector.extract_strided_slice %74 {offsets = [0, 3, 0], sizes = [2, 1, 32], strides = [1, 1, 1]} : vector<2x8x32xf32> to vector<2x1x32xf32>
    %99 = vector.shape_cast %98 : vector<2x1x32xf32> to vector<2x32xf32>
    %cst_60 = arith.constant dense<0.000000e+00> : vector<2x32xf32>
    %100 = tpu.matmul %95, %67, %cst_60 {dimension_numbers = #tpu.dot_dimension_numbers<[1], [0], [0], [1], [0, 0, 1, 1], [], []>, precision = #tpu.contract_precision<fp32>} : vector<2x32xf32>, vector<32x32xf32>, vector<2x32xf32> -> vector<2x32xf32>
    %101 = arith.addf %99, %100 : vector<2x32xf32>
    %102 = math.tanh %101 : vector<2x32xf32>
    %103 = vector.shape_cast %102 : vector<2x32xf32> to vector<2x1x32xf32>
    %c0_61 = arith.constant 0 : index
    %c3_62 = arith.constant 3 : index
    %c0_63 = arith.constant 0 : index
    %104 = vector.load %arg11[%c0_61, %c3_62, %c0_63] : memref<2x8x32xf32, #tpu.memory_space<vmem>>, vector<2x1x32xf32>
    tpu.vector_store %arg11[%c0_61, %c3_62, %c0_63], %103 {strides = array<i32>} : memref<2x8x32xf32, #tpu.memory_space<vmem>>, vector<2x1x32xf32>,
    %105 = vector.extract_strided_slice %74 {offsets = [0, 4, 0], sizes = [2, 1, 32], strides = [1, 1, 1]} : vector<2x8x32xf32> to vector<2x1x32xf32>
    %106 = vector.shape_cast %105 : vector<2x1x32xf32> to vector<2x32xf32>
    %cst_64 = arith.constant dense<0.000000e+00> : vector<2x32xf32>
    %107 = tpu.matmul %102, %67, %cst_64 {dimension_numbers = #tpu.dot_dimension_numbers<[1], [0], [0], [1], [0, 0, 1, 1], [], []>, precision = #tpu.contract_precision<fp32>} : vector<2x32xf32>, vector<32x32xf32>, vector<2x32xf32> -> vector<2x32xf32>
    %108 = arith.addf %106, %107 : vector<2x32xf32>
    %109 = math.tanh %108 : vector<2x32xf32>
    %110 = vector.shape_cast %109 : vector<2x32xf32> to vector<2x1x32xf32>
    %c0_65 = arith.constant 0 : index
    %c4_66 = arith.constant 4 : index
    %c0_67 = arith.constant 0 : index
    %111 = vector.load %arg11[%c0_65, %c4_66, %c0_67] : memref<2x8x32xf32, #tpu.memory_space<vmem>>, vector<2x1x32xf32>
    tpu.vector_store %arg11[%c0_65, %c4_66, %c0_67], %110 {strides = array<i32>} : memref<2x8x32xf32, #tpu.memory_space<vmem>>, vector<2x1x32xf32>,
    %112 = vector.extract_strided_slice %74 {offsets = [0, 5, 0], sizes = [2, 1, 32], strides = [1, 1, 1]} : vector<2x8x32xf32> to vector<2x1x32xf32>
    %113 = vector.shape_cast %112 : vector<2x1x32xf32> to vector<2x32xf32>
    %cst_68 = arith.constant dense<0.000000e+00> : vector<2x32xf32>
    %114 = tpu.matmul %109, %67, %cst_68 {dimension_numbers = #tpu.dot_dimension_numbers<[1], [0], [0], [1], [0, 0, 1, 1], [], []>, precision = #tpu.contract_precision<fp32>} : vector<2x32xf32>, vector<32x32xf32>, vector<2x32xf32> -> vector<2x32xf32>
    %115 = arith.addf %113, %114 : vector<2x32xf32>
    %116 = math.tanh %115 : vector<2x32xf32>
    %117 = vector.shape_cast %116 : vector<2x32xf32> to vector<2x1x32xf32>
    %c0_69 = arith.constant 0 : index
    %c5_70 = arith.constant 5 : index
    %c0_71 = arith.constant 0 : index
    %118 = vector.load %arg11[%c0_69, %c5_70, %c0_71] : memref<2x8x32xf32, #tpu.memory_space<vmem>>, vector<2x1x32xf32>
    tpu.vector_store %arg11[%c0_69, %c5_70, %c0_71], %117 {strides = array<i32>} : memref<2x8x32xf32, #tpu.memory_space<vmem>>, vector<2x1x32xf32>,
    %119 = vector.extract_strided_slice %74 {offsets = [0, 6, 0], sizes = [2, 1, 32], strides = [1, 1, 1]} : vector<2x8x32xf32> to vector<2x1x32xf32>
    %120 = vector.shape_cast %119 : vector<2x1x32xf32> to vector<2x32xf32>
    %cst_72 = arith.constant dense<0.000000e+00> : vector<2x32xf32>
    %121 = tpu.matmul %116, %67, %cst_72 {dimension_numbers = #tpu.dot_dimension_numbers<[1], [0], [0], [1], [0, 0, 1, 1], [], []>, precision = #tpu.contract_precision<fp32>} : vector<2x32xf32>, vector<32x32xf32>, vector<2x32xf32> -> vector<2x32xf32>
    %122 = arith.addf %120, %121 : vector<2x32xf32>
    %123 = math.tanh %122 : vector<2x32xf32>
    %124 = vector.shape_cast %123 : vector<2x32xf32> to vector<2x1x32xf32>
    %c0_73 = arith.constant 0 : index
    %c6_74 = arith.constant 6 : index
    %c0_75 = arith.constant 0 : index
    %125 = vector.load %arg11[%c0_73, %c6_74, %c0_75] : memref<2x8x32xf32, #tpu.memory_space<vmem>>, vector<2x1x32xf32>
    tpu.vector_store %arg11[%c0_73, %c6_74, %c0_75], %124 {strides = array<i32>} : memref<2x8x32xf32, #tpu.memory_space<vmem>>, vector<2x1x32xf32>,
    %126 = vector.extract_strided_slice %74 {offsets = [0, 7, 0], sizes = [2, 1, 32], strides = [1, 1, 1]} : vector<2x8x32xf32> to vector<2x1x32xf32>
    %127 = vector.shape_cast %126 : vector<2x1x32xf32> to vector<2x32xf32>
    %cst_76 = arith.constant dense<0.000000e+00> : vector<2x32xf32>
    %128 = tpu.matmul %123, %67, %cst_76 {dimension_numbers = #tpu.dot_dimension_numbers<[1], [0], [0], [1], [0, 0, 1, 1], [], []>, precision = #tpu.contract_precision<fp32>} : vector<2x32xf32>, vector<32x32xf32>, vector<2x32xf32> -> vector<2x32xf32>
    %129 = arith.addf %127, %128 : vector<2x32xf32>
    %130 = math.tanh %129 : vector<2x32xf32>
    %131 = vector.shape_cast %130 : vector<2x32xf32> to vector<2x1x32xf32>
    %c0_77 = arith.constant 0 : index
    %c7_78 = arith.constant 7 : index
    %c0_79 = arith.constant 0 : index
    %132 = vector.load %arg11[%c0_77, %c7_78, %c0_79] : memref<2x8x32xf32, #tpu.memory_space<vmem>>, vector<2x1x32xf32>
    tpu.vector_store %arg11[%c0_77, %c7_78, %c0_79], %131 {strides = array<i32>} : memref<2x8x32xf32, #tpu.memory_space<vmem>>, vector<2x1x32xf32>,
    %c0_80 = arith.constant 0 : index
    %c0_81 = arith.constant 0 : index
    %c0_82 = arith.constant 0 : index
    %133 = vector.load %arg11[%c0_80, %c0_81, %c0_82] : memref<2x8x32xf32, #tpu.memory_space<vmem>>, vector<2x8x32xf32>
    %134 = vector.shape_cast %133 : vector<2x8x32xf32> to vector<16x32xf32>
    %c0_83 = arith.constant 0 : index
    %c0_84 = arith.constant 0 : index
    %135 = vector.load %arg8[%c0_83, %c0_84] : memref<32x4xf32, #tpu.memory_space<vmem>>, vector<32x4xf32>
    %cst_85 = arith.constant dense<0.000000e+00> : vector<16x4xf32>
    %136 = tpu.matmul %134, %135, %cst_85 {dimension_numbers = #tpu.dot_dimension_numbers<[1], [0], [0], [1], [0, 0, 1, 1], [], []>, precision = #tpu.contract_precision<fp32>} : vector<16x32xf32>, vector<32x4xf32>, vector<16x4xf32> -> vector<16x4xf32>
    %c0_86 = arith.constant 0 : index
    %c0_87 = arith.constant 0 : index
    %137 = vector.load %arg9[%c0_86, %c0_87] : memref<1x4xf32, #tpu.memory_space<vmem>>, vector<1x4xf32>
    %138 = vector.broadcast %137 : vector<1x4xf32> to vector<16x4xf32>
    %139 = arith.addf %136, %138 : vector<16x4xf32>
    %c0_88 = arith.constant 0 : index
    %c0_89 = arith.constant 0 : index
    %140 = vector.load %arg10[%c0_88, %c0_89] : memref<16x4xf32, #tpu.memory_space<vmem>>, vector<16x4xf32>
    tpu.vector_store %arg10[%c0_88, %c0_89], %139 {strides = array<i32>} : memref<16x4xf32, #tpu.memory_space<vmem>>, vector<16x4xf32>,
    return
  }
}

</mosaic_0001>

<bundles_post_ra>
// kernel: tpu_custom_call.1
= control target key start
LH: loop header
LB: loop body
LE: loop exit
PB: predicated region body
PF: predicated region fallthrough
CT: control target
= control target key end

     0   :  { %15 = vsyncpa [#allocation4], 0  ;;  %s13228_s0 = inlined_call_operand.vmem [shape: f32[16,4], index: 0, kind: input, shape index: {}]   ;;  %s13229_s1 = inlined_call_operand.hbm [shape: f32[2,2,32], index: 1, kind: input, shape index: {}]   ;;  %s13230_s2 = inlined_call_operand.hbm [shape: f32[4,32], index: 2, kind: input, shape index: {}]   ;;  %s13231_s3 = inlined_call_operand.vmem [shape: f32[32,32], index: 3, kind: input, shape index: {}]   ;;  %s13232_s4 = inlined_call_operand.hbm [shape: f32[1,32], index: 4, kind: input, shape index: {}]   ;;  %s13233_s5 = inlined_call_operand.vmem [shape: f32[32,32], index: 5, kind: input, shape index: {}]   ;;  %s13234_s6 = inlined_call_operand.hbm [shape: f32[32,32], index: 6, kind: input, shape index: {}]   ;;  %s13235_s7 = inlined_call_operand.hbm [shape: f32[1,32], index: 7, kind: input, shape index: {}]   ;;  %s13236_s8 = inlined_call_operand.vmem [shape: f32[32,4], index: 8, kind: input, shape index: {}]   ;;  %s13237_s9 = inlined_call_operand.vmem [shape: f32[1,4], index: 9, kind: input, shape index: {}]   ;;  %s13238_s10 = inlined_call_operand.vmem [shape: f32[16,4], index: 10, kind: output, shape index: {}]  }
   0x1   :  { %16 = vsyncpa [#allocation6], 0 }
   0x2   :  { %17 = vsyncpa [#allocation9], 0  ;;  %s11735_s13 = smov [#allocation5]   ;;  %s11736_s15 = smov [#allocation8]  }
   0x3   :  { %s38_s14 = sshll.u32 %s11735_s13, 4  ;;  %s61_s16 = sshll.u32 %s11736_s15, 4  ;;  %s39_s14 = int_to_ptr.vmem [resolvable:$true] %s38_s14  ;;  %s62_s16 = int_to_ptr.vmem [resolvable:$true] %s61_s16 }
   0x4   :  { %s11637_s17 = scalar_lea.vmem %s39_s14, 64  ;;  %p11642_p1 = scmp.lt.s32.totalorder %s39_s14, %s39_s14 }
   0x5   :  { %p11638_p0 = scmp.ne.s32.totalorder %s39_s14, %s11637_s17  ;;  %p11643_p2 = scmp.lt.s32.totalorder %s11637_s17, %s11637_s17 }
   0x7   :  { %p11644_p3 = por %p11643_p2, %p11642_p1 }
   0x9   :  { %p11645_p4 = pnand %p11644_p3, %p11638_p0 }
   0xb   :  { %11648 = shalt.err (!%p11645_p4)
}
   0xc   :  { %41 = dma.hbm_to_vmem [thread:$0]  %s13230_s2, 64, %s39_s14, [#allocation6]  }
   0xd   :  { %s11657_s20 = scalar_lea.vmem %s62_s16, 512  ;;  %p11662_p6 = scmp.lt.s32.totalorder %s62_s16, %s62_s16 }
   0xe   :  { %p11658_p5 = scmp.ne.s32.totalorder %s62_s16, %s11657_s20  ;;  %p11663_p7 = scmp.lt.s32.totalorder %s11657_s20, %s11657_s20 }
  0x10   :  { %p11664_p8 = por %p11663_p7, %p11662_p6 }
  0x12   :  { %p11665_p9 = pnand %p11664_p8, %p11658_p5 }
  0x14   :  { %11668 = shalt.err (!%p11665_p9)
}
  0x15   :  { %s11737_s21 = smov 128   ;;  %s11738_s22 = smov 8  }
  0x16   :  { %67 = dma.hbm_to_vmem [thread:$0]  %s13234_s6, 512, %s62_s16, [#allocation9], %s11737_s21, %s11737_s21, %s11738_s22  }
  0x17   :  { %s11739_s25 = smov [#allocation3]  }
  0x18   :  { %s25_s26 = sshll.u32 %s11739_s25, 4  ;;  %s26_s26 = int_to_ptr.vmem [resolvable:$true] %s25_s26 }
  0x19   :  { %s11677_s27 = scalar_lea.vmem %s26_s26, 64  ;;  %p11682_p11 = scmp.lt.s32.totalorder %s26_s26, %s26_s26 }
  0x1a   :  { %p11678_p10 = scmp.ne.s32.totalorder %s26_s26, %s11677_s27  ;;  %p11683_p12 = scmp.lt.s32.totalorder %s11677_s27, %s11677_s27 }
  0x1c   :  { %p11684_p13 = por %p11683_p12, %p11682_p11 }
  0x1e   :  { %p11685_p0 = pnand %p11684_p13, %p11678_p10 }
  0x20   :  { %11688 = shalt.err (!%p11685_p0)
}
  0x21   :  { %s11740_s2 = smov 32   ;;  %s11741_s28 = smov 2  }
  0x22   :  { %31 = dma.hbm_to_vmem [thread:$0]  %s13229_s1, 64, %s26_s26, [#allocation4], %s11740_s2, %s11740_s2, %s11741_s28  }
  0x23   :  { %s11742_s11 = smov [#allocation7]   ;;  %s11743_s6 = smov [#allocation10]  }
  0x24   :  { %s50_s12 = sshll.u32 %s11742_s11, 4  ;;  %s74_s13 = sshll.u32 %s11743_s6, 4  ;;  %s51_s12 = int_to_ptr.vmem [resolvable:$true] %s50_s12  ;;  %s75_s13 = int_to_ptr.vmem [resolvable:$true] %s74_s13 }
  0x25   :  { %s11697_s14 = scalar_lea.vmem %s51_s12, 16  ;;  %s11701_s15 = scalar_lea.vmem %s51_s12, 32 }
  0x26   :  { %p11698_p1 = scmp.ne.s32.totalorder %s51_s12, %s11697_s14  ;;  %p11702_p2 = scmp.lt.s32.totalorder %s51_s12, %s51_s12 }
  0x27   :  { %p11703_p3 = scmp.lt.s32.totalorder %s11701_s15, %s11697_s14 }
  0x29   :  { %p11704_p4 = por %p11703_p3, %p11702_p2 }
  0x2b   :  { %p11705_p5 = pnand %p11704_p4, %p11698_p1 }
  0x2d   :  { %11708 = shalt.err (!%p11705_p5)
}
  0x2e   :  { %53 = dma.hbm_to_vmem [thread:$0]  %s13232_s4, 16, %s51_s12, [#allocation6]  }
  0x2f   :  { %s11717_s18 = scalar_lea.vmem %s75_s13, 16  ;;  %s11721_s1 = scalar_lea.vmem %s75_s13, 32 }
  0x30   :  { %p11718_p6 = scmp.ne.s32.totalorder %s75_s13, %s11717_s18  ;;  %p11722_p7 = scmp.lt.s32.totalorder %s75_s13, %s75_s13 }
  0x31   :  { %p11723_p8 = scmp.lt.s32.totalorder %s11721_s1, %s11717_s18 }
  0x33   :  { %p11724_p9 = por %p11723_p8, %p11722_p7 }
  0x35   :  { %p11725_p10 = pnand %p11724_p9, %p11718_p6 }
  0x37   :  { %11728 = shalt.err (!%p11725_p10)
}
  0x38   :  { %77 = dma.hbm_to_vmem [thread:$0]  %s13235_s7, 16, %s75_s13, [#allocation9]  }
  0x39   :  { %11729 = dma.done.wait [#allocation4], 64  }
  0x3a   :  { %11730 = vsyncadd [#allocation4], 4294967232 }
  0x3b   :  { %11731 = dma.done.wait [#allocation6], 80  }
  0x3c   :  { %11732 = vsyncadd [#allocation6], 4294967216 }
  0x3d   :  { %11733 = dma.done.wait [#allocation9], 528  }
  0x3e   :  { %11734 = vsyncadd [#allocation9], 4294966768  ;;  %vm118_vm0 = vcmask 1043456   ;;  %vm111_vm1 = vcmask 31744   ;;  %v97_v0 = vld [vmem:[#allocation5] sm:$0xf] }
  0x3f   :  { %v103_v1 = vld [vmem:[%s13228_s0] sm:$0xff]  ;;  %v104_v2 = vld [vmem:[%s13228_s0 + $0x8] sm:$0xff]  ;;  %v120_v3 = vsel %vm118_vm0, %v97_v0, 0  ;;  %v101_v6 = vld [vmem:[%s13231_s3 + $0x18] sm:$0xff]  ;;  %vm612_vm2 = vcmask 261120   ;;  %v11744_v44 = vmov 0.0  }
  0x40   :  { %v113_v4 = vsel %vm111_vm1, %v103_v1, 0  ;;  %v116_v5 = vsel %vm111_vm1, %v104_v2, 0  ;;  %v153_v7 = vand.u32 4294901760, %v120_v3  ;;  %v100_v10 = vld [vmem:[%s13231_s3 + $0x10] sm:$0xff]  ;;  %v11833_v14 = vand.u32 4294901760, %v101_v6  ;;  %v99_v15 = vld [vmem:[%s13231_s3 + $0x8] sm:$0xff] }
  0x41   :  { %v188_v8 = vand.u32 4294901760, %v113_v4  ;;  %v11827_v9 = vand.u32 4294901760, %v116_v5  ;;  %v611_v16 = vld [vmem:[#allocation3] sm:$0x3]  ;;  %v11838_v17 = vand.u32 4294901760, %v100_v10  ;;  %v98_v21 = vld [vmem:[%s13231_s3] sm:$0xff] }
  0x42   :  { %10336 = vmatprep.subr.mxu0 %v153_v7  ;;  %v240_v12 = vsub.f32 %v120_v3, %v153_v7  ;;  %v11843_v22 = vand.u32 4294901760, %v99_v15  ;;  %v614_v23 = vsel %vm612_vm2, %v611_v16, 0  ;;  %v11847_v27 = vsub.f32 %v101_v6, %v11833_v14  ;;  %v9763_v2 = vld [vmem:[#allocation7] ss:$0 sm:$0xff] }
  0x43   :  { %v189_v11 = vsub.f32 %v113_v4, %v188_v8  ;;  %v199_v13 = vsub.f32 %v116_v5, %v11827_v9  ;;  %10343 = vmatprep.mubr.f32.mxu1 %v188_v8  ;;  %10337 = vmatpush3.msra.mxu0 %v153_v7  ;;  %v11850_v28 = vsub.f32 %v100_v10, %v11838_v17  ;;  %v11852_v29 = vand.u32 4294901760, %v98_v21 }
  0x44   :  { %v241_v19 = vand.u32 4294901760, %v240_v12  ;;  %10346 = vmatprep.subr.mxu0 %v240_v12  ;;  %v11854_v33 = vand.u32 4294901760, %v614_v23  ;;  %v11857_v34 = vand.u32 4294901760, %v11847_v27  ;;  %v11860_v35 = vsub.f32 %v99_v15, %v11843_v22 }
  0x45   :  { %v190_v18 = vand.u32 4294901760, %v189_v11  ;;  %v200_v20 = vand.u32 4294901760, %v199_v13  ;;  %v11864_v36 = vand.u32 4294901760, %v11850_v28  ;;  %v11870_v38 = vsub.f32 %v98_v21, %v11852_v29 }
  0x46   :  { %v242_v25 = vsub.f32 %v240_v12, %v241_v19  ;;  %v11867_v37 = vsub.f32 %v614_v23, %v11854_v33  ;;  %v723_v39 = vsub.f32 %v11847_v27, %v11857_v34  ;;  %v11875_v40 = vand.u32 4294901760, %v11860_v35 }
  0x47   :  { %v191_v24 = vsub.f32 %v189_v11, %v190_v18  ;;  %v201_v26 = vsub.f32 %v199_v13, %v200_v20  ;;  %v730_v41 = vsub.f32 %v11850_v28, %v11864_v36  ;;  %v11881_v43 = vand.u32 4294901760, %v11870_v38 }
  0x48   :  { %v243_v31 = vand.u32 4294901760, %v242_v25  ;;  %v687_v42 = vand.u32 4294901760, %v11867_v37  ;;  %v11884_v45 = vand.u32 4294901760, %v723_v39  ;;  %v737_v46 = vsub.f32 %v11860_v35, %v11875_v40 }
  0x49   :  { %v192_v30 = vand.u32 4294901760, %v191_v24  ;;  %v202_v32 = vand.u32 4294901760, %v201_v26  ;;  %v11891_v47 = vand.u32 4294901760, %v730_v41  ;;  %v744_v49 = vsub.f32 %v11870_v38, %v11881_v43 }
  0x4a   :  { %10341 = vmatprep.subr.mxu1 %v243_v31  ;;  %v688_v48 = vsub.f32 %v11867_v37, %v687_v42  ;;  %v11900_v50 = vand.u32 4294901760, %v737_v46  ;;  %vm11745_vm3 = vmmov 0   ;;  %vm1109_vm4 = vcmask 253952  }
  0x4b   :  { %10338 = vmatprep.mubr.f32.mxu0 %v192_v30  ;;  %10342 = vmatpush3.msra.mxu1 %v243_v31  ;;  %v11906_v52 = vand.u32 4294901760, %v744_v49  ;;  %vm1115_vm5 = vcmask 1041409   ;;  %vm1612_vm6 = vcmask 254977   ;;  %vm2115_vm7 = vcmask 256002  }
  0x4c   :  { %10339 = vmatmul.mubr.f32.vlgmr.msra.gmra.mxu0 %v202_v32  ;;  %10344 = vmatmul.mubr.f32.vlgmr.msra.gmra.mxu1 %v11827_v9  ;;  %v689_v51 = vand.u32 4294901760, %v688_v48  ;;  %vm2619_vm8 = vcmask 257027   ;;  %vm3123_vm9 = vcmask 258052   ;;  %vm3627_vm10 = vcmask 259077  }
  0x4d   :  { %10347 = vmatpush3.msra.mxu0 %v240_v12  ;;  %10351 = vmatprep.subr.mxu1 %v153_v7  ;;  %vm4131_vm11 = vcmask 260102   ;;  %vm4635_vm12 = vcmask 261127  }
  0x4e   :  { %10348 = vmatprep.mubr.f32.mxu0 %v189_v11  ;;  %10352 = vmatpush3.msra.mxu1 %v153_v7 }
  0x4f   :  { %10356 = vmatprep.subr.mxu0 %v241_v19  ;;  %10353 = vmatprep.mubr.f32.mxu1 %v190_v18 }
  0x50   :  { %10349 = vmatmul.mubr.f32.vlgmr.msra.gmra.mxu0 %v199_v13  ;;  %10354 = vmatmul.mubr.f32.vlgmr.msra.gmra.mxu1 %v200_v20 }
  0x51   :  { %10357 = vmatpush3.msra.mxu0 %v241_v19  ;;  %10361 = vmatprep.subr.mxu1 %v153_v7 }
  0x52   :  { %10358 = vmatprep.mubr.f32.mxu0 %v188_v8  ;;  %10362 = vmatpush3.msra.mxu1 %v153_v7 }
  0x53   :  { %10366 = vmatprep.subr.mxu0 %v11744_v44  ;;  %10363 = vmatprep.mubr.f32.mxu1 %v188_v8 }
  0x54   :  { %10359 = vmatmul.mubr.f32.vlgmr.msra.gmra.mxu0 %v11827_v9  ;;  %10377 = vmatprep.subr.mxu1 %v11744_v44 }
  0x55   :  { %10367 = vmatpush3.msra.mxu0 %v11833_v14  ;;  %10364 = vmatmul.mubr.f32.vlgmr.msra.gmra.mxu1 %v11827_v9 }
  0x56   :  { %10368 = vmatprep.subr.mxu0 %v11744_v44  ;;  %10378 = vmatpush3.msra.mxu1 %v11884_v45 }
  0x57   :  { %10369 = vmatpush3.msra.mxu0 %v11838_v17  ;;  %10379 = vmatprep.subr.mxu1 %v11744_v44 }
  0x58   :  { %10370 = vmatprep.subr.mxu0 %v11744_v44  ;;  %10380 = vmatpush3.msra.mxu1 %v11891_v47 }
  0x59   :  { %10371 = vmatpush3.msra.mxu0 %v11843_v22  ;;  %10381 = vmatprep.subr.mxu1 %v11744_v44 }
  0x5a   :  { %10372 = vmatprep.subr.mxu0 %v11744_v44  ;;  %10382 = vmatpush3.msra.mxu1 %v11900_v50 }
  0x5b   :  { %10373 = vmatpush3.msra.mxu0 %v11852_v29  ;;  %10374 = vmatprep.mubr.msk.f32.mxu0 %vm11745_vm3, %v11744_v44 }
  0x5c   :  { %10383 = vmatprep.subr.mxu1 %v11744_v44  ;;  %10375 = vmatmul.mubr.f32.vlgmr.msra.gmra.mxu0 %v689_v51 }
  0x5d   :  { %10384 = vmatpush3.msra.mxu1 %v11906_v52  ;;  %10385 = vmatprep.mubr.msk.f32.mxu1 %vm11745_vm3, %v11744_v44 }
  0x5e   :  { %10388 = vmatprep.subr.mxu0 %v11744_v44  ;;  %10386 = vmatmul.mubr.f32.vlgmr.msra.gmra.mxu1 %v11854_v33 }
  0x5f   :  { %10389 = vmatpush3.msra.mxu0 %v11847_v27  ;;  %10399 = vmatprep.subr.mxu1 %v11744_v44 }
  0x60   :  { %10390 = vmatprep.subr.mxu0 %v11744_v44  ;;  %10400 = vmatpush3.msra.mxu1 %v11833_v14 }
  0x61   :  { %10391 = vmatpush3.msra.mxu0 %v11850_v28  ;;  %10401 = vmatprep.subr.mxu1 %v11744_v44 }
  0x62   :  { %10392 = vmatprep.subr.mxu0 %v11744_v44  ;;  %10402 = vmatpush3.msra.mxu1 %v11838_v17 }
  0x63   :  { %10393 = vmatpush3.msra.mxu0 %v11860_v35  ;;  %10403 = vmatprep.subr.mxu1 %v11744_v44 }
  0x64   :  { %10394 = vmatprep.subr.mxu0 %v11744_v44  ;;  %10404 = vmatpush3.msra.mxu1 %v11843_v22 }
  0x65   :  { %10395 = vmatpush3.msra.mxu0 %v11870_v38  ;;  %10396 = vmatprep.mubr.msk.f32.mxu0 %vm11745_vm3, %v11744_v44 }
  0x66   :  { %10405 = vmatprep.subr.mxu1 %v11744_v44  ;;  %10397 = vmatmul.mubr.f32.vlgmr.msra.gmra.mxu0 %v11867_v37 }
  0x67   :  { %10406 = vmatpush3.msra.mxu1 %v11852_v29  ;;  %10407 = vmatprep.mubr.msk.f32.mxu1 %vm11745_vm3, %v11744_v44 }
  0x68   :  { %10410 = vmatprep.subr.mxu0 %v11744_v44  ;;  %10408 = vmatmul.mubr.f32.vlgmr.msra.gmra.mxu1 %v687_v42 }
  0x69   :  { %10411 = vmatpush3.msra.mxu0 %v11857_v34  ;;  %10421 = vmatprep.subr.mxu1 %v11744_v44 }
  0x6a   :  { %10412 = vmatprep.subr.mxu0 %v11744_v44  ;;  %10422 = vmatpush3.msra.mxu1 %v11833_v14 }
  0x6b   :  { %10413 = vmatpush3.msra.mxu0 %v11864_v36  ;;  %10423 = vmatprep.subr.mxu1 %v11744_v44 }
  0x6c   :  { %10414 = vmatprep.subr.mxu0 %v11744_v44  ;;  %10424 = vmatpush3.msra.mxu1 %v11838_v17 }
  0x6d   :  { %10415 = vmatpush3.msra.mxu0 %v11875_v40  ;;  %10425 = vmatprep.subr.mxu1 %v11744_v44 }
  0x6e   :  { %10416 = vmatprep.subr.mxu0 %v11744_v44  ;;  %10426 = vmatpush3.msra.mxu1 %v11843_v22 }
  0x6f   :  { %10417 = vmatpush3.msra.mxu0 %v11881_v43  ;;  %10418 = vmatprep.mubr.msk.f32.mxu0 %vm11745_vm3, %v11744_v44 }
  0x70   :  { %10427 = vmatprep.subr.mxu1 %v11744_v44  ;;  %10419 = vmatmul.mubr.f32.vlgmr.msra.gmra.mxu0 %v11854_v33 }
  0x71   :  { %10428 = vmatpush3.msra.mxu1 %v11852_v29  ;;  %10429 = vmatprep.mubr.msk.f32.mxu1 %vm11745_vm3, %v11744_v44 }
  0x72   :  { %10443 = vmatprep.subr.mxu1 %v11744_v44  ;;  %10430 = vmatmul.mubr.f32.vlgmr.msra.gmra.mxu1 %v11854_v33 }
  0x73   :  { %10432 = vmatprep.subr.mxu0 %v11744_v44  ;;  %10444 = vmatpush3.msra.mxu1 %v11884_v45 }
  0x74   :  { %10451 = vmatprep.mubr.msk.f32.mxu1 %vm11745_vm3, %v11744_v44  ;;  %10445 = vmatprep.subr.mxu1 %v11744_v44 }
  0x75   :  { %10433 = vmatpush3.msra.mxu0 %v11833_v14  ;;  %10446 = vmatpush3.msra.mxu1 %v11891_v47 }
  0x76   :  { %10434 = vmatprep.subr.mxu0 %v11744_v44  ;;  %10447 = vmatprep.subr.mxu1 %v11744_v44 }
  0x77   :  { %10435 = vmatpush3.msra.mxu0 %v11838_v17  ;;  %10448 = vmatpush3.msra.mxu1 %v11900_v50 }
  0x78   :  { %10436 = vmatprep.subr.mxu0 %v11744_v44  ;;  %10449 = vmatprep.subr.mxu1 %v11744_v44 }
  0x79   :  { %10437 = vmatpush3.msra.mxu0 %v11843_v22  ;;  %10450 = vmatpush3.msra.mxu1 %v11906_v52 }
  0x7a   :  { %10438 = vmatprep.subr.mxu0 %v11744_v44  ;;  %10465 = vmatprep.subr.mxu1 %v11744_v44 }
  0x7b   :  { %10439 = vmatpush3.msra.mxu0 %v11852_v29  ;;  %10440 = vmatprep.mubr.msk.f32.mxu0 %vm11745_vm3, %v11744_v44 }
  0x7c   :  { %10454 = vmatprep.subr.mxu0 %v11744_v44 }
 0x10c   :  { %v10340_v53 = vpop.f32.mrf.mxu0  ;;  %v10345_v54 = vpop.f32.mrf.mxu1 }
 0x10d   :  { %v205_v7 = vadd.f32 %v10340_v53, %v9763_v2 }
 0x10e   :  { %v194_v55 = vpop.f32.mrf.mxu0  ;;  %v280_v56 = vpop.f32.mrf.mxu1 }
 0x10f   :  { %v195_v5 = vadd.f32 %v9763_v2, %v194_v55  ;;  %v287_v9 = vadd.f32 %v10345_v54, %v205_v7 }
 0x110   :  { %v10350_v57 = vpop.f32.mrf.mxu0  ;;  %v10355_v58 = vpop.f32.mrf.mxu1 }
 0x111   :  { %v281_v8 = vadd.f32 %v280_v56, %v195_v5  ;;  %v368_v15 = vadd.f32 %v10350_v57, %v287_v9 }
 0x112   :  { %v360_v59 = vpop.f32.mrf.mxu0  ;;  %v441_v60 = vpop.f32.mrf.mxu1 }
 0x113   :  { %v361_v11 = vadd.f32 %v360_v59, %v281_v8  ;;  %v450_v21 = vadd.f32 %v10355_v58, %v368_v15 }
 0x114   :  { %v10360_v61 = vpop.f32.mrf.mxu0 }
 0x115   :  { %v10365_v62 = vpop.f32.mrf.mxu1  ;;  %v442_v19 = vadd.f32 %v441_v60, %v361_v11  ;;  %v530_v26 = vadd.f32 %v10360_v61, %v450_v21 }
 0x116   :  { %v523_v63 = vpop.f32.mrf.mxu0 }
 0x117   :  { %v601_v0 = vpop.f32.mrf.mxu1  ;;  %v524_v23 = vadd.f32 %v523_v63, %v442_v19  ;;  %v11986_v41 = vadd.f32 %v10365_v62, %v530_v26 }
 0x119   :  { %v11984_v33 = vadd.f32 %v601_v0, %v524_v23 }
 0x11c   :  { %v691_v1 = vpop.f32.mrf.mxu0 }
 0x11e   :  { %v782_v3 = vpop.f32.mrf.mxu1  ;;  %v10376_v4 = vpop.f32.mrf.mxu0 }
 0x11f   :  { %v783_v16 = vadd.f32 %v782_v3, %v691_v1 }
 0x120   :  { %v10387_v6 = vpop.f32.mrf.mxu1 }
 0x126   :  { %v862_v10 = vpop.f32.mrf.mxu0 }
 0x127   :  { %v863_v20 = vadd.f32 %v862_v10, %v783_v16 }
 0x128   :  { %v939_v12 = vpop.f32.mrf.mxu1  ;;  %v10398_v13 = vpop.f32.mrf.mxu0 }
 0x129   :  { %v940_v24 = vadd.f32 %v939_v12, %v863_v20 }
 0x12a   :  { %v10409_v18 = vpop.f32.mrf.mxu1 }
 0x130   :  { %v1022_v25 = vpop.f32.mrf.mxu0 }
 0x131   :  { %v1023_v30 = vadd.f32 %v1022_v25, %v940_v24 }
 0x132   :  { %v1097_v31 = vpop.f32.mrf.mxu1  ;;  %v10420_v32 = vpop.f32.mrf.mxu0 }
 0x133   :  { %v1098_v37 = vadd.f32 %v1097_v31, %v1023_v30 }
 0x134   :  { %v10431_v39 = vpop.f32.mrf.mxu1 }
 0x135   :  { %v1102_v42 = vrot.slane %v1098_v37, 1  ;;  %v1105_v46 = vadd.f32 %v1098_v37, %v11984_v33 }
 0x137   :  { %v1106_v48 = vadd.f32 %v1102_v42, %v11986_v41  ;;  %11565 = vtanh.f32 %v1105_v46 }
 0x139   :  { %11567 = vtanh.f32 %v1106_v48 }
 0x144   :  { %v11566_v49 = vpop.eup %11565 }
 0x145   :  { %1110 = vst.msk [vmem:[#allocation2] sm:$0x1] %vm1109_vm4, %v11566_v49 }
 0x146   :  { %v11568_v51 = vpop.eup %11567 }
 0x147   :  { %1111 = vst.msk [vmem:[#allocation2 + $0x8] sm:$0x1] %vm1109_vm4, %v11568_v51  ;;  %v1114_v53 = vrot.slane %v11568_v51, 7 }
 0x149   :  { %v1116_v54 = vsel %vm1115_vm5, %v1114_v53, %v11566_v49 }
 0x14a   :  { %v1117_v55 = vsel %vm612_vm2, %v1116_v54, 0 }
 0x14b   :  { %v1188_v56 = vand.u32 4294901760, %v1117_v55 }
 0x14d   :  { %v1189_v57 = vsub.f32 %v1117_v55, %v1188_v56  ;;  %10452 = vmatmul.mubr.f32.vlgmr.msra.gmra.mxu1 %v1188_v56 }
 0x14e   :  { %10466 = vmatpush3.msra.mxu1 %v11833_v14  ;;  %10473 = vmatprep.mubr.msk.f32.mxu1 %vm11745_vm3, %v11744_v44 }
 0x14f   :  { %10467 = vmatprep.subr.mxu1 %v11744_v44  ;;  %v1190_v58 = vand.u32 4294901760, %v1189_v57 }
 0x150   :  { %10468 = vmatpush3.msra.mxu1 %v11838_v17 }
 0x151   :  { %10469 = vmatprep.subr.mxu1 %v11744_v44  ;;  %v1191_v59 = vsub.f32 %v1189_v57, %v1190_v58 }
 0x152   :  { %10470 = vmatpush3.msra.mxu1 %v11843_v22 }
 0x153   :  { %10471 = vmatprep.subr.mxu1 %v11744_v44  ;;  %v1192_v60 = vand.u32 4294901760, %v1191_v59 }
 0x154   :  { %10472 = vmatpush3.msra.mxu1 %v11852_v29 }
 0x155   :  { %10474 = vmatmul.mubr.f32.vlgmr.msra.gmra.mxu1 %v1190_v58  ;;  %10487 = vmatprep.subr.mxu1 %v11744_v44 }
 0x156   :  { %10441 = vmatmul.mubr.f32.vlgmr.msra.gmra.mxu0 %v1192_v60  ;;  %10488 = vmatpush3.msra.mxu1 %v11833_v14 }
 0x157   :  { %10455 = vmatpush3.msra.mxu0 %v11847_v27  ;;  %10489 = vmatprep.subr.mxu1 %v11744_v44 }
 0x158   :  { %10456 = vmatprep.subr.mxu0 %v11744_v44  ;;  %10490 = vmatpush3.msra.mxu1 %v11838_v17 }
 0x159   :  { %10457 = vmatpush3.msra.mxu0 %v11850_v28  ;;  %10491 = vmatprep.subr.mxu1 %v11744_v44 }
 0x15a   :  { %10458 = vmatprep.subr.mxu0 %v11744_v44  ;;  %10492 = vmatpush3.msra.mxu1 %v11843_v22 }
 0x15b   :  { %10459 = vmatpush3.msra.mxu0 %v11860_v35  ;;  %10493 = vmatprep.subr.mxu1 %v11744_v44 }
 0x15c   :  { %10460 = vmatprep.subr.mxu0 %v11744_v44  ;;  %10462 = vmatprep.mubr.msk.f32.mxu0 %vm11745_vm3, %v11744_v44 }
 0x15d   :  { %10461 = vmatpush3.msra.mxu0 %v11870_v38  ;;  %10494 = vmatpush3.msra.mxu1 %v11852_v29 }
 0x15e   :  { %10495 = vmatprep.mubr.msk.f32.mxu1 %vm11745_vm3, %v11744_v44  ;;  %10463 = vmatmul.mubr.f32.vlgmr.msra.gmra.mxu0 %v1189_v57 }
 0x15f   :  { %10476 = vmatprep.subr.mxu0 %v11744_v44  ;;  %10496 = vmatmul.mubr.f32.vlgmr.msra.gmra.mxu1 %v1188_v56 }
 0x160   :  { %10477 = vmatpush3.msra.mxu0 %v11857_v34  ;;  %10484 = vmatprep.mubr.msk.f32.mxu0 %vm11745_vm3, %v11744_v44 }
 0x161   :  { %10478 = vmatprep.subr.mxu0 %v11744_v44  ;;  %10509 = vmatprep.subr.mxu1 %v11744_v44 }
 0x162   :  { %10479 = vmatpush3.msra.mxu0 %v11864_v36  ;;  %10510 = vmatpush3.msra.mxu1 %v11884_v45 }
 0x163   :  { %10480 = vmatprep.subr.mxu0 %v11744_v44  ;;  %10511 = vmatprep.subr.mxu1 %v11744_v44 }
 0x164   :  { %10481 = vmatpush3.msra.mxu0 %v11875_v40  ;;  %10512 = vmatpush3.msra.mxu1 %v11891_v47 }
 0x165   :  { %10482 = vmatprep.subr.mxu0 %v11744_v44  ;;  %10513 = vmatprep.subr.mxu1 %v11744_v44 }
 0x166   :  { %10483 = vmatpush3.msra.mxu0 %v11881_v43  ;;  %10514 = vmatpush3.msra.mxu1 %v11900_v50 }
 0x167   :  { %10485 = vmatmul.mubr.f32.vlgmr.msra.gmra.mxu0 %v1188_v56  ;;  %10515 = vmatprep.subr.mxu1 %v11744_v44 }
 0x168   :  { %10516 = vmatpush3.msra.mxu1 %v11906_v52  ;;  %10498 = vmatprep.subr.mxu0 %v11744_v44 }
 0x169   :  { %10517 = vmatprep.mubr.msk.f32.mxu1 %vm11745_vm3, %v11744_v44  ;;  %10531 = vmatprep.subr.mxu1 %v11744_v44 }
 0x16a   :  { %10499 = vmatpush3.msra.mxu0 %v11833_v14  ;;  %10506 = vmatprep.mubr.msk.f32.mxu0 %vm11745_vm3, %v11744_v44 }
 0x16b   :  { %10500 = vmatprep.subr.mxu0 %v11744_v44 }
 0x16c   :  { %10501 = vmatpush3.msra.mxu0 %v11838_v17 }
 0x16d   :  { %10502 = vmatprep.subr.mxu0 %v11744_v44 }
 0x16e   :  { %10503 = vmatpush3.msra.mxu0 %v11843_v22 }
 0x16f   :  { %10504 = vmatprep.subr.mxu0 %v11744_v44 }
 0x170   :  { %10505 = vmatpush3.msra.mxu0 %v11852_v29 }
 0x171   :  { %10520 = vmatprep.subr.mxu0 %v11744_v44 }
 0x20d   :  { %v1285_v61 = vpop.f32.mrf.mxu1 }
 0x20f   :  { %v10453_v62 = vpop.f32.mrf.mxu1 }
 0x215   :  { %v1442_v63 = vpop.f32.mrf.mxu1 }
 0x216   :  { %v1194_v0 = vpop.f32.mrf.mxu0 }
 0x217   :  { %v10475_v1 = vpop.f32.mrf.mxu1  ;;  %v1286_v5 = vadd.f32 %v1285_v61, %v1194_v0 }
 0x218   :  { %v10442_v2 = vpop.f32.mrf.mxu0 }
 0x21e   :  { %v1365_v3 = vpop.f32.mrf.mxu0 }
 0x21f   :  { %v1600_v4 = vpop.f32.mrf.mxu1  ;;  %v1366_v8 = vadd.f32 %v1365_v3, %v1286_v5 }
 0x220   :  { %v10464_v6 = vpop.f32.mrf.mxu0 }
 0x221   :  { %v10497_v7 = vpop.f32.mrf.mxu1  ;;  %v1443_v9 = vadd.f32 %v1442_v63, %v1366_v8 }
 0x227   :  { %v1525_v10 = vpop.f32.mrf.mxu0 }
 0x228   :  { %v1526_v11 = vadd.f32 %v1525_v10, %v1443_v9 }
 0x229   :  { %v10486_v12 = vpop.f32.mrf.mxu0 }
 0x22a   :  { %v1601_v13 = vadd.f32 %v1600_v4, %v1526_v11 }
 0x22c   :  { %v1605_v15 = vrot.slane %v1601_v13, 7  ;;  %v1609_v16 = vadd.f32 %v1601_v13, %v11986_v41 }
 0x22e   :  { %v1608_v18 = vadd.f32 %v1605_v15, %v11984_v33  ;;  %11569 = vtanh.f32 %v1609_v16 }
 0x230   :  { %11571 = vtanh.f32 %v1608_v18 }
 0x23b   :  { %v11570_v19 = vpop.eup %11569 }
 0x23c   :  { %1614 = vst.msk [vmem:[#allocation2 + $0x8] sm:$0x2] %vm1612_vm6, %v11570_v19 }
 0x23d   :  { %v11572_v20 = vpop.eup %11571 }
 0x23e   :  { %1613 = vst.msk [vmem:[#allocation2] sm:$0x2] %vm1612_vm6, %v11572_v20  ;;  %v1617_v21 = vrot.slane %v11572_v20, 1 }
 0x240   :  { %v1618_v23 = vsel %vm1115_vm5, %v11570_v19, %v1617_v21 }
 0x241   :  { %v1619_v24 = vsel %vm612_vm2, %v1618_v23, 0 }
 0x242   :  { %v1690_v25 = vand.u32 4294901760, %v1619_v24 }
 0x244   :  { %v1691_v26 = vsub.f32 %v1619_v24, %v1690_v25  ;;  %10518 = vmatmul.mubr.f32.vlgmr.msra.gmra.mxu1 %v1690_v25 }
 0x245   :  { %10532 = vmatpush3.msra.mxu1 %v11833_v14  ;;  %10539 = vmatprep.mubr.msk.f32.mxu1 %vm11745_vm3, %v11744_v44 }
 0x246   :  { %10533 = vmatprep.subr.mxu1 %v11744_v44  ;;  %v1692_v30 = vand.u32 4294901760, %v1691_v26 }
 0x247   :  { %10534 = vmatpush3.msra.mxu1 %v11838_v17 }
 0x248   :  { %10535 = vmatprep.subr.mxu1 %v11744_v44  ;;  %v1693_v31 = vsub.f32 %v1691_v26, %v1692_v30 }
 0x249   :  { %10536 = vmatpush3.msra.mxu1 %v11843_v22 }
 0x24a   :  { %10537 = vmatprep.subr.mxu1 %v11744_v44  ;;  %v1694_v32 = vand.u32 4294901760, %v1693_v31 }
 0x24b   :  { %10538 = vmatpush3.msra.mxu1 %v11852_v29 }
 0x24c   :  { %10540 = vmatmul.mubr.f32.vlgmr.msra.gmra.mxu1 %v1692_v30  ;;  %10553 = vmatprep.subr.mxu1 %v11744_v44 }
 0x24d   :  { %10507 = vmatmul.mubr.f32.vlgmr.msra.gmra.mxu0 %v1694_v32  ;;  %10554 = vmatpush3.msra.mxu1 %v11833_v14 }
 0x24e   :  { %10521 = vmatpush3.msra.mxu0 %v11847_v27  ;;  %10555 = vmatprep.subr.mxu1 %v11744_v44 }
 0x24f   :  { %10522 = vmatprep.subr.mxu0 %v11744_v44  ;;  %10556 = vmatpush3.msra.mxu1 %v11838_v17 }
 0x250   :  { %10523 = vmatpush3.msra.mxu0 %v11850_v28  ;;  %10557 = vmatprep.subr.mxu1 %v11744_v44 }
 0x251   :  { %10524 = vmatprep.subr.mxu0 %v11744_v44  ;;  %10558 = vmatpush3.msra.mxu1 %v11843_v22 }
 0x252   :  { %10525 = vmatpush3.msra.mxu0 %v11860_v35  ;;  %10559 = vmatprep.subr.mxu1 %v11744_v44 }
 0x253   :  { %10526 = vmatprep.subr.mxu0 %v11744_v44  ;;  %10528 = vmatprep.mubr.msk.f32.mxu0 %vm11745_vm3, %v11744_v44 }
 0x254   :  { %10527 = vmatpush3.msra.mxu0 %v11870_v38  ;;  %10560 = vmatpush3.msra.mxu1 %v11852_v29 }
 0x255   :  { %10561 = vmatprep.mubr.msk.f32.mxu1 %vm11745_vm3, %v11744_v44  ;;  %10529 = vmatmul.mubr.f32.vlgmr.msra.gmra.mxu0 %v1691_v26 }
 0x256   :  { %10542 = vmatprep.subr.mxu0 %v11744_v44  ;;  %10562 = vmatmul.mubr.f32.vlgmr.msra.gmra.mxu1 %v1690_v25 }
 0x257   :  { %10543 = vmatpush3.msra.mxu0 %v11857_v34  ;;  %10550 = vmatprep.mubr.msk.f32.mxu0 %vm11745_vm3, %v11744_v44 }
 0x258   :  { %10544 = vmatprep.subr.mxu0 %v11744_v44  ;;  %10575 = vmatprep.subr.mxu1 %v11744_v44 }
 0x259   :  { %10545 = vmatpush3.msra.mxu0 %v11864_v36  ;;  %10576 = vmatpush3.msra.mxu1 %v11884_v45 }
 0x25a   :  { %10546 = vmatprep.subr.mxu0 %v11744_v44  ;;  %10577 = vmatprep.subr.mxu1 %v11744_v44 }
 0x25b   :  { %10547 = vmatpush3.msra.mxu0 %v11875_v40  ;;  %10578 = vmatpush3.msra.mxu1 %v11891_v47 }
 0x25c   :  { %10548 = vmatprep.subr.mxu0 %v11744_v44  ;;  %10579 = vmatprep.subr.mxu1 %v11744_v44 }
 0x25d   :  { %10549 = vmatpush3.msra.mxu0 %v11881_v43  ;;  %10580 = vmatpush3.msra.mxu1 %v11900_v50 }
 0x25e   :  { %10551 = vmatmul.mubr.f32.vlgmr.msra.gmra.mxu0 %v1690_v25  ;;  %10581 = vmatprep.subr.mxu1 %v11744_v44 }
 0x25f   :  { %10582 = vmatpush3.msra.mxu1 %v11906_v52  ;;  %10564 = vmatprep.subr.mxu0 %v11744_v44 }
 0x260   :  { %10583 = vmatprep.mubr.msk.f32.mxu1 %vm11745_vm3, %v11744_v44  ;;  %10597 = vmatprep.subr.mxu1 %v11744_v44 }
 0x261   :  { %10565 = vmatpush3.msra.mxu0 %v11833_v14  ;;  %10572 = vmatprep.mubr.msk.f32.mxu0 %vm11745_vm3, %v11744_v44 }
 0x262   :  { %10566 = vmatprep.subr.mxu0 %v11744_v44 }
 0x263   :  { %10567 = vmatpush3.msra.mxu0 %v11838_v17 }
 0x264   :  { %10568 = vmatprep.subr.mxu0 %v11744_v44 }
 0x265   :  { %10569 = vmatpush3.msra.mxu0 %v11843_v22 }
 0x266   :  { %10570 = vmatprep.subr.mxu0 %v11744_v44 }
 0x267   :  { %10571 = vmatpush3.msra.mxu0 %v11852_v29 }
 0x268   :  { %10586 = vmatprep.subr.mxu0 %v11744_v44 }
 0x304   :  { %v1787_v37 = vpop.f32.mrf.mxu1 }
 0x306   :  { %v10519_v39 = vpop.f32.mrf.mxu1 }
 0x30c   :  { %v1944_v42 = vpop.f32.mrf.mxu1 }
 0x30d   :  { %v1696_v46 = vpop.f32.mrf.mxu0 }
 0x30e   :  { %v10541_v48 = vpop.f32.mrf.mxu1  ;;  %v1788_v54 = vadd.f32 %v1787_v37, %v1696_v46 }
 0x30f   :  { %v10508_v49 = vpop.f32.mrf.mxu0 }
 0x315   :  { %v1867_v51 = vpop.f32.mrf.mxu0 }
 0x316   :  { %v2102_v53 = vpop.f32.mrf.mxu1  ;;  %v1868_v57 = vadd.f32 %v1867_v51, %v1788_v54 }
 0x317   :  { %v10530_v55 = vpop.f32.mrf.mxu0 }
 0x318   :  { %v10563_v56 = vpop.f32.mrf.mxu1  ;;  %v1945_v58 = vadd.f32 %v1944_v42, %v1868_v57 }
 0x31e   :  { %v2027_v59 = vpop.f32.mrf.mxu0 }
 0x31f   :  { %v2028_v60 = vadd.f32 %v2027_v59, %v1945_v58 }
 0x320   :  { %v10552_v61 = vpop.f32.mrf.mxu0 }
 0x321   :  { %v2103_v62 = vadd.f32 %v2102_v53, %v2028_v60 }
 0x323   :  { %v2107_v63 = vrot.slane %v2103_v62, 6  ;;  %v2108_v0 = vrot.slane %v2103_v62, 7 }
 0x325   :  { %v2111_v1 = vadd.f32 %v2107_v63, %v11984_v33  ;;  %v2112_v2 = vadd.f32 %v2108_v0, %v11986_v41 }
 0x327   :  { %11573 = vtanh.f32 %v2111_v1 }
 0x328   :  { %11575 = vtanh.f32 %v2112_v2 }
 0x334   :  { %v11574_v3 = vpop.eup %11573 }
 0x335   :  { %v11576_v4 = vpop.eup %11575  ;;  %2116 = vst.msk [vmem:[#allocation2] sm:$0x4] %vm2115_vm7, %v11574_v3  ;;  %v2120_v5 = vrot.slane %v11574_v3, 2 }
 0x336   :  { %2117 = vst.msk [vmem:[#allocation2 + $0x8] sm:$0x4] %vm2115_vm7, %v11576_v4  ;;  %v2121_v6 = vrot.slane %v11576_v4, 1 }
 0x338   :  { %v2122_v7 = vsel %vm1115_vm5, %v2121_v6, %v2120_v5 }
 0x339   :  { %v2123_v8 = vsel %vm612_vm2, %v2122_v7, 0 }
 0x33a   :  { %v2194_v9 = vand.u32 4294901760, %v2123_v8 }
 0x33c   :  { %v2195_v10 = vsub.f32 %v2123_v8, %v2194_v9  ;;  %10584 = vmatmul.mubr.f32.vlgmr.msra.gmra.mxu1 %v2194_v9 }
 0x33d   :  { %10598 = vmatpush3.msra.mxu1 %v11833_v14  ;;  %10605 = vmatprep.mubr.msk.f32.mxu1 %vm11745_vm3, %v11744_v44 }
 0x33e   :  { %10599 = vmatprep.subr.mxu1 %v11744_v44  ;;  %v2196_v11 = vand.u32 4294901760, %v2195_v10 }
 0x33f   :  { %10600 = vmatpush3.msra.mxu1 %v11838_v17 }
 0x340   :  { %10601 = vmatprep.subr.mxu1 %v11744_v44  ;;  %v2197_v12 = vsub.f32 %v2195_v10, %v2196_v11 }
 0x341   :  { %10602 = vmatpush3.msra.mxu1 %v11843_v22 }
 0x342   :  { %10603 = vmatprep.subr.mxu1 %v11744_v44  ;;  %v2198_v13 = vand.u32 4294901760, %v2197_v12 }
 0x343   :  { %10604 = vmatpush3.msra.mxu1 %v11852_v29 }
 0x344   :  { %10606 = vmatmul.mubr.f32.vlgmr.msra.gmra.mxu1 %v2196_v11  ;;  %10619 = vmatprep.subr.mxu1 %v11744_v44 }
 0x345   :  { %10573 = vmatmul.mubr.f32.vlgmr.msra.gmra.mxu0 %v2198_v13  ;;  %10620 = vmatpush3.msra.mxu1 %v11833_v14 }
 0x346   :  { %10587 = vmatpush3.msra.mxu0 %v11847_v27  ;;  %10621 = vmatprep.subr.mxu1 %v11744_v44 }
 0x347   :  { %10588 = vmatprep.subr.mxu0 %v11744_v44  ;;  %10622 = vmatpush3.msra.mxu1 %v11838_v17 }
 0x348   :  { %10589 = vmatpush3.msra.mxu0 %v11850_v28  ;;  %10623 = vmatprep.subr.mxu1 %v11744_v44 }
 0x349   :  { %10590 = vmatprep.subr.mxu0 %v11744_v44  ;;  %10624 = vmatpush3.msra.mxu1 %v11843_v22 }
 0x34a   :  { %10591 = vmatpush3.msra.mxu0 %v11860_v35  ;;  %10625 = vmatprep.subr.mxu1 %v11744_v44 }
 0x34b   :  { %10592 = vmatprep.subr.mxu0 %v11744_v44  ;;  %10594 = vmatprep.mubr.msk.f32.mxu0 %vm11745_vm3, %v11744_v44 }
 0x34c   :  { %10593 = vmatpush3.msra.mxu0 %v11870_v38  ;;  %10626 = vmatpush3.msra.mxu1 %v11852_v29 }
 0x34d   :  { %10627 = vmatprep.mubr.msk.f32.mxu1 %vm11745_vm3, %v11744_v44  ;;  %10595 = vmatmul.mubr.f32.vlgmr.msra.gmra.mxu0 %v2195_v10 }
 0x34e   :  { %10608 = vmatprep.subr.mxu0 %v11744_v44  ;;  %10628 = vmatmul.mubr.f32.vlgmr.msra.gmra.mxu1 %v2194_v9 }
 0x34f   :  { %10609 = vmatpush3.msra.mxu0 %v11857_v34  ;;  %10616 = vmatprep.mubr.msk.f32.mxu0 %vm11745_vm3, %v11744_v44 }
 0x350   :  { %10610 = vmatprep.subr.mxu0 %v11744_v44  ;;  %10641 = vmatprep.subr.mxu1 %v11744_v44 }
 0x351   :  { %10611 = vmatpush3.msra.mxu0 %v11864_v36  ;;  %10642 = vmatpush3.msra.mxu1 %v11884_v45 }
 0x352   :  { %10612 = vmatprep.subr.mxu0 %v11744_v44  ;;  %10643 = vmatprep.subr.mxu1 %v11744_v44 }
 0x353   :  { %10613 = vmatpush3.msra.mxu0 %v11875_v40  ;;  %10644 = vmatpush3.msra.mxu1 %v11891_v47 }
 0x354   :  { %10614 = vmatprep.subr.mxu0 %v11744_v44  ;;  %10645 = vmatprep.subr.mxu1 %v11744_v44 }
 0x355   :  { %10615 = vmatpush3.msra.mxu0 %v11881_v43  ;;  %10646 = vmatpush3.msra.mxu1 %v11900_v50 }
 0x356   :  { %10617 = vmatmul.mubr.f32.vlgmr.msra.gmra.mxu0 %v2194_v9  ;;  %10647 = vmatprep.subr.mxu1 %v11744_v44 }
 0x357   :  { %10648 = vmatpush3.msra.mxu1 %v11906_v52  ;;  %10630 = vmatprep.subr.mxu0 %v11744_v44 }
 0x358   :  { %10649 = vmatprep.mubr.msk.f32.mxu1 %vm11745_vm3, %v11744_v44  ;;  %10663 = vmatprep.subr.mxu1 %v11744_v44 }
 0x359   :  { %10631 = vmatpush3.msra.mxu0 %v11833_v14  ;;  %10638 = vmatprep.mubr.msk.f32.mxu0 %vm11745_vm3, %v11744_v44 }
 0x35a   :  { %10632 = vmatprep.subr.mxu0 %v11744_v44 }
 0x35b   :  { %10633 = vmatpush3.msra.mxu0 %v11838_v17 }
 0x35c   :  { %10634 = vmatprep.subr.mxu0 %v11744_v44 }
 0x35d   :  { %10635 = vmatpush3.msra.mxu0 %v11843_v22 }
 0x35e   :  { %10636 = vmatprep.subr.mxu0 %v11744_v44 }
 0x35f   :  { %10637 = vmatpush3.msra.mxu0 %v11852_v29 }
 0x360   :  { %10652 = vmatprep.subr.mxu0 %v11744_v44 }
 0x3fc   :  { %v2291_v15 = vpop.f32.mrf.mxu1 }
 0x3fe   :  { %v10585_v16 = vpop.f32.mrf.mxu1 }
 0x404   :  { %v2448_v18 = vpop.f32.mrf.mxu1 }
 0x405   :  { %v2200_v19 = vpop.f32.mrf.mxu0 }
 0x406   :  { %v10607_v20 = vpop.f32.mrf.mxu1  ;;  %v2292_v25 = vadd.f32 %v2291_v15, %v2200_v19 }
 0x407   :  { %v10574_v21 = vpop.f32.mrf.mxu0 }
 0x40d   :  { %v2371_v23 = vpop.f32.mrf.mxu0 }
 0x40e   :  { %v2606_v24 = vpop.f32.mrf.mxu1  ;;  %v2372_v31 = vadd.f32 %v2371_v23, %v2292_v25 }
 0x40f   :  { %v10596_v26 = vpop.f32.mrf.mxu0 }
 0x410   :  { %v10629_v30 = vpop.f32.mrf.mxu1  ;;  %v2449_v32 = vadd.f32 %v2448_v18, %v2372_v31 }
 0x416   :  { %v2531_v37 = vpop.f32.mrf.mxu0 }
 0x417   :  { %v2532_v39 = vadd.f32 %v2531_v37, %v2449_v32 }
 0x418   :  { %v10618_v42 = vpop.f32.mrf.mxu0 }
 0x419   :  { %v2607_v46 = vadd.f32 %v2606_v24, %v2532_v39 }
 0x41b   :  { %v2611_v48 = vrot.slane %v2607_v46, 5  ;;  %v2612_v49 = vrot.slane %v2607_v46, 6 }
 0x41d   :  { %v2615_v51 = vadd.f32 %v2611_v48, %v11984_v33  ;;  %v2616_v53 = vadd.f32 %v2612_v49, %v11986_v41 }
 0x41f   :  { %11577 = vtanh.f32 %v2615_v51 }
 0x420   :  { %11579 = vtanh.f32 %v2616_v53 }
 0x42c   :  { %v11578_v54 = vpop.eup %11577 }
 0x42d   :  { %v11580_v55 = vpop.eup %11579  ;;  %2620 = vst.msk [vmem:[#allocation2] sm:$0x8] %vm2619_vm8, %v11578_v54  ;;  %v2624_v56 = vrot.slane %v11578_v54, 3 }
 0x42e   :  { %2621 = vst.msk [vmem:[#allocation2 + $0x8] sm:$0x8] %vm2619_vm8, %v11580_v55  ;;  %v2625_v57 = vrot.slane %v11580_v55, 2 }
 0x430   :  { %v2626_v58 = vsel %vm1115_vm5, %v2625_v57, %v2624_v56 }
 0x431   :  { %v2627_v59 = vsel %vm612_vm2, %v2626_v58, 0 }
 0x432   :  { %v2698_v60 = vand.u32 4294901760, %v2627_v59 }
 0x434   :  { %v2699_v61 = vsub.f32 %v2627_v59, %v2698_v60  ;;  %10650 = vmatmul.mubr.f32.vlgmr.msra.gmra.mxu1 %v2698_v60 }
 0x435   :  { %10664 = vmatpush3.msra.mxu1 %v11833_v14  ;;  %10671 = vmatprep.mubr.msk.f32.mxu1 %vm11745_vm3, %v11744_v44 }
 0x436   :  { %10665 = vmatprep.subr.mxu1 %v11744_v44  ;;  %v2700_v62 = vand.u32 4294901760, %v2699_v61 }
 0x437   :  { %10666 = vmatpush3.msra.mxu1 %v11838_v17 }
 0x438   :  { %10667 = vmatprep.subr.mxu1 %v11744_v44  ;;  %v2701_v63 = vsub.f32 %v2699_v61, %v2700_v62 }
 0x439   :  { %10668 = vmatpush3.msra.mxu1 %v11843_v22 }
 0x43a   :  { %10669 = vmatprep.subr.mxu1 %v11744_v44  ;;  %v2702_v0 = vand.u32 4294901760, %v2701_v63 }
 0x43b   :  { %10670 = vmatpush3.msra.mxu1 %v11852_v29 }
 0x43c   :  { %10672 = vmatmul.mubr.f32.vlgmr.msra.gmra.mxu1 %v2700_v62  ;;  %10685 = vmatprep.subr.mxu1 %v11744_v44 }
 0x43d   :  { %10639 = vmatmul.mubr.f32.vlgmr.msra.gmra.mxu0 %v2702_v0  ;;  %10686 = vmatpush3.msra.mxu1 %v11833_v14 }
 0x43e   :  { %10653 = vmatpush3.msra.mxu0 %v11847_v27  ;;  %10687 = vmatprep.subr.mxu1 %v11744_v44 }
 0x43f   :  { %10654 = vmatprep.subr.mxu0 %v11744_v44  ;;  %10688 = vmatpush3.msra.mxu1 %v11838_v17 }
 0x440   :  { %10655 = vmatpush3.msra.mxu0 %v11850_v28  ;;  %10689 = vmatprep.subr.mxu1 %v11744_v44 }
 0x441   :  { %10656 = vmatprep.subr.mxu0 %v11744_v44  ;;  %10690 = vmatpush3.msra.mxu1 %v11843_v22 }
 0x442   :  { %10657 = vmatpush3.msra.mxu0 %v11860_v35  ;;  %10691 = vmatprep.subr.mxu1 %v11744_v44 }
 0x443   :  { %10658 = vmatprep.subr.mxu0 %v11744_v44  ;;  %10660 = vmatprep.mubr.msk.f32.mxu0 %vm11745_vm3, %v11744_v44 }
 0x444   :  { %10659 = vmatpush3.msra.mxu0 %v11870_v38  ;;  %10692 = vmatpush3.msra.mxu1 %v11852_v29 }
 0x445   :  { %10693 = vmatprep.mubr.msk.f32.mxu1 %vm11745_vm3, %v11744_v44  ;;  %10661 = vmatmul.mubr.f32.vlgmr.msra.gmra.mxu0 %v2699_v61 }
 0x446   :  { %10674 = vmatprep.subr.mxu0 %v11744_v44  ;;  %10694 = vmatmul.mubr.f32.vlgmr.msra.gmra.mxu1 %v2698_v60 }
 0x447   :  { %10675 = vmatpush3.msra.mxu0 %v11857_v34  ;;  %10682 = vmatprep.mubr.msk.f32.mxu0 %vm11745_vm3, %v11744_v44 }
 0x448   :  { %10676 = vmatprep.subr.mxu0 %v11744_v44  ;;  %10707 = vmatprep.subr.mxu1 %v11744_v44 }
 0x449   :  { %10677 = vmatpush3.msra.mxu0 %v11864_v36  ;;  %10708 = vmatpush3.msra.mxu1 %v11884_v45 }
 0x44a   :  { %10678 = vmatprep.subr.mxu0 %v11744_v44  ;;  %10709 = vmatprep.subr.mxu1 %v11744_v44 }
 0x44b   :  { %10679 = vmatpush3.msra.mxu0 %v11875_v40  ;;  %10710 = vmatpush3.msra.mxu1 %v11891_v47 }
 0x44c   :  { %10680 = vmatprep.subr.mxu0 %v11744_v44  ;;  %10711 = vmatprep.subr.mxu1 %v11744_v44 }
 0x44d   :  { %10681 = vmatpush3.msra.mxu0 %v11881_v43  ;;  %10712 = vmatpush3.msra.mxu1 %v11900_v50 }
 0x44e   :  { %10683 = vmatmul.mubr.f32.vlgmr.msra.gmra.mxu0 %v2698_v60  ;;  %10713 = vmatprep.subr.mxu1 %v11744_v44 }
 0x44f   :  { %10714 = vmatpush3.msra.mxu1 %v11906_v52  ;;  %10696 = vmatprep.subr.mxu0 %v11744_v44 }
 0x450   :  { %10715 = vmatprep.mubr.msk.f32.mxu1 %vm11745_vm3, %v11744_v44  ;;  %10729 = vmatprep.subr.mxu1 %v11744_v44 }
 0x451   :  { %10697 = vmatpush3.msra.mxu0 %v11833_v14  ;;  %10704 = vmatprep.mubr.msk.f32.mxu0 %vm11745_vm3, %v11744_v44 }
 0x452   :  { %10698 = vmatprep.subr.mxu0 %v11744_v44 }
 0x453   :  { %10699 = vmatpush3.msra.mxu0 %v11838_v17 }
 0x454   :  { %10700 = vmatprep.subr.mxu0 %v11744_v44 }
 0x455   :  { %10701 = vmatpush3.msra.mxu0 %v11843_v22 }
 0x456   :  { %10702 = vmatprep.subr.mxu0 %v11744_v44 }
 0x457   :  { %10703 = vmatpush3.msra.mxu0 %v11852_v29 }
 0x458   :  { %10718 = vmatprep.subr.mxu0 %v11744_v44 }
 0x4f4   :  { %v2795_v1 = vpop.f32.mrf.mxu1 }
 0x4f6   :  { %v10651_v2 = vpop.f32.mrf.mxu1 }
 0x4fc   :  { %v2952_v3 = vpop.f32.mrf.mxu1 }
 0x4fd   :  { %v2704_v4 = vpop.f32.mrf.mxu0 }
 0x4fe   :  { %v10673_v5 = vpop.f32.mrf.mxu1  ;;  %v2796_v9 = vadd.f32 %v2795_v1, %v2704_v4 }
 0x4ff   :  { %v10640_v6 = vpop.f32.mrf.mxu0 }
 0x505   :  { %v2875_v7 = vpop.f32.mrf.mxu0 }
 0x506   :  { %v3110_v8 = vpop.f32.mrf.mxu1  ;;  %v2876_v12 = vadd.f32 %v2875_v7, %v2796_v9 }
 0x507   :  { %v10662_v10 = vpop.f32.mrf.mxu0 }
 0x508   :  { %v10695_v11 = vpop.f32.mrf.mxu1  ;;  %v2953_v13 = vadd.f32 %v2952_v3, %v2876_v12 }
 0x50e   :  { %v3035_v15 = vpop.f32.mrf.mxu0 }
 0x50f   :  { %v3036_v16 = vadd.f32 %v3035_v15, %v2953_v13 }
 0x510   :  { %v10684_v18 = vpop.f32.mrf.mxu0 }
 0x511   :  { %v3111_v19 = vadd.f32 %v3110_v8, %v3036_v16 }
 0x513   :  { %v3115_v20 = vrot.slane %v3111_v19, 4  ;;  %v3116_v21 = vrot.slane %v3111_v19, 5 }
 0x515   :  { %v3119_v23 = vadd.f32 %v3115_v20, %v11984_v33  ;;  %v3120_v24 = vadd.f32 %v3116_v21, %v11986_v41 }
 0x517   :  { %11581 = vtanh.f32 %v3119_v23 }
 0x518   :  { %11583 = vtanh.f32 %v3120_v24 }
 0x524   :  { %v11582_v25 = vpop.eup %11581 }
 0x525   :  { %v11584_v26 = vpop.eup %11583  ;;  %3124 = vst.msk [vmem:[#allocation2] sm:$0x10] %vm3123_vm9, %v11582_v25  ;;  %v3128_v30 = vrot.slane %v11582_v25, 4 }
 0x526   :  { %3125 = vst.msk [vmem:[#allocation2 + $0x8] sm:$0x10] %vm3123_vm9, %v11584_v26  ;;  %v3129_v31 = vrot.slane %v11584_v26, 3 }
 0x528   :  { %v3130_v32 = vsel %vm1115_vm5, %v3129_v31, %v3128_v30 }
 0x529   :  { %v3131_v37 = vsel %vm612_vm2, %v3130_v32, 0 }
 0x52a   :  { %v3202_v39 = vand.u32 4294901760, %v3131_v37 }
 0x52c   :  { %v3203_v42 = vsub.f32 %v3131_v37, %v3202_v39  ;;  %10716 = vmatmul.mubr.f32.vlgmr.msra.gmra.mxu1 %v3202_v39 }
 0x52d   :  { %10730 = vmatpush3.msra.mxu1 %v11833_v14  ;;  %10737 = vmatprep.mubr.msk.f32.mxu1 %vm11745_vm3, %v11744_v44 }
 0x52e   :  { %10731 = vmatprep.subr.mxu1 %v11744_v44  ;;  %v3204_v46 = vand.u32 4294901760, %v3203_v42 }
 0x52f   :  { %10732 = vmatpush3.msra.mxu1 %v11838_v17 }
 0x530   :  { %10733 = vmatprep.subr.mxu1 %v11744_v44  ;;  %v3205_v48 = vsub.f32 %v3203_v42, %v3204_v46 }
 0x531   :  { %10734 = vmatpush3.msra.mxu1 %v11843_v22 }
 0x532   :  { %10735 = vmatprep.subr.mxu1 %v11744_v44  ;;  %v3206_v49 = vand.u32 4294901760, %v3205_v48 }
 0x533   :  { %10736 = vmatpush3.msra.mxu1 %v11852_v29 }
 0x534   :  { %10738 = vmatmul.mubr.f32.vlgmr.msra.gmra.mxu1 %v3204_v46  ;;  %10751 = vmatprep.subr.mxu1 %v11744_v44 }
 0x535   :  { %10705 = vmatmul.mubr.f32.vlgmr.msra.gmra.mxu0 %v3206_v49  ;;  %10752 = vmatpush3.msra.mxu1 %v11833_v14 }
 0x536   :  { %10719 = vmatpush3.msra.mxu0 %v11847_v27  ;;  %10753 = vmatprep.subr.mxu1 %v11744_v44 }
 0x537   :  { %10720 = vmatprep.subr.mxu0 %v11744_v44  ;;  %10754 = vmatpush3.msra.mxu1 %v11838_v17 }
 0x538   :  { %10721 = vmatpush3.msra.mxu0 %v11850_v28  ;;  %10755 = vmatprep.subr.mxu1 %v11744_v44 }
 0x539   :  { %10722 = vmatprep.subr.mxu0 %v11744_v44  ;;  %10756 = vmatpush3.msra.mxu1 %v11843_v22 }
 0x53a   :  { %10723 = vmatpush3.msra.mxu0 %v11860_v35  ;;  %10757 = vmatprep.subr.mxu1 %v11744_v44 }
 0x53b   :  { %10724 = vmatprep.subr.mxu0 %v11744_v44  ;;  %10726 = vmatprep.mubr.msk.f32.mxu0 %vm11745_vm3, %v11744_v44 }
 0x53c   :  { %10725 = vmatpush3.msra.mxu0 %v11870_v38  ;;  %10758 = vmatpush3.msra.mxu1 %v11852_v29 }
 0x53d   :  { %10759 = vmatprep.mubr.msk.f32.mxu1 %vm11745_vm3, %v11744_v44  ;;  %10727 = vmatmul.mubr.f32.vlgmr.msra.gmra.mxu0 %v3203_v42 }
 0x53e   :  { %10740 = vmatprep.subr.mxu0 %v11744_v44  ;;  %10760 = vmatmul.mubr.f32.vlgmr.msra.gmra.mxu1 %v3202_v39 }
 0x53f   :  { %10741 = vmatpush3.msra.mxu0 %v11857_v34  ;;  %10748 = vmatprep.mubr.msk.f32.mxu0 %vm11745_vm3, %v11744_v44 }
 0x540   :  { %10742 = vmatprep.subr.mxu0 %v11744_v44  ;;  %10773 = vmatprep.subr.mxu1 %v11744_v44 }
 0x541   :  { %10743 = vmatpush3.msra.mxu0 %v11864_v36  ;;  %10774 = vmatpush3.msra.mxu1 %v11884_v45 }
 0x542   :  { %10744 = vmatprep.subr.mxu0 %v11744_v44  ;;  %10775 = vmatprep.subr.mxu1 %v11744_v44 }
 0x543   :  { %10745 = vmatpush3.msra.mxu0 %v11875_v40  ;;  %10776 = vmatpush3.msra.mxu1 %v11891_v47 }
 0x544   :  { %10746 = vmatprep.subr.mxu0 %v11744_v44  ;;  %10777 = vmatprep.subr.mxu1 %v11744_v44 }
 0x545   :  { %10747 = vmatpush3.msra.mxu0 %v11881_v43  ;;  %10778 = vmatpush3.msra.mxu1 %v11900_v50 }
 0x546   :  { %10749 = vmatmul.mubr.f32.vlgmr.msra.gmra.mxu0 %v3202_v39  ;;  %10779 = vmatprep.subr.mxu1 %v11744_v44 }
 0x547   :  { %10780 = vmatpush3.msra.mxu1 %v11906_v52  ;;  %10762 = vmatprep.subr.mxu0 %v11744_v44 }
 0x548   :  { %10781 = vmatprep.mubr.msk.f32.mxu1 %vm11745_vm3, %v11744_v44  ;;  %10795 = vmatprep.subr.mxu1 %v11744_v44 }
 0x549   :  { %10763 = vmatpush3.msra.mxu0 %v11833_v14  ;;  %10770 = vmatprep.mubr.msk.f32.mxu0 %vm11745_vm3, %v11744_v44 }
 0x54a   :  { %10764 = vmatprep.subr.mxu0 %v11744_v44 }
 0x54b   :  { %10765 = vmatpush3.msra.mxu0 %v11838_v17 }
 0x54c   :  { %10766 = vmatprep.subr.mxu0 %v11744_v44 }
 0x54d   :  { %10767 = vmatpush3.msra.mxu0 %v11843_v22 }
 0x54e   :  { %10768 = vmatprep.subr.mxu0 %v11744_v44 }
 0x54f   :  { %10769 = vmatpush3.msra.mxu0 %v11852_v29 }
 0x550   :  { %10784 = vmatprep.subr.mxu0 %v11744_v44 }
 0x5ec   :  { %v3299_v51 = vpop.f32.mrf.mxu1 }
 0x5ee   :  { %v10717_v53 = vpop.f32.mrf.mxu1 }
 0x5f4   :  { %v3456_v54 = vpop.f32.mrf.mxu1 }
 0x5f5   :  { %v3208_v55 = vpop.f32.mrf.mxu0 }
 0x5f6   :  { %v10739_v56 = vpop.f32.mrf.mxu1  ;;  %v3300_v60 = vadd.f32 %v3299_v51, %v3208_v55 }
 0x5f7   :  { %v10706_v57 = vpop.f32.mrf.mxu0 }
 0x5fd   :  { %v3379_v58 = vpop.f32.mrf.mxu0 }
 0x5fe   :  { %v3614_v59 = vpop.f32.mrf.mxu1  ;;  %v3380_v63 = vadd.f32 %v3379_v58, %v3300_v60 }
 0x5ff   :  { %v10728_v61 = vpop.f32.mrf.mxu0 }
 0x600   :  { %v10761_v62 = vpop.f32.mrf.mxu1  ;;  %v3457_v0 = vadd.f32 %v3456_v54, %v3380_v63 }
 0x606   :  { %v3539_v1 = vpop.f32.mrf.mxu0 }
 0x607   :  { %v3540_v2 = vadd.f32 %v3539_v1, %v3457_v0 }
 0x608   :  { %v10750_v3 = vpop.f32.mrf.mxu0 }
 0x609   :  { %v3615_v4 = vadd.f32 %v3614_v59, %v3540_v2 }
 0x60b   :  { %v3619_v5 = vrot.slane %v3615_v4, 3  ;;  %v3620_v6 = vrot.slane %v3615_v4, 4 }
 0x60d   :  { %v3623_v7 = vadd.f32 %v3619_v5, %v11984_v33  ;;  %v3624_v8 = vadd.f32 %v3620_v6, %v11986_v41 }
 0x60f   :  { %11585 = vtanh.f32 %v3623_v7 }
 0x610   :  { %11587 = vtanh.f32 %v3624_v8 }
 0x61c   :  { %v11586_v9 = vpop.eup %11585 }
 0x61d   :  { %v11588_v10 = vpop.eup %11587  ;;  %3628 = vst.msk [vmem:[#allocation2] sm:$0x20] %vm3627_vm10, %v11586_v9  ;;  %v3632_v11 = vrot.slane %v11586_v9, 5 }
 0x61e   :  { %3629 = vst.msk [vmem:[#allocation2 + $0x8] sm:$0x20] %vm3627_vm10, %v11588_v10  ;;  %v3633_v12 = vrot.slane %v11588_v10, 4 }
 0x620   :  { %v3634_v13 = vsel %vm1115_vm5, %v3633_v12, %v3632_v11 }
 0x621   :  { %v3635_v15 = vsel %vm612_vm2, %v3634_v13, 0 }
 0x622   :  { %v3706_v16 = vand.u32 4294901760, %v3635_v15 }
 0x624   :  { %v3707_v18 = vsub.f32 %v3635_v15, %v3706_v16  ;;  %10782 = vmatmul.mubr.f32.vlgmr.msra.gmra.mxu1 %v3706_v16 }
 0x625   :  { %10796 = vmatpush3.msra.mxu1 %v11833_v14  ;;  %10803 = vmatprep.mubr.msk.f32.mxu1 %vm11745_vm3, %v11744_v44 }
 0x626   :  { %10797 = vmatprep.subr.mxu1 %v11744_v44  ;;  %v3708_v19 = vand.u32 4294901760, %v3707_v18 }
 0x627   :  { %10798 = vmatpush3.msra.mxu1 %v11838_v17 }
 0x628   :  { %10799 = vmatprep.subr.mxu1 %v11744_v44  ;;  %v3709_v20 = vsub.f32 %v3707_v18, %v3708_v19 }
 0x629   :  { %10800 = vmatpush3.msra.mxu1 %v11843_v22 }
 0x62a   :  { %10801 = vmatprep.subr.mxu1 %v11744_v44  ;;  %v3710_v21 = vand.u32 4294901760, %v3709_v20 }
 0x62b   :  { %10802 = vmatpush3.msra.mxu1 %v11852_v29 }
 0x62c   :  { %10804 = vmatmul.mubr.f32.vlgmr.msra.gmra.mxu1 %v3708_v19  ;;  %10817 = vmatprep.subr.mxu1 %v11744_v44 }
 0x62d   :  { %10771 = vmatmul.mubr.f32.vlgmr.msra.gmra.mxu0 %v3710_v21  ;;  %10818 = vmatpush3.msra.mxu1 %v11833_v14 }
 0x62e   :  { %10785 = vmatpush3.msra.mxu0 %v11847_v27  ;;  %10819 = vmatprep.subr.mxu1 %v11744_v44 }
 0x62f   :  { %10786 = vmatprep.subr.mxu0 %v11744_v44  ;;  %10820 = vmatpush3.msra.mxu1 %v11838_v17 }
 0x630   :  { %10787 = vmatpush3.msra.mxu0 %v11850_v28  ;;  %10821 = vmatprep.subr.mxu1 %v11744_v44 }
 0x631   :  { %10788 = vmatprep.subr.mxu0 %v11744_v44  ;;  %10822 = vmatpush3.msra.mxu1 %v11843_v22 }
 0x632   :  { %10789 = vmatpush3.msra.mxu0 %v11860_v35  ;;  %10823 = vmatprep.subr.mxu1 %v11744_v44 }
 0x633   :  { %10790 = vmatprep.subr.mxu0 %v11744_v44  ;;  %10792 = vmatprep.mubr.msk.f32.mxu0 %vm11745_vm3, %v11744_v44 }
 0x634   :  { %10791 = vmatpush3.msra.mxu0 %v11870_v38  ;;  %10824 = vmatpush3.msra.mxu1 %v11852_v29 }
 0x635   :  { %10825 = vmatprep.mubr.msk.f32.mxu1 %vm11745_vm3, %v11744_v44  ;;  %10793 = vmatmul.mubr.f32.vlgmr.msra.gmra.mxu0 %v3707_v18 }
 0x636   :  { %10806 = vmatprep.subr.mxu0 %v11744_v44  ;;  %10826 = vmatmul.mubr.f32.vlgmr.msra.gmra.mxu1 %v3706_v16 }
 0x637   :  { %10807 = vmatpush3.msra.mxu0 %v11857_v34  ;;  %10814 = vmatprep.mubr.msk.f32.mxu0 %vm11745_vm3, %v11744_v44 }
 0x638   :  { %10808 = vmatprep.subr.mxu0 %v11744_v44  ;;  %10839 = vmatprep.subr.mxu1 %v11744_v44 }
 0x639   :  { %10809 = vmatpush3.msra.mxu0 %v11864_v36  ;;  %10840 = vmatpush3.msra.mxu1 %v11884_v45 }
 0x63a   :  { %10810 = vmatprep.subr.mxu0 %v11744_v44  ;;  %10841 = vmatprep.subr.mxu1 %v11744_v44 }
 0x63b   :  { %10811 = vmatpush3.msra.mxu0 %v11875_v40  ;;  %10842 = vmatpush3.msra.mxu1 %v11891_v47 }
 0x63c   :  { %10812 = vmatprep.subr.mxu0 %v11744_v44  ;;  %10843 = vmatprep.subr.mxu1 %v11744_v44 }
 0x63d   :  { %10813 = vmatpush3.msra.mxu0 %v11881_v43  ;;  %10844 = vmatpush3.msra.mxu1 %v11900_v50 }
 0x63e   :  { %10815 = vmatmul.mubr.f32.vlgmr.msra.gmra.mxu0 %v3706_v16  ;;  %10845 = vmatprep.subr.mxu1 %v11744_v44 }
 0x63f   :  { %10846 = vmatpush3.msra.mxu1 %v11906_v52  ;;  %10828 = vmatprep.subr.mxu0 %v11744_v44 }
 0x640   :  { %10847 = vmatprep.mubr.msk.f32.mxu1 %vm11745_vm3, %v11744_v44  ;;  %10861 = vmatprep.subr.mxu1 %v11744_v44 }
 0x641   :  { %10829 = vmatpush3.msra.mxu0 %v11833_v14  ;;  %10836 = vmatprep.mubr.msk.f32.mxu0 %vm11745_vm3, %v11744_v44 }
 0x642   :  { %10830 = vmatprep.subr.mxu0 %v11744_v44 }
 0x643   :  { %10831 = vmatpush3.msra.mxu0 %v11838_v17 }
 0x644   :  { %10832 = vmatprep.subr.mxu0 %v11744_v44 }
 0x645   :  { %10833 = vmatpush3.msra.mxu0 %v11843_v22 }
 0x646   :  { %10834 = vmatprep.subr.mxu0 %v11744_v44 }
 0x647   :  { %10835 = vmatpush3.msra.mxu0 %v11852_v29 }
 0x648   :  { %10850 = vmatprep.subr.mxu0 %v11744_v44 }
 0x6e4   :  { %v3803_v45 = vpop.f32.mrf.mxu1 }
 0x6e6   :  { %v10783_v47 = vpop.f32.mrf.mxu1 }
 0x6ec   :  { %v3960_v50 = vpop.f32.mrf.mxu1 }
 0x6ed   :  { %v3712_v52 = vpop.f32.mrf.mxu0 }
 0x6ee   :  { %v10805_v23 = vpop.f32.mrf.mxu1  ;;  %v3804_v30 = vadd.f32 %v3803_v45, %v3712_v52 }
 0x6ef   :  { %v10772_v24 = vpop.f32.mrf.mxu0 }
 0x6f5   :  { %v3883_v25 = vpop.f32.mrf.mxu0 }
 0x6f6   :  { %v4118_v26 = vpop.f32.mrf.mxu1  ;;  %v3884_v37 = vadd.f32 %v3883_v25, %v3804_v30 }
 0x6f7   :  { %v10794_v31 = vpop.f32.mrf.mxu0 }
 0x6f8   :  { %v10827_v32 = vpop.f32.mrf.mxu1  ;;  %v3961_v39 = vadd.f32 %v3960_v50, %v3884_v37 }
 0x6fe   :  { %v4043_v42 = vpop.f32.mrf.mxu0 }
 0x6ff   :  { %v4044_v46 = vadd.f32 %v4043_v42, %v3961_v39 }
 0x700   :  { %v10816_v48 = vpop.f32.mrf.mxu0 }
 0x701   :  { %v4119_v49 = vadd.f32 %v4118_v26, %v4044_v46 }
 0x703   :  { %v4123_v51 = vrot.slane %v4119_v49, 2  ;;  %v4124_v53 = vrot.slane %v4119_v49, 3 }
 0x705   :  { %v4127_v54 = vadd.f32 %v4123_v51, %v11984_v33  ;;  %v4128_v55 = vadd.f32 %v4124_v53, %v11986_v41 }
 0x707   :  { %11589 = vtanh.f32 %v4127_v54 }
 0x708   :  { %11591 = vtanh.f32 %v4128_v55 }
 0x714   :  { %v11590_v56 = vpop.eup %11589 }
 0x715   :  { %v11592_v57 = vpop.eup %11591  ;;  %4132 = vst.msk [vmem:[#allocation2] sm:$0x40] %vm4131_vm11, %v11590_v56  ;;  %v4136_v58 = vrot.slane %v11590_v56, 6 }
 0x716   :  { %4133 = vst.msk [vmem:[#allocation2 + $0x8] sm:$0x40] %vm4131_vm11, %v11592_v57  ;;  %v4137_v59 = vrot.slane %v11592_v57, 5 }
 0x718   :  { %v4138_v60 = vsel %vm1115_vm5, %v4137_v59, %v4136_v58 }
 0x719   :  { %v4139_v61 = vsel %vm612_vm2, %v4138_v60, 0  ;;  %v4644_v60 = vld [vmem:[#allocation8 + $0x10] sm:$0xff] }
 0x71a   :  { %v4210_v62 = vand.u32 4294901760, %v4139_v61 }
 0x71c   :  { %v4211_v63 = vsub.f32 %v4139_v61, %v4210_v62  ;;  %10848 = vmatmul.mubr.f32.vlgmr.msra.gmra.mxu1 %v4210_v62 }
 0x71d   :  { %10862 = vmatpush3.msra.mxu1 %v11833_v14  ;;  %10869 = vmatprep.mubr.msk.f32.mxu1 %vm11745_vm3, %v11744_v44 }
 0x71e   :  { %10863 = vmatprep.subr.mxu1 %v11744_v44  ;;  %v4212_v0 = vand.u32 4294901760, %v4211_v63 }
 0x71f   :  { %10864 = vmatpush3.msra.mxu1 %v11838_v17 }
 0x720   :  { %10865 = vmatprep.subr.mxu1 %v11744_v44  ;;  %v4213_v1 = vsub.f32 %v4211_v63, %v4212_v0 }
 0x721   :  { %10866 = vmatpush3.msra.mxu1 %v11843_v22 }
 0x722   :  { %10867 = vmatprep.subr.mxu1 %v11744_v44  ;;  %v4214_v2 = vand.u32 4294901760, %v4213_v1 }
 0x723   :  { %10868 = vmatpush3.msra.mxu1 %v11852_v29 }
 0x724   :  { %10870 = vmatmul.mubr.f32.vlgmr.msra.gmra.mxu1 %v4212_v0  ;;  %10883 = vmatprep.subr.mxu1 %v11744_v44  ;;  %v4643_v0 = vld [vmem:[#allocation8 + $0x8] sm:$0xff] }
 0x725   :  { %10837 = vmatmul.mubr.f32.vlgmr.msra.gmra.mxu0 %v4214_v2  ;;  %10884 = vmatpush3.msra.mxu1 %v11833_v14  ;;  %v4641_v14 = vld [vmem:[%s13233_s5 + $0x18] sm:$0xff]  ;;  %v12509_v2 = vand.u32 4294901760, %v4644_v60 }
 0x726   :  { %10851 = vmatpush3.msra.mxu0 %v11847_v27  ;;  %10885 = vmatprep.subr.mxu1 %v11744_v44 }
 0x727   :  { %10852 = vmatprep.subr.mxu0 %v11744_v44  ;;  %10886 = vmatpush3.msra.mxu1 %v11838_v17  ;;  %v12431_v17 = vand.u32 4294901760, %v4641_v14 }
 0x728   :  { %10853 = vmatpush3.msra.mxu0 %v11850_v28  ;;  %10887 = vmatprep.subr.mxu1 %v11744_v44 }
 0x729   :  { %10854 = vmatprep.subr.mxu0 %v11744_v44  ;;  %10888 = vmatpush3.msra.mxu1 %v11843_v22  ;;  %v4640_v22 = vld [vmem:[%s13233_s5 + $0x10] sm:$0xff]  ;;  %v12437_v27 = vsub.f32 %v4641_v14, %v12431_v17 }
 0x72a   :  { %10855 = vmatpush3.msra.mxu0 %v11860_v35  ;;  %10889 = vmatprep.subr.mxu1 %v11744_v44  ;;  %v12439_v28 = vand.u32 4294901760, %v4640_v22 }
 0x72b   :  { %10856 = vmatprep.subr.mxu0 %v11744_v44  ;;  %10858 = vmatprep.mubr.msk.f32.mxu0 %vm11745_vm3, %v11744_v44 }
 0x72c   :  { %10857 = vmatpush3.msra.mxu0 %v11870_v38  ;;  %10890 = vmatpush3.msra.mxu1 %v11852_v29  ;;  %v4639_v29 = vld [vmem:[%s13233_s5 + $0x8] sm:$0xff]  ;;  %v12450_v35 = vsub.f32 %v4640_v22, %v12439_v28  ;;  %v4638_v38 = vld [vmem:[%s13233_s5] sm:$0xff] }
 0x72d   :  { %10891 = vmatprep.mubr.msk.f32.mxu1 %vm11745_vm3, %v11744_v44  ;;  %10859 = vmatmul.mubr.f32.vlgmr.msra.gmra.mxu0 %v4211_v63  ;;  %v12467_v4 = vand.u32 4294901760, %v4638_v38 }
 0x72e   :  { %10872 = vmatprep.subr.mxu0 %v11744_v44  ;;  %10892 = vmatmul.mubr.f32.vlgmr.msra.gmra.mxu1 %v4210_v62 }
 0x72f   :  { %10873 = vmatpush3.msra.mxu0 %v11857_v34  ;;  %10880 = vmatprep.mubr.msk.f32.mxu0 %vm11745_vm3, %v11744_v44  ;;  %v12447_v34 = vand.u32 4294901760, %v12437_v27  ;;  %v12477_v8 = vsub.f32 %v4638_v38, %v12467_v4  ;;  %v12516_v38 = vand.u32 4294901760, %v4643_v0 }
 0x730   :  { %10874 = vmatprep.subr.mxu0 %v11744_v44 }
 0x731   :  { %10875 = vmatpush3.msra.mxu0 %v11864_v36  ;;  %v12452_v36 = vand.u32 4294901760, %v4639_v29  ;;  %v12484_v11 = vand.u32 4294901760, %v12477_v8 }
 0x732   :  { %10876 = vmatprep.subr.mxu0 %v11744_v44 }
 0x733   :  { %10877 = vmatpush3.msra.mxu0 %v11875_v40  ;;  %v4778_v40 = vsub.f32 %v12437_v27, %v12447_v34  ;;  %v12465_v3 = vsub.f32 %v4639_v29, %v12452_v36  ;;  %v4799_v13 = vsub.f32 %v12477_v8, %v12484_v11 }
 0x734   :  { %10878 = vmatprep.subr.mxu0 %v11744_v44 }
 0x735   :  { %10879 = vmatpush3.msra.mxu0 %v11881_v43  ;;  %v12462_v43 = vand.u32 4294901760, %v12450_v35  ;;  %v4779_v5 = vand.u32 4294901760, %v4778_v40  ;;  %v12474_v7 = vand.u32 4294901760, %v12465_v3  ;;  %v4800_v15 = vand.u32 4294901760, %v4799_v13 }
 0x736   :  { %10881 = vmatmul.mubr.f32.vlgmr.msra.gmra.mxu0 %v4210_v62  ;;  %10894 = vmatprep.subr.mxu0 %v12431_v17 }
 0x737   :  { %10895 = vmatpush3.msra.mxu0 %v12431_v17  ;;  %v4785_v6 = vsub.f32 %v12450_v35, %v12462_v43  ;;  %10905 = vmatprep.subr.mxu1 %v4779_v5  ;;  %v4792_v10 = vsub.f32 %v12465_v3, %v12474_v7 }
 0x738   :  { %10896 = vmatprep.subr.mxu0 %v12439_v28  ;;  %10906 = vmatpush3.msra.mxu1 %v4779_v5  ;;  %v4642_v5 = vld [vmem:[#allocation8] sm:$0xff] }
 0x739   :  { %10897 = vmatpush3.msra.mxu0 %v12439_v28  ;;  %v4786_v9 = vand.u32 4294901760, %v4785_v6  ;;  %v4793_v12 = vand.u32 4294901760, %v4792_v10  ;;  %v12521_v6 = vsub.f32 %v4644_v60, %v12509_v2  ;;  %v12531_v13 = vand.u32 4294901760, %v4642_v5 }
 0x73a   :  { %10898 = vmatprep.subr.mxu0 %v12452_v36 }
 0x73b   :  { %10899 = vmatpush3.msra.mxu0 %v12452_v36  ;;  %10907 = vmatprep.subr.mxu1 %v4786_v9 }
 0x73c   :  { %10900 = vmatprep.subr.mxu0 %v12467_v4  ;;  %10908 = vmatpush3.msra.mxu1 %v4786_v9  ;;  %v5190_v9 = vld [vmem:[#allocation3 + $0x2] sm:$0x3] }
 0x73d   :  { %10901 = vmatpush3.msra.mxu0 %v12467_v4  ;;  %10909 = vmatprep.subr.mxu1 %v4793_v12 }
 0x73e   :  { %10916 = vmatprep.subr.mxu0 %v12437_v27  ;;  %10910 = vmatpush3.msra.mxu1 %v4793_v12  ;;  %v12529_v12 = vsub.f32 %v4643_v0, %v12516_v38 }
 0x73f   :  { %10911 = vmatprep.subr.mxu1 %v4800_v15 }
 0x740   :  { %10912 = vmatpush3.msra.mxu1 %v4800_v15  ;;  %v12537_v15 = vand.u32 4294901760, %v12521_v6 }
 0x741   :  { %10927 = vmatprep.subr.mxu1 %v12431_v17 }
 0x7dc   :  { %v4307_v16 = vpop.f32.mrf.mxu1 }
 0x7de   :  { %v10849_v18 = vpop.f32.mrf.mxu1 }
 0x7df   :  { %v12550_v18 = vsub.f32 %v4642_v5, %v12531_v13 }
 0x7e4   :  { %v4464_v19 = vpop.f32.mrf.mxu1 }
 0x7e5   :  { %v4216_v20 = vpop.f32.mrf.mxu0 }
 0x7e6   :  { %v10871_v21 = vpop.f32.mrf.mxu1  ;;  %v4308_v52 = vadd.f32 %v4307_v16, %v4216_v20  ;;  %v12547_v16 = vand.u32 4294901760, %v12529_v12  ;;  %v12568_v20 = vand.u32 4294901760, %v12550_v18 }
 0x7e7   :  { %v10838_v45 = vpop.f32.mrf.mxu0 }
 0x7e8   :  { %v5322_v21 = vsub.f32 %v12550_v18, %v12568_v20 }
 0x7ed   :  { %v4387_v47 = vpop.f32.mrf.mxu0 }
 0x7ee   :  { %v4622_v50 = vpop.f32.mrf.mxu1  ;;  %v4388_v25 = vadd.f32 %v4387_v47, %v4308_v52 }
 0x7ef   :  { %v10860_v23 = vpop.f32.mrf.mxu0 }
 0x7f0   :  { %v10893_v24 = vpop.f32.mrf.mxu1  ;;  %v4465_v26 = vadd.f32 %v4464_v19, %v4388_v25 }
 0x7f6   :  { %v4547_v30 = vpop.f32.mrf.mxu0 }
 0x7f7   :  { %v4548_v31 = vadd.f32 %v4547_v30, %v4465_v26 }
 0x7f8   :  { %v10882_v32 = vpop.f32.mrf.mxu0 }
 0x7f9   :  { %v4623_v37 = vadd.f32 %v4622_v50, %v4548_v31 }
 0x7fb   :  { %v4627_v39 = vrot.slane %v4623_v37, 1  ;;  %v4628_v42 = vrot.slane %v4623_v37, 2 }
 0x7fd   :  { %v4631_v46 = vadd.f32 %v4627_v39, %v11984_v33  ;;  %v4632_v48 = vadd.f32 %v4628_v42, %v11986_v41  ;;  %v4645_v41 = vld [vmem:[#allocation8 + $0x18] sm:$0xff] }
 0x7fe   :  { %v12505_v62 = vand.u32 4294901760, %v4645_v41 }
 0x7ff   :  { %11593 = vtanh.f32 %v4631_v46 }
 0x800   :  { %11595 = vtanh.f32 %v4632_v48  ;;  %v12514_v29 = vsub.f32 %v4645_v41, %v12505_v62 }
 0x802   :  { %v12526_v10 = vand.u32 4294901760, %v12514_v29 }
 0x80c   :  { %v11594_v49 = vpop.eup %11593 }
 0x80d   :  { %v11596_v51 = vpop.eup %11595  ;;  %4636 = vst.msk [vmem:[#allocation2] sm:$0x80] %vm4635_vm12, %v11594_v49  ;;  %v9764_v49 = vld [vmem:[#allocation10] ss:$0 sm:$0xff] }
 0x80e   :  { %4637 = vst.msk [vmem:[#allocation2 + $0x8] sm:$0x80] %vm4635_vm12, %v11596_v51 }
 0x814   :  { %v4647_v53 = vld [vmem:[#allocation2] sm:$0xff] }
 0x815   :  { %v4656_v54 = vsel %vm612_vm2, %v4647_v53, 0  ;;  %v4648_v55 = vld [vmem:[#allocation2 + $0x8] sm:$0xff] }
 0x816   :  { %v12495_v56 = vand.u32 4294901760, %v4656_v54  ;;  %v4659_v57 = vsel %vm612_vm2, %v4648_v55, 0 }
 0x817   :  { %v12498_v33 = vand.u32 4294901760, %v4659_v57 }
 0x818   :  { %10913 = vmatprep.mubr.f32.mxu1 %v12495_v56  ;;  %v4731_v58 = vsub.f32 %v4656_v54, %v12495_v56 }
 0x819   :  { %v4741_v59 = vsub.f32 %v4659_v57, %v12498_v33  ;;  %10914 = vmatmul.mubr.f32.vlgmr.msra.gmra.mxu1 %v12498_v33 }
 0x81a   :  { %10928 = vmatpush3.msra.mxu1 %v12431_v17  ;;  %v4732_v61 = vand.u32 4294901760, %v4731_v58 }
 0x81b   :  { %10929 = vmatprep.subr.mxu1 %v12439_v28  ;;  %v4742_v63 = vand.u32 4294901760, %v4741_v59 }
 0x81c   :  { %10930 = vmatpush3.msra.mxu1 %v12439_v28  ;;  %10935 = vmatprep.mubr.f32.mxu1 %v4732_v61  ;;  %v4733_v1 = vsub.f32 %v4731_v58, %v4732_v61 }
 0x81d   :  { %10931 = vmatprep.subr.mxu1 %v12452_v36  ;;  %v4743_v14 = vsub.f32 %v4741_v59, %v4742_v63 }
 0x81e   :  { %10932 = vmatpush3.msra.mxu1 %v12452_v36  ;;  %v4734_v22 = vand.u32 4294901760, %v4733_v1 }
 0x81f   :  { %10933 = vmatprep.subr.mxu1 %v12467_v4  ;;  %v4744_v40 = vand.u32 4294901760, %v4743_v14 }
 0x820   :  { %10934 = vmatpush3.msra.mxu1 %v12467_v4  ;;  %10902 = vmatprep.mubr.f32.mxu0 %v4734_v22 }
 0x821   :  { %10936 = vmatmul.mubr.f32.vlgmr.msra.gmra.mxu1 %v4742_v63  ;;  %10949 = vmatprep.subr.mxu1 %v12431_v17 }
 0x822   :  { %10903 = vmatmul.mubr.f32.vlgmr.msra.gmra.mxu0 %v4744_v40  ;;  %10950 = vmatpush3.msra.mxu1 %v12431_v17  ;;  %v5192_v17 = vsel %vm612_vm2, %v5190_v9, 0 }
 0x823   :  { %10917 = vmatpush3.msra.mxu0 %v12437_v27  ;;  %10957 = vmatprep.mubr.f32.mxu1 %v12495_v56  ;;  %v5301_v27 = vsub.f32 %v12514_v29, %v12526_v10  ;;  %v12554_v19 = vand.u32 4294901760, %v5192_v17 }
 0x824   :  { %10918 = vmatprep.subr.mxu0 %v12450_v35  ;;  %10924 = vmatprep.mubr.f32.mxu0 %v4731_v58 }
 0x825   :  { %10951 = vmatprep.subr.mxu1 %v12439_v28  ;;  %10919 = vmatpush3.msra.mxu0 %v12450_v35  ;;  %v12563_v35 = vand.u32 4294901760, %v5301_v27 }
 0x826   :  { %10952 = vmatpush3.msra.mxu1 %v12439_v28  ;;  %10920 = vmatprep.subr.mxu0 %v12465_v3  ;;  %v5308_v28 = vsub.f32 %v12521_v6, %v12537_v15 }
 0x827   :  { %10953 = vmatprep.subr.mxu1 %v12452_v36  ;;  %10921 = vmatpush3.msra.mxu0 %v12465_v3  ;;  %v5315_v3 = vsub.f32 %v12529_v12, %v12547_v16 }
 0x828   :  { %10954 = vmatpush3.msra.mxu1 %v12452_v36  ;;  %10922 = vmatprep.subr.mxu0 %v12477_v8  ;;  %v5264_v36 = vsub.f32 %v5192_v17, %v12554_v19 }
 0x829   :  { %10955 = vmatprep.subr.mxu1 %v12467_v4  ;;  %10923 = vmatpush3.msra.mxu0 %v12477_v8  ;;  %v12581_v8 = vand.u32 4294901760, %v5315_v3 }
 0x82a   :  { %10956 = vmatpush3.msra.mxu1 %v12467_v4  ;;  %10925 = vmatmul.mubr.f32.vlgmr.msra.gmra.mxu0 %v4741_v59  ;;  %v12575_v4 = vand.u32 4294901760, %v5308_v28 }
 0x82b   :  { %10938 = vmatprep.subr.mxu0 %v12447_v34  ;;  %10958 = vmatmul.mubr.f32.vlgmr.msra.gmra.mxu1 %v12498_v33 }
 0x82c   :  { %10939 = vmatpush3.msra.mxu0 %v12447_v34  ;;  %10946 = vmatprep.mubr.f32.mxu0 %v12495_v56  ;;  %v5265_v34 = vand.u32 4294901760, %v5264_v36 }
 0x82d   :  { %10940 = vmatprep.subr.mxu0 %v12462_v43  ;;  %10971 = vmatprep.subr.mxu1 %v11744_v44 }
 0x82e   :  { %10941 = vmatpush3.msra.mxu0 %v12462_v43  ;;  %10972 = vmatpush3.msra.mxu1 %v12563_v35  ;;  %v12593_v43 = vand.u32 4294901760, %v5322_v21  ;;  %v5266_v45 = vsub.f32 %v5264_v36, %v5265_v34 }
 0x82f   :  { %10942 = vmatprep.subr.mxu0 %v12474_v7  ;;  %10973 = vmatprep.subr.mxu1 %v11744_v44 }
 0x830   :  { %10943 = vmatpush3.msra.mxu0 %v12474_v7  ;;  %10974 = vmatpush3.msra.mxu1 %v12575_v4  ;;  %v5267_v7 = vand.u32 4294901760, %v5266_v45 }
 0x831   :  { %10944 = vmatprep.subr.mxu0 %v12484_v11  ;;  %10975 = vmatprep.subr.mxu1 %v11744_v44 }
 0x832   :  { %10945 = vmatpush3.msra.mxu0 %v12484_v11  ;;  %10976 = vmatpush3.msra.mxu1 %v12581_v8 }
 0x833   :  { %10947 = vmatmul.mubr.f32.vlgmr.msra.gmra.mxu0 %v12498_v33  ;;  %10960 = vmatprep.subr.mxu0 %v11744_v44 }
 0x834   :  { %10961 = vmatpush3.msra.mxu0 %v12505_v62  ;;  %10977 = vmatprep.subr.mxu1 %v11744_v44 }
 0x835   :  { %10962 = vmatprep.subr.mxu0 %v11744_v44  ;;  %10968 = vmatprep.mubr.msk.f32.mxu0 %vm11745_vm3, %v11744_v44 }
 0x836   :  { %10963 = vmatpush3.msra.mxu0 %v12509_v2  ;;  %10978 = vmatpush3.msra.mxu1 %v12593_v43 }
 0x837   :  { %10964 = vmatprep.subr.mxu0 %v11744_v44  ;;  %10979 = vmatprep.mubr.msk.f32.mxu1 %vm11745_vm3, %v11744_v44 }
 0x838   :  { %10965 = vmatpush3.msra.mxu0 %v12516_v38  ;;  %10993 = vmatprep.subr.mxu1 %v11744_v44 }
 0x839   :  { %10966 = vmatprep.subr.mxu0 %v11744_v44  ;;  %10980 = vmatmul.mubr.f32.vlgmr.msra.gmra.mxu1 %v12554_v19 }
 0x83a   :  { %10967 = vmatpush3.msra.mxu0 %v12531_v13  ;;  %10994 = vmatpush3.msra.mxu1 %v12505_v62 }
 0x83b   :  { %10969 = vmatmul.mubr.f32.vlgmr.msra.gmra.mxu0 %v5267_v7  ;;  %10982 = vmatprep.subr.mxu0 %v11744_v44 }
 0x83c   :  { %10983 = vmatpush3.msra.mxu0 %v12514_v29  ;;  %10995 = vmatprep.subr.mxu1 %v11744_v44 }
 0x83d   :  { %10984 = vmatprep.subr.mxu0 %v11744_v44  ;;  %10996 = vmatpush3.msra.mxu1 %v12509_v2 }
 0x83e   :  { %10985 = vmatpush3.msra.mxu0 %v12521_v6  ;;  %10997 = vmatprep.subr.mxu1 %v11744_v44 }
 0x83f   :  { %10986 = vmatprep.subr.mxu0 %v11744_v44  ;;  %10998 = vmatpush3.msra.mxu1 %v12516_v38 }
 0x840   :  { %10987 = vmatpush3.msra.mxu0 %v12529_v12  ;;  %10999 = vmatprep.subr.mxu1 %v11744_v44 }
 0x841   :  { %10988 = vmatprep.subr.mxu0 %v11744_v44  ;;  %10990 = vmatprep.mubr.msk.f32.mxu0 %vm11745_vm3, %v11744_v44 }
 0x842   :  { %10989 = vmatpush3.msra.mxu0 %v12550_v18  ;;  %11000 = vmatpush3.msra.mxu1 %v12531_v13 }
 0x843   :  { %10991 = vmatmul.mubr.f32.vlgmr.msra.gmra.mxu0 %v5264_v36  ;;  %11001 = vmatprep.mubr.msk.f32.mxu1 %vm11745_vm3, %v11744_v44 }
 0x844   :  { %11004 = vmatprep.subr.mxu0 %v11744_v44  ;;  %11015 = vmatprep.subr.mxu1 %v11744_v44 }
 0x845   :  { %11002 = vmatmul.mubr.f32.vlgmr.msra.gmra.mxu1 %v5265_v34  ;;  %11005 = vmatpush3.msra.mxu0 %v12526_v10 }
 0x846   :  { %11016 = vmatpush3.msra.mxu1 %v12505_v62  ;;  %11006 = vmatprep.subr.mxu0 %v11744_v44 }
 0x847   :  { %11017 = vmatprep.subr.mxu1 %v11744_v44  ;;  %11007 = vmatpush3.msra.mxu0 %v12537_v15 }
 0x848   :  { %11018 = vmatpush3.msra.mxu1 %v12509_v2  ;;  %11008 = vmatprep.subr.mxu0 %v11744_v44 }
 0x849   :  { %11019 = vmatprep.subr.mxu1 %v11744_v44  ;;  %11009 = vmatpush3.msra.mxu0 %v12547_v16 }
 0x84a   :  { %11020 = vmatpush3.msra.mxu1 %v12516_v38  ;;  %11010 = vmatprep.subr.mxu0 %v11744_v44 }
 0x84b   :  { %11021 = vmatprep.subr.mxu1 %v11744_v44  ;;  %11011 = vmatpush3.msra.mxu0 %v12568_v20 }
 0x84c   :  { %11012 = vmatprep.mubr.msk.f32.mxu0 %vm11745_vm3, %v11744_v44  ;;  %11022 = vmatpush3.msra.mxu1 %v12531_v13 }
 0x84d   :  { %11023 = vmatprep.mubr.msk.f32.mxu1 %vm11745_vm3, %v11744_v44  ;;  %11013 = vmatmul.mubr.f32.vlgmr.msra.gmra.mxu0 %v12554_v19 }
 0x84e   :  { %11024 = vmatmul.mubr.f32.vlgmr.msra.gmra.mxu1 %v12554_v19  ;;  %11037 = vmatprep.subr.mxu1 %v11744_v44 }
 0x84f   :  { %11038 = vmatpush3.msra.mxu1 %v12563_v35  ;;  %11026 = vmatprep.subr.mxu0 %v11744_v44 }
 0x850   :  { %11039 = vmatprep.subr.mxu1 %v11744_v44  ;;  %11045 = vmatprep.mubr.msk.f32.mxu1 %vm11745_vm3, %v11744_v44 }
 0x851   :  { %11040 = vmatpush3.msra.mxu1 %v12575_v4  ;;  %11027 = vmatpush3.msra.mxu0 %v12505_v62 }
 0x852   :  { %11041 = vmatprep.subr.mxu1 %v11744_v44  ;;  %11028 = vmatprep.subr.mxu0 %v11744_v44 }
 0x853   :  { %11042 = vmatpush3.msra.mxu1 %v12581_v8  ;;  %11029 = vmatpush3.msra.mxu0 %v12509_v2 }
 0x854   :  { %11043 = vmatprep.subr.mxu1 %v11744_v44  ;;  %11030 = vmatprep.subr.mxu0 %v11744_v44 }
 0x855   :  { %11044 = vmatpush3.msra.mxu1 %v12593_v43  ;;  %11031 = vmatpush3.msra.mxu0 %v12516_v38 }
 0x856   :  { %11059 = vmatprep.subr.mxu1 %v11744_v44  ;;  %11032 = vmatprep.subr.mxu0 %v11744_v44 }
 0x857   :  { %11033 = vmatpush3.msra.mxu0 %v12531_v13  ;;  %11034 = vmatprep.mubr.msk.f32.mxu0 %vm11745_vm3, %v11744_v44 }
 0x858   :  { %11048 = vmatprep.subr.mxu0 %v11744_v44 }
 0x8d9   :  { %v10915_v11 = vpop.f32.mrf.mxu1 }
 0x8db   :  { %v4837_v50 = vpop.f32.mrf.mxu1 }
 0x8e1   :  { %v10937_v52 = vpop.f32.mrf.mxu1 }
 0x8e2   :  { %v10904_v47 = vpop.f32.mrf.mxu0 }
 0x8e3   :  { %v5007_v25 = vpop.f32.mrf.mxu1  ;;  %v4747_v53 = vadd.f32 %v10904_v47, %v9764_v49 }
 0x8e4   :  { %v4736_v23 = vpop.f32.mrf.mxu0 }
 0x8e5   :  { %v4737_v51 = vadd.f32 %v9764_v49, %v4736_v23  ;;  %v4844_v33 = vadd.f32 %v10915_v11, %v4747_v53 }
 0x8e7   :  { %v4838_v55 = vadd.f32 %v4837_v50, %v4737_v51 }
 0x8ea   :  { %v10926_v24 = vpop.f32.mrf.mxu0 }
 0x8eb   :  { %v10959_v26 = vpop.f32.mrf.mxu1  ;;  %v4931_v60 = vadd.f32 %v10926_v24, %v4844_v33 }
 0x8ec   :  { %v4923_v30 = vpop.f32.mrf.mxu0 }
 0x8ed   :  { %v5179_v32 = vpop.f32.mrf.mxu1  ;;  %v4924_v41 = vadd.f32 %v4923_v30, %v4838_v55  ;;  %v5016_v0 = vadd.f32 %v10937_v52, %v4931_v60 }
 0x8ef   :  { %v5008_v63 = vadd.f32 %v5007_v25, %v4924_v41 }
 0x8f3   :  { %v10948_v31 = vpop.f32.mrf.mxu0 }
 0x8f4   :  { %v5105_v40 = vadd.f32 %v10948_v31, %v5016_v0 }
 0x8f5   :  { %v5098_v37 = vpop.f32.mrf.mxu0 }
 0x8f6   :  { %v5099_v1 = vadd.f32 %v5098_v37, %v5008_v63  ;;  %v12677_v3 = vadd.f32 %v10959_v26, %v5105_v40 }
 0x8f8   :  { %v12675_v27 = vadd.f32 %v5179_v32, %v5099_v1 }
 0x8f9   :  { %v5360_v39 = vpop.f32.mrf.mxu1 }
 0x8fb   :  { %v5269_v42 = vpop.f32.mrf.mxu0  ;;  %v10981_v46 = vpop.f32.mrf.mxu1 }
 0x8fc   :  { %v5361_v58 = vadd.f32 %v5360_v39, %v5269_v42 }
 0x8fd   :  { %v10970_v48 = vpop.f32.mrf.mxu0 }
 0x903   :  { %v5440_v54 = vpop.f32.mrf.mxu0 }
 0x904   :  { %v5441_v61 = vadd.f32 %v5440_v54, %v5361_v58 }
 0x905   :  { %v5517_v56 = vpop.f32.mrf.mxu1  ;;  %v10992_v57 = vpop.f32.mrf.mxu0 }
 0x906   :  { %v5518_v14 = vadd.f32 %v5517_v56, %v5441_v61 }
 0x907   :  { %v11003_v59 = vpop.f32.mrf.mxu1 }
 0x90d   :  { %v5600_v22 = vpop.f32.mrf.mxu0 }
 0x90e   :  { %v5601_v5 = vadd.f32 %v5600_v22, %v5518_v14  ;;  %v5675_v9 = vpop.f32.mrf.mxu1 }
 0x90f   :  { %v11014_v17 = vpop.f32.mrf.mxu0 }
 0x910   :  { %v5676_v19 = vadd.f32 %v5675_v9, %v5601_v5  ;;  %v11025_v28 = vpop.f32.mrf.mxu1 }
 0x912   :  { %v5680_v36 = vrot.slane %v5676_v19, 1  ;;  %v5683_v21 = vadd.f32 %v5676_v19, %v12675_v27 }
 0x914   :  { %v5684_v34 = vadd.f32 %v5680_v36, %v12677_v3  ;;  %11597 = vtanh.f32 %v5683_v21 }
 0x916   :  { %11599 = vtanh.f32 %v5684_v34 }
 0x921   :  { %v11598_v45 = vpop.eup %11597 }
 0x922   :  { %5687 = vst.msk [vmem:[#allocation2] sm:$0x1] %vm1109_vm4, %v11598_v45 }
 0x923   :  { %v11600_v7 = vpop.eup %11599 }
 0x924   :  { %5688 = vst.msk [vmem:[#allocation2 + $0x8] sm:$0x1] %vm1109_vm4, %v11600_v7  ;;  %v5691_v11 = vrot.slane %v11600_v7, 7 }
 0x926   :  { %v5692_v47 = vsel %vm1115_vm5, %v5691_v11, %v11598_v45 }
 0x927   :  { %v5693_v50 = vsel %vm612_vm2, %v5692_v47, 0 }
 0x928   :  { %v5764_v52 = vand.u32 4294901760, %v5693_v50 }
 0x92a   :  { %v5765_v23 = vsub.f32 %v5693_v50, %v5764_v52  ;;  %11046 = vmatmul.mubr.f32.vlgmr.msra.gmra.mxu1 %v5764_v52 }
 0x92b   :  { %11060 = vmatpush3.msra.mxu1 %v12505_v62  ;;  %11067 = vmatprep.mubr.msk.f32.mxu1 %vm11745_vm3, %v11744_v44 }
 0x92c   :  { %11061 = vmatprep.subr.mxu1 %v11744_v44  ;;  %v5766_v24 = vand.u32 4294901760, %v5765_v23 }
 0x92d   :  { %11062 = vmatpush3.msra.mxu1 %v12509_v2 }
 0x92e   :  { %11063 = vmatprep.subr.mxu1 %v11744_v44  ;;  %v5767_v25 = vsub.f32 %v5765_v23, %v5766_v24 }
 0x92f   :  { %11064 = vmatpush3.msra.mxu1 %v12516_v38 }
 0x930   :  { %11065 = vmatprep.subr.mxu1 %v11744_v44  ;;  %v5768_v26 = vand.u32 4294901760, %v5767_v25 }
 0x931   :  { %11066 = vmatpush3.msra.mxu1 %v12531_v13 }
 0x932   :  { %11068 = vmatmul.mubr.f32.vlgmr.msra.gmra.mxu1 %v5766_v24  ;;  %11081 = vmatprep.subr.mxu1 %v11744_v44 }
 0x933   :  { %11035 = vmatmul.mubr.f32.vlgmr.msra.gmra.mxu0 %v5768_v26  ;;  %11082 = vmatpush3.msra.mxu1 %v12505_v62 }
 0x934   :  { %11049 = vmatpush3.msra.mxu0 %v12514_v29  ;;  %11083 = vmatprep.subr.mxu1 %v11744_v44 }
 0x935   :  { %11050 = vmatprep.subr.mxu0 %v11744_v44  ;;  %11084 = vmatpush3.msra.mxu1 %v12509_v2 }
 0x936   :  { %11051 = vmatpush3.msra.mxu0 %v12521_v6  ;;  %11085 = vmatprep.subr.mxu1 %v11744_v44 }
 0x937   :  { %11052 = vmatprep.subr.mxu0 %v11744_v44  ;;  %11086 = vmatpush3.msra.mxu1 %v12516_v38 }
 0x938   :  { %11053 = vmatpush3.msra.mxu0 %v12529_v12  ;;  %11087 = vmatprep.subr.mxu1 %v11744_v44 }
 0x939   :  { %11054 = vmatprep.subr.mxu0 %v11744_v44  ;;  %11056 = vmatprep.mubr.msk.f32.mxu0 %vm11745_vm3, %v11744_v44 }
 0x93a   :  { %11055 = vmatpush3.msra.mxu0 %v12550_v18  ;;  %11088 = vmatpush3.msra.mxu1 %v12531_v13 }
 0x93b   :  { %11089 = vmatprep.mubr.msk.f32.mxu1 %vm11745_vm3, %v11744_v44  ;;  %11057 = vmatmul.mubr.f32.vlgmr.msra.gmra.mxu0 %v5765_v23 }
 0x93c   :  { %11070 = vmatprep.subr.mxu0 %v11744_v44  ;;  %11090 = vmatmul.mubr.f32.vlgmr.msra.gmra.mxu1 %v5764_v52 }
 0x93d   :  { %11071 = vmatpush3.msra.mxu0 %v12526_v10  ;;  %11078 = vmatprep.mubr.msk.f32.mxu0 %vm11745_vm3, %v11744_v44 }
 0x93e   :  { %11072 = vmatprep.subr.mxu0 %v11744_v44  ;;  %11103 = vmatprep.subr.mxu1 %v11744_v44 }
 0x93f   :  { %11073 = vmatpush3.msra.mxu0 %v12537_v15  ;;  %11104 = vmatpush3.msra.mxu1 %v12563_v35 }
 0x940   :  { %11074 = vmatprep.subr.mxu0 %v11744_v44  ;;  %11105 = vmatprep.subr.mxu1 %v11744_v44 }
 0x941   :  { %11075 = vmatpush3.msra.mxu0 %v12547_v16  ;;  %11106 = vmatpush3.msra.mxu1 %v12575_v4 }
 0x942   :  { %11076 = vmatprep.subr.mxu0 %v11744_v44  ;;  %11107 = vmatprep.subr.mxu1 %v11744_v44 }
 0x943   :  { %11077 = vmatpush3.msra.mxu0 %v12568_v20  ;;  %11108 = vmatpush3.msra.mxu1 %v12581_v8 }
 0x944   :  { %11079 = vmatmul.mubr.f32.vlgmr.msra.gmra.mxu0 %v5764_v52  ;;  %11109 = vmatprep.subr.mxu1 %v11744_v44 }
 0x945   :  { %11110 = vmatpush3.msra.mxu1 %v12593_v43  ;;  %11092 = vmatprep.subr.mxu0 %v11744_v44 }
 0x946   :  { %11111 = vmatprep.mubr.msk.f32.mxu1 %vm11745_vm3, %v11744_v44  ;;  %11125 = vmatprep.subr.mxu1 %v11744_v44 }
 0x947   :  { %11093 = vmatpush3.msra.mxu0 %v12505_v62  ;;  %11100 = vmatprep.mubr.msk.f32.mxu0 %vm11745_vm3, %v11744_v44 }
 0x948   :  { %11094 = vmatprep.subr.mxu0 %v11744_v44 }
 0x949   :  { %11095 = vmatpush3.msra.mxu0 %v12509_v2 }
 0x94a   :  { %11096 = vmatprep.subr.mxu0 %v11744_v44 }
 0x94b   :  { %11097 = vmatpush3.msra.mxu0 %v12516_v38 }
 0x94c   :  { %11098 = vmatprep.subr.mxu0 %v11744_v44 }
 0x94d   :  { %11099 = vmatpush3.msra.mxu0 %v12531_v13 }
 0x94e   :  { %11114 = vmatprep.subr.mxu0 %v11744_v44 }
 0x9ea   :  { %v5861_v30 = vpop.f32.mrf.mxu1 }
 0x9ec   :  { %v11047_v31 = vpop.f32.mrf.mxu1 }
 0x9f2   :  { %v6018_v32 = vpop.f32.mrf.mxu1 }
 0x9f3   :  { %v5770_v37 = vpop.f32.mrf.mxu0 }
 0x9f4   :  { %v11069_v39 = vpop.f32.mrf.mxu1  ;;  %v5862_v49 = vadd.f32 %v5861_v30, %v5770_v37 }
 0x9f5   :  { %v11036_v42 = vpop.f32.mrf.mxu0 }
 0x9fb   :  { %v5941_v46 = vpop.f32.mrf.mxu0 }
 0x9fc   :  { %v6176_v48 = vpop.f32.mrf.mxu1  ;;  %v5942_v54 = vadd.f32 %v5941_v46, %v5862_v49 }
 0x9fd   :  { %v11058_v51 = vpop.f32.mrf.mxu0 }
 0x9fe   :  { %v11091_v53 = vpop.f32.mrf.mxu1  ;;  %v6019_v55 = vadd.f32 %v6018_v32, %v5942_v54 }
 0xa04   :  { %v6101_v56 = vpop.f32.mrf.mxu0 }
 0xa05   :  { %v6102_v57 = vadd.f32 %v6101_v56, %v6019_v55 }
 0xa06   :  { %v11080_v33 = vpop.f32.mrf.mxu0 }
 0xa07   :  { %v6177_v41 = vadd.f32 %v6176_v48, %v6102_v57 }
 0xa09   :  { %v6181_v58 = vrot.slane %v6177_v41, 7  ;;  %v6185_v59 = vadd.f32 %v6177_v41, %v12677_v3 }
 0xa0b   :  { %v6184_v60 = vadd.f32 %v6181_v58, %v12675_v27  ;;  %11601 = vtanh.f32 %v6185_v59 }
 0xa0d   :  { %11603 = vtanh.f32 %v6184_v60 }
 0xa18   :  { %v11602_v61 = vpop.eup %11601 }
 0xa19   :  { %6189 = vst.msk [vmem:[#allocation2 + $0x8] sm:$0x2] %vm1612_vm6, %v11602_v61 }
 0xa1a   :  { %v11604_v63 = vpop.eup %11603 }
 0xa1b   :  { %6188 = vst.msk [vmem:[#allocation2] sm:$0x2] %vm1612_vm6, %v11604_v63  ;;  %v6192_v0 = vrot.slane %v11604_v63, 1 }
 0xa1d   :  { %v6193_v1 = vsel %vm1115_vm5, %v11602_v61, %v6192_v0 }
 0xa1e   :  { %v6194_v14 = vsel %vm612_vm2, %v6193_v1, 0 }
 0xa1f   :  { %v6265_v22 = vand.u32 4294901760, %v6194_v14 }
 0xa21   :  { %v6266_v40 = vsub.f32 %v6194_v14, %v6265_v22  ;;  %11112 = vmatmul.mubr.f32.vlgmr.msra.gmra.mxu1 %v6265_v22 }
 0xa22   :  { %11126 = vmatpush3.msra.mxu1 %v12505_v62  ;;  %11133 = vmatprep.mubr.msk.f32.mxu1 %vm11745_vm3, %v11744_v44 }
 0xa23   :  { %11127 = vmatprep.subr.mxu1 %v11744_v44  ;;  %v6267_v5 = vand.u32 4294901760, %v6266_v40 }
 0xa24   :  { %11128 = vmatpush3.msra.mxu1 %v12509_v2 }
 0xa25   :  { %11129 = vmatprep.subr.mxu1 %v11744_v44  ;;  %v6268_v9 = vsub.f32 %v6266_v40, %v6267_v5 }
 0xa26   :  { %11130 = vmatpush3.msra.mxu1 %v12516_v38 }
 0xa27   :  { %11131 = vmatprep.subr.mxu1 %v11744_v44  ;;  %v6269_v17 = vand.u32 4294901760, %v6268_v9 }
 0xa28   :  { %11132 = vmatpush3.msra.mxu1 %v12531_v13 }
 0xa29   :  { %11134 = vmatmul.mubr.f32.vlgmr.msra.gmra.mxu1 %v6267_v5  ;;  %11147 = vmatprep.subr.mxu1 %v11744_v44 }
 0xa2a   :  { %11101 = vmatmul.mubr.f32.vlgmr.msra.gmra.mxu0 %v6269_v17  ;;  %11148 = vmatpush3.msra.mxu1 %v12505_v62 }
 0xa2b   :  { %11115 = vmatpush3.msra.mxu0 %v12514_v29  ;;  %11149 = vmatprep.subr.mxu1 %v11744_v44 }
 0xa2c   :  { %11116 = vmatprep.subr.mxu0 %v11744_v44  ;;  %11150 = vmatpush3.msra.mxu1 %v12509_v2 }
 0xa2d   :  { %11117 = vmatpush3.msra.mxu0 %v12521_v6  ;;  %11151 = vmatprep.subr.mxu1 %v11744_v44 }
 0xa2e   :  { %11118 = vmatprep.subr.mxu0 %v11744_v44  ;;  %11152 = vmatpush3.msra.mxu1 %v12516_v38 }
 0xa2f   :  { %11119 = vmatpush3.msra.mxu0 %v12529_v12  ;;  %11153 = vmatprep.subr.mxu1 %v11744_v44 }
 0xa30   :  { %11120 = vmatprep.subr.mxu0 %v11744_v44  ;;  %11122 = vmatprep.mubr.msk.f32.mxu0 %vm11745_vm3, %v11744_v44 }
 0xa31   :  { %11121 = vmatpush3.msra.mxu0 %v12550_v18  ;;  %11154 = vmatpush3.msra.mxu1 %v12531_v13 }
 0xa32   :  { %11155 = vmatprep.mubr.msk.f32.mxu1 %vm11745_vm3, %v11744_v44  ;;  %11123 = vmatmul.mubr.f32.vlgmr.msra.gmra.mxu0 %v6266_v40 }
 0xa33   :  { %11136 = vmatprep.subr.mxu0 %v11744_v44  ;;  %11156 = vmatmul.mubr.f32.vlgmr.msra.gmra.mxu1 %v6265_v22 }
 0xa34   :  { %11137 = vmatpush3.msra.mxu0 %v12526_v10  ;;  %11144 = vmatprep.mubr.msk.f32.mxu0 %vm11745_vm3, %v11744_v44 }
 0xa35   :  { %11138 = vmatprep.subr.mxu0 %v11744_v44  ;;  %11169 = vmatprep.subr.mxu1 %v11744_v44 }
 0xa36   :  { %11139 = vmatpush3.msra.mxu0 %v12537_v15  ;;  %11170 = vmatpush3.msra.mxu1 %v12563_v35 }
 0xa37   :  { %11140 = vmatprep.subr.mxu0 %v11744_v44  ;;  %11171 = vmatprep.subr.mxu1 %v11744_v44 }
 0xa38   :  { %11141 = vmatpush3.msra.mxu0 %v12547_v16  ;;  %11172 = vmatpush3.msra.mxu1 %v12575_v4 }
 0xa39   :  { %11142 = vmatprep.subr.mxu0 %v11744_v44  ;;  %11173 = vmatprep.subr.mxu1 %v11744_v44 }
 0xa3a   :  { %11143 = vmatpush3.msra.mxu0 %v12568_v20  ;;  %11174 = vmatpush3.msra.mxu1 %v12581_v8 }
 0xa3b   :  { %11145 = vmatmul.mubr.f32.vlgmr.msra.gmra.mxu0 %v6265_v22  ;;  %11175 = vmatprep.subr.mxu1 %v11744_v44 }
 0xa3c   :  { %11176 = vmatpush3.msra.mxu1 %v12593_v43  ;;  %11158 = vmatprep.subr.mxu0 %v11744_v44 }
 0xa3d   :  { %11177 = vmatprep.mubr.msk.f32.mxu1 %vm11745_vm3, %v11744_v44  ;;  %11191 = vmatprep.subr.mxu1 %v11744_v44 }
 0xa3e   :  { %11159 = vmatpush3.msra.mxu0 %v12505_v62  ;;  %11166 = vmatprep.mubr.msk.f32.mxu0 %vm11745_vm3, %v11744_v44 }
 0xa3f   :  { %11160 = vmatprep.subr.mxu0 %v11744_v44 }
 0xa40   :  { %11161 = vmatpush3.msra.mxu0 %v12509_v2 }
 0xa41   :  { %11162 = vmatprep.subr.mxu0 %v11744_v44 }
 0xa42   :  { %11163 = vmatpush3.msra.mxu0 %v12516_v38 }
 0xa43   :  { %11164 = vmatprep.subr.mxu0 %v11744_v44 }
 0xa44   :  { %11165 = vmatpush3.msra.mxu0 %v12531_v13 }
 0xa45   :  { %11180 = vmatprep.subr.mxu0 %v11744_v44 }
 0xae1   :  { %v6362_v19 = vpop.f32.mrf.mxu1 }
 0xae3   :  { %v11113_v28 = vpop.f32.mrf.mxu1 }
 0xae9   :  { %v6519_v36 = vpop.f32.mrf.mxu1 }
 0xaea   :  { %v6271_v21 = vpop.f32.mrf.mxu0 }
 0xaeb   :  { %v11135_v34 = vpop.f32.mrf.mxu1  ;;  %v6363_v47 = vadd.f32 %v6362_v19, %v6271_v21 }
 0xaec   :  { %v11102_v45 = vpop.f32.mrf.mxu0 }
 0xaf2   :  { %v6442_v7 = vpop.f32.mrf.mxu0 }
 0xaf3   :  { %v6677_v11 = vpop.f32.mrf.mxu1  ;;  %v6443_v23 = vadd.f32 %v6442_v7, %v6363_v47 }
 0xaf4   :  { %v11124_v50 = vpop.f32.mrf.mxu0 }
 0xaf5   :  { %v11157_v52 = vpop.f32.mrf.mxu1  ;;  %v6520_v24 = vadd.f32 %v6519_v36, %v6443_v23 }
 0xafb   :  { %v6602_v25 = vpop.f32.mrf.mxu0 }
 0xafc   :  { %v6603_v26 = vadd.f32 %v6602_v25, %v6520_v24 }
 0xafd   :  { %v11146_v30 = vpop.f32.mrf.mxu0 }
 0xafe   :  { %v6678_v31 = vadd.f32 %v6677_v11, %v6603_v26 }
 0xb00   :  { %v6682_v32 = vrot.slane %v6678_v31, 6  ;;  %v6683_v37 = vrot.slane %v6678_v31, 7 }
 0xb02   :  { %v6686_v39 = vadd.f32 %v6682_v32, %v12675_v27  ;;  %v6687_v42 = vadd.f32 %v6683_v37, %v12677_v3 }
 0xb04   :  { %11605 = vtanh.f32 %v6686_v39 }
 0xb05   :  { %11607 = vtanh.f32 %v6687_v42 }
 0xb11   :  { %v11606_v46 = vpop.eup %11605 }
 0xb12   :  { %v11608_v48 = vpop.eup %11607  ;;  %6690 = vst.msk [vmem:[#allocation2] sm:$0x4] %vm2115_vm7, %v11606_v46  ;;  %v6694_v49 = vrot.slane %v11606_v46, 2 }
 0xb13   :  { %6691 = vst.msk [vmem:[#allocation2 + $0x8] sm:$0x4] %vm2115_vm7, %v11608_v48  ;;  %v6695_v51 = vrot.slane %v11608_v48, 1 }
 0xb15   :  { %v6696_v53 = vsel %vm1115_vm5, %v6695_v51, %v6694_v49 }
 0xb16   :  { %v6697_v54 = vsel %vm612_vm2, %v6696_v53, 0 }
 0xb17   :  { %v6768_v55 = vand.u32 4294901760, %v6697_v54 }
 0xb19   :  { %v6769_v56 = vsub.f32 %v6697_v54, %v6768_v55  ;;  %11178 = vmatmul.mubr.f32.vlgmr.msra.gmra.mxu1 %v6768_v55 }
 0xb1a   :  { %11192 = vmatpush3.msra.mxu1 %v12505_v62  ;;  %11199 = vmatprep.mubr.msk.f32.mxu1 %vm11745_vm3, %v11744_v44 }
 0xb1b   :  { %11193 = vmatprep.subr.mxu1 %v11744_v44  ;;  %v6770_v57 = vand.u32 4294901760, %v6769_v56 }
 0xb1c   :  { %11194 = vmatpush3.msra.mxu1 %v12509_v2 }
 0xb1d   :  { %11195 = vmatprep.subr.mxu1 %v11744_v44  ;;  %v6771_v33 = vsub.f32 %v6769_v56, %v6770_v57 }
 0xb1e   :  { %11196 = vmatpush3.msra.mxu1 %v12516_v38 }
 0xb1f   :  { %11197 = vmatprep.subr.mxu1 %v11744_v44  ;;  %v6772_v41 = vand.u32 4294901760, %v6771_v33 }
 0xb20   :  { %11198 = vmatpush3.msra.mxu1 %v12531_v13 }
 0xb21   :  { %11200 = vmatmul.mubr.f32.vlgmr.msra.gmra.mxu1 %v6770_v57  ;;  %11213 = vmatprep.subr.mxu1 %v11744_v44 }
 0xb22   :  { %11167 = vmatmul.mubr.f32.vlgmr.msra.gmra.mxu0 %v6772_v41  ;;  %11214 = vmatpush3.msra.mxu1 %v12505_v62 }
 0xb23   :  { %11181 = vmatpush3.msra.mxu0 %v12514_v29  ;;  %11215 = vmatprep.subr.mxu1 %v11744_v44 }
 0xb24   :  { %11182 = vmatprep.subr.mxu0 %v11744_v44  ;;  %11216 = vmatpush3.msra.mxu1 %v12509_v2 }
 0xb25   :  { %11183 = vmatpush3.msra.mxu0 %v12521_v6  ;;  %11217 = vmatprep.subr.mxu1 %v11744_v44 }
 0xb26   :  { %11184 = vmatprep.subr.mxu0 %v11744_v44  ;;  %11218 = vmatpush3.msra.mxu1 %v12516_v38 }
 0xb27   :  { %11185 = vmatpush3.msra.mxu0 %v12529_v12  ;;  %11219 = vmatprep.subr.mxu1 %v11744_v44 }
 0xb28   :  { %11186 = vmatprep.subr.mxu0 %v11744_v44  ;;  %11188 = vmatprep.mubr.msk.f32.mxu0 %vm11745_vm3, %v11744_v44 }
 0xb29   :  { %11187 = vmatpush3.msra.mxu0 %v12550_v18  ;;  %11220 = vmatpush3.msra.mxu1 %v12531_v13 }
 0xb2a   :  { %11221 = vmatprep.mubr.msk.f32.mxu1 %vm11745_vm3, %v11744_v44  ;;  %11189 = vmatmul.mubr.f32.vlgmr.msra.gmra.mxu0 %v6769_v56 }
 0xb2b   :  { %11202 = vmatprep.subr.mxu0 %v11744_v44  ;;  %11222 = vmatmul.mubr.f32.vlgmr.msra.gmra.mxu1 %v6768_v55 }
 0xb2c   :  { %11203 = vmatpush3.msra.mxu0 %v12526_v10  ;;  %11210 = vmatprep.mubr.msk.f32.mxu0 %vm11745_vm3, %v11744_v44 }
 0xb2d   :  { %11204 = vmatprep.subr.mxu0 %v11744_v44  ;;  %11235 = vmatprep.subr.mxu1 %v11744_v44 }
 0xb2e   :  { %11205 = vmatpush3.msra.mxu0 %v12537_v15  ;;  %11236 = vmatpush3.msra.mxu1 %v12563_v35 }
 0xb2f   :  { %11206 = vmatprep.subr.mxu0 %v11744_v44  ;;  %11237 = vmatprep.subr.mxu1 %v11744_v44 }
 0xb30   :  { %11207 = vmatpush3.msra.mxu0 %v12547_v16  ;;  %11238 = vmatpush3.msra.mxu1 %v12575_v4 }
 0xb31   :  { %11208 = vmatprep.subr.mxu0 %v11744_v44  ;;  %11239 = vmatprep.subr.mxu1 %v11744_v44 }
 0xb32   :  { %11209 = vmatpush3.msra.mxu0 %v12568_v20  ;;  %11240 = vmatpush3.msra.mxu1 %v12581_v8 }
 0xb33   :  { %11211 = vmatmul.mubr.f32.vlgmr.msra.gmra.mxu0 %v6768_v55  ;;  %11241 = vmatprep.subr.mxu1 %v11744_v44 }
 0xb34   :  { %11242 = vmatpush3.msra.mxu1 %v12593_v43  ;;  %11224 = vmatprep.subr.mxu0 %v11744_v44 }
 0xb35   :  { %11243 = vmatprep.mubr.msk.f32.mxu1 %vm11745_vm3, %v11744_v44  ;;  %11257 = vmatprep.subr.mxu1 %v11744_v44 }
 0xb36   :  { %11225 = vmatpush3.msra.mxu0 %v12505_v62  ;;  %11232 = vmatprep.mubr.msk.f32.mxu0 %vm11745_vm3, %v11744_v44 }
 0xb37   :  { %11226 = vmatprep.subr.mxu0 %v11744_v44 }
 0xb38   :  { %11227 = vmatpush3.msra.mxu0 %v12509_v2 }
 0xb39   :  { %11228 = vmatprep.subr.mxu0 %v11744_v44 }
 0xb3a   :  { %11229 = vmatpush3.msra.mxu0 %v12516_v38 }
 0xb3b   :  { %11230 = vmatprep.subr.mxu0 %v11744_v44 }
 0xb3c   :  { %11231 = vmatpush3.msra.mxu0 %v12531_v13 }
 0xb3d   :  { %11246 = vmatprep.subr.mxu0 %v11744_v44 }
 0xbd9   :  { %v6865_v58 = vpop.f32.mrf.mxu1 }
 0xbdb   :  { %v11179_v59 = vpop.f32.mrf.mxu1 }
 0xbe1   :  { %v7022_v60 = vpop.f32.mrf.mxu1 }
 0xbe2   :  { %v6774_v61 = vpop.f32.mrf.mxu0 }
 0xbe3   :  { %v11201_v63 = vpop.f32.mrf.mxu1  ;;  %v6866_v22 = vadd.f32 %v6865_v58, %v6774_v61 }
 0xbe4   :  { %v11168_v0 = vpop.f32.mrf.mxu0 }
 0xbea   :  { %v6945_v1 = vpop.f32.mrf.mxu0 }
 0xbeb   :  { %v7180_v14 = vpop.f32.mrf.mxu1  ;;  %v6946_v9 = vadd.f32 %v6945_v1, %v6866_v22 }
 0xbec   :  { %v11190_v40 = vpop.f32.mrf.mxu0 }
 0xbed   :  { %v11223_v5 = vpop.f32.mrf.mxu1  ;;  %v7023_v17 = vadd.f32 %v7022_v60, %v6946_v9 }
 0xbf3   :  { %v7105_v19 = vpop.f32.mrf.mxu0 }
 0xbf4   :  { %v7106_v28 = vadd.f32 %v7105_v19, %v7023_v17 }
 0xbf5   :  { %v11212_v36 = vpop.f32.mrf.mxu0 }
 0xbf6   :  { %v7181_v21 = vadd.f32 %v7180_v14, %v7106_v28 }
 0xbf8   :  { %v7185_v34 = vrot.slane %v7181_v21, 5  ;;  %v7186_v45 = vrot.slane %v7181_v21, 6 }
 0xbfa   :  { %v7189_v7 = vadd.f32 %v7185_v34, %v12675_v27  ;;  %v7190_v11 = vadd.f32 %v7186_v45, %v12677_v3 }
 0xbfc   :  { %11609 = vtanh.f32 %v7189_v7 }
 0xbfd   :  { %11611 = vtanh.f32 %v7190_v11 }
 0xc09   :  { %v11610_v47 = vpop.eup %11609 }
 0xc0a   :  { %v11612_v50 = vpop.eup %11611  ;;  %7193 = vst.msk [vmem:[#allocation2] sm:$0x8] %vm2619_vm8, %v11610_v47  ;;  %v7197_v52 = vrot.slane %v11610_v47, 3 }
 0xc0b   :  { %7194 = vst.msk [vmem:[#allocation2 + $0x8] sm:$0x8] %vm2619_vm8, %v11612_v50  ;;  %v7198_v23 = vrot.slane %v11612_v50, 2 }
 0xc0d   :  { %v7199_v24 = vsel %vm1115_vm5, %v7198_v23, %v7197_v52 }
 0xc0e   :  { %v7200_v25 = vsel %vm612_vm2, %v7199_v24, 0 }
 0xc0f   :  { %v7271_v26 = vand.u32 4294901760, %v7200_v25 }
 0xc11   :  { %v7272_v30 = vsub.f32 %v7200_v25, %v7271_v26  ;;  %11244 = vmatmul.mubr.f32.vlgmr.msra.gmra.mxu1 %v7271_v26 }
 0xc12   :  { %11258 = vmatpush3.msra.mxu1 %v12505_v62  ;;  %11265 = vmatprep.mubr.msk.f32.mxu1 %vm11745_vm3, %v11744_v44 }
 0xc13   :  { %11259 = vmatprep.subr.mxu1 %v11744_v44  ;;  %v7273_v31 = vand.u32 4294901760, %v7272_v30 }
 0xc14   :  { %11260 = vmatpush3.msra.mxu1 %v12509_v2 }
 0xc15   :  { %11261 = vmatprep.subr.mxu1 %v11744_v44  ;;  %v7274_v32 = vsub.f32 %v7272_v30, %v7273_v31 }
 0xc16   :  { %11262 = vmatpush3.msra.mxu1 %v12516_v38 }
 0xc17   :  { %11263 = vmatprep.subr.mxu1 %v11744_v44  ;;  %v7275_v37 = vand.u32 4294901760, %v7274_v32 }
 0xc18   :  { %11264 = vmatpush3.msra.mxu1 %v12531_v13 }
 0xc19   :  { %11266 = vmatmul.mubr.f32.vlgmr.msra.gmra.mxu1 %v7273_v31  ;;  %11279 = vmatprep.subr.mxu1 %v11744_v44 }
 0xc1a   :  { %11233 = vmatmul.mubr.f32.vlgmr.msra.gmra.mxu0 %v7275_v37  ;;  %11280 = vmatpush3.msra.mxu1 %v12505_v62 }
 0xc1b   :  { %11247 = vmatpush3.msra.mxu0 %v12514_v29  ;;  %11281 = vmatprep.subr.mxu1 %v11744_v44 }
 0xc1c   :  { %11248 = vmatprep.subr.mxu0 %v11744_v44  ;;  %11282 = vmatpush3.msra.mxu1 %v12509_v2 }
 0xc1d   :  { %11249 = vmatpush3.msra.mxu0 %v12521_v6  ;;  %11283 = vmatprep.subr.mxu1 %v11744_v44 }
 0xc1e   :  { %11250 = vmatprep.subr.mxu0 %v11744_v44  ;;  %11284 = vmatpush3.msra.mxu1 %v12516_v38 }
 0xc1f   :  { %11251 = vmatpush3.msra.mxu0 %v12529_v12  ;;  %11285 = vmatprep.subr.mxu1 %v11744_v44 }
 0xc20   :  { %11252 = vmatprep.subr.mxu0 %v11744_v44  ;;  %11254 = vmatprep.mubr.msk.f32.mxu0 %vm11745_vm3, %v11744_v44 }
 0xc21   :  { %11253 = vmatpush3.msra.mxu0 %v12550_v18  ;;  %11286 = vmatpush3.msra.mxu1 %v12531_v13 }
 0xc22   :  { %11287 = vmatprep.mubr.msk.f32.mxu1 %vm11745_vm3, %v11744_v44  ;;  %11255 = vmatmul.mubr.f32.vlgmr.msra.gmra.mxu0 %v7272_v30 }
 0xc23   :  { %11268 = vmatprep.subr.mxu0 %v11744_v44  ;;  %11288 = vmatmul.mubr.f32.vlgmr.msra.gmra.mxu1 %v7271_v26 }
 0xc24   :  { %11269 = vmatpush3.msra.mxu0 %v12526_v10  ;;  %11276 = vmatprep.mubr.msk.f32.mxu0 %vm11745_vm3, %v11744_v44 }
 0xc25   :  { %11270 = vmatprep.subr.mxu0 %v11744_v44  ;;  %11301 = vmatprep.subr.mxu1 %v11744_v44 }
 0xc26   :  { %11271 = vmatpush3.msra.mxu0 %v12537_v15  ;;  %11302 = vmatpush3.msra.mxu1 %v12563_v35 }
 0xc27   :  { %11272 = vmatprep.subr.mxu0 %v11744_v44  ;;  %11303 = vmatprep.subr.mxu1 %v11744_v44 }
 0xc28   :  { %11273 = vmatpush3.msra.mxu0 %v12547_v16  ;;  %11304 = vmatpush3.msra.mxu1 %v12575_v4 }
 0xc29   :  { %11274 = vmatprep.subr.mxu0 %v11744_v44  ;;  %11305 = vmatprep.subr.mxu1 %v11744_v44 }
 0xc2a   :  { %11275 = vmatpush3.msra.mxu0 %v12568_v20  ;;  %11306 = vmatpush3.msra.mxu1 %v12581_v8 }
 0xc2b   :  { %11277 = vmatmul.mubr.f32.vlgmr.msra.gmra.mxu0 %v7271_v26  ;;  %11307 = vmatprep.subr.mxu1 %v11744_v44 }
 0xc2c   :  { %11308 = vmatpush3.msra.mxu1 %v12593_v43  ;;  %11290 = vmatprep.subr.mxu0 %v11744_v44 }
 0xc2d   :  { %11309 = vmatprep.mubr.msk.f32.mxu1 %vm11745_vm3, %v11744_v44  ;;  %11323 = vmatprep.subr.mxu1 %v11744_v44 }
 0xc2e   :  { %11291 = vmatpush3.msra.mxu0 %v12505_v62  ;;  %11298 = vmatprep.mubr.msk.f32.mxu0 %vm11745_vm3, %v11744_v44 }
 0xc2f   :  { %11292 = vmatprep.subr.mxu0 %v11744_v44 }
 0xc30   :  { %11293 = vmatpush3.msra.mxu0 %v12509_v2 }
 0xc31   :  { %11294 = vmatprep.subr.mxu0 %v11744_v44 }
 0xc32   :  { %11295 = vmatpush3.msra.mxu0 %v12516_v38 }
 0xc33   :  { %11296 = vmatprep.subr.mxu0 %v11744_v44 }
 0xc34   :  { %11297 = vmatpush3.msra.mxu0 %v12531_v13 }
 0xc35   :  { %11312 = vmatprep.subr.mxu0 %v11744_v44 }
 0xcd1   :  { %v7368_v39 = vpop.f32.mrf.mxu1 }
 0xcd3   :  { %v11245_v42 = vpop.f32.mrf.mxu1 }
 0xcd9   :  { %v7525_v46 = vpop.f32.mrf.mxu1 }
 0xcda   :  { %v7277_v48 = vpop.f32.mrf.mxu0 }
 0xcdb   :  { %v11267_v49 = vpop.f32.mrf.mxu1  ;;  %v7369_v55 = vadd.f32 %v7368_v39, %v7277_v48 }
 0xcdc   :  { %v11234_v51 = vpop.f32.mrf.mxu0 }
 0xce2   :  { %v7448_v53 = vpop.f32.mrf.mxu0 }
 0xce3   :  { %v7683_v54 = vpop.f32.mrf.mxu1  ;;  %v7449_v33 = vadd.f32 %v7448_v53, %v7369_v55 }
 0xce4   :  { %v11256_v56 = vpop.f32.mrf.mxu0 }
 0xce5   :  { %v11289_v57 = vpop.f32.mrf.mxu1  ;;  %v7526_v41 = vadd.f32 %v7525_v46, %v7449_v33 }
 0xceb   :  { %v7608_v58 = vpop.f32.mrf.mxu0 }
 0xcec   :  { %v7609_v59 = vadd.f32 %v7608_v58, %v7526_v41 }
 0xced   :  { %v11278_v60 = vpop.f32.mrf.mxu0 }
 0xcee   :  { %v7684_v61 = vadd.f32 %v7683_v54, %v7609_v59 }
 0xcf0   :  { %v7688_v63 = vrot.slane %v7684_v61, 4  ;;  %v7689_v0 = vrot.slane %v7684_v61, 5 }
 0xcf2   :  { %v7692_v1 = vadd.f32 %v7688_v63, %v12675_v27  ;;  %v7693_v14 = vadd.f32 %v7689_v0, %v12677_v3 }
 0xcf4   :  { %11613 = vtanh.f32 %v7692_v1 }
 0xcf5   :  { %11615 = vtanh.f32 %v7693_v14 }
 0xd01   :  { %v11614_v22 = vpop.eup %11613 }
 0xd02   :  { %v11616_v40 = vpop.eup %11615  ;;  %7696 = vst.msk [vmem:[#allocation2] sm:$0x10] %vm3123_vm9, %v11614_v22  ;;  %v7700_v5 = vrot.slane %v11614_v22, 4 }
 0xd03   :  { %7697 = vst.msk [vmem:[#allocation2 + $0x8] sm:$0x10] %vm3123_vm9, %v11616_v40  ;;  %v7701_v9 = vrot.slane %v11616_v40, 3 }
 0xd05   :  { %v7702_v17 = vsel %vm1115_vm5, %v7701_v9, %v7700_v5 }
 0xd06   :  { %v7703_v19 = vsel %vm612_vm2, %v7702_v17, 0 }
 0xd07   :  { %v7774_v28 = vand.u32 4294901760, %v7703_v19 }
 0xd09   :  { %v7775_v36 = vsub.f32 %v7703_v19, %v7774_v28  ;;  %11310 = vmatmul.mubr.f32.vlgmr.msra.gmra.mxu1 %v7774_v28 }
 0xd0a   :  { %11324 = vmatpush3.msra.mxu1 %v12505_v62  ;;  %11331 = vmatprep.mubr.msk.f32.mxu1 %vm11745_vm3, %v11744_v44 }
 0xd0b   :  { %11325 = vmatprep.subr.mxu1 %v11744_v44  ;;  %v7776_v21 = vand.u32 4294901760, %v7775_v36 }
 0xd0c   :  { %11326 = vmatpush3.msra.mxu1 %v12509_v2 }
 0xd0d   :  { %11327 = vmatprep.subr.mxu1 %v11744_v44  ;;  %v7777_v34 = vsub.f32 %v7775_v36, %v7776_v21 }
 0xd0e   :  { %11328 = vmatpush3.msra.mxu1 %v12516_v38 }
 0xd0f   :  { %11329 = vmatprep.subr.mxu1 %v11744_v44  ;;  %v7778_v45 = vand.u32 4294901760, %v7777_v34 }
 0xd10   :  { %11330 = vmatpush3.msra.mxu1 %v12531_v13 }
 0xd11   :  { %11332 = vmatmul.mubr.f32.vlgmr.msra.gmra.mxu1 %v7776_v21  ;;  %11345 = vmatprep.subr.mxu1 %v11744_v44 }
 0xd12   :  { %11299 = vmatmul.mubr.f32.vlgmr.msra.gmra.mxu0 %v7778_v45  ;;  %11346 = vmatpush3.msra.mxu1 %v12505_v62 }
 0xd13   :  { %11313 = vmatpush3.msra.mxu0 %v12514_v29  ;;  %11347 = vmatprep.subr.mxu1 %v11744_v44 }
 0xd14   :  { %11314 = vmatprep.subr.mxu0 %v11744_v44  ;;  %11348 = vmatpush3.msra.mxu1 %v12509_v2 }
 0xd15   :  { %11315 = vmatpush3.msra.mxu0 %v12521_v6  ;;  %11349 = vmatprep.subr.mxu1 %v11744_v44 }
 0xd16   :  { %11316 = vmatprep.subr.mxu0 %v11744_v44  ;;  %11350 = vmatpush3.msra.mxu1 %v12516_v38 }
 0xd17   :  { %11317 = vmatpush3.msra.mxu0 %v12529_v12  ;;  %11351 = vmatprep.subr.mxu1 %v11744_v44 }
 0xd18   :  { %11318 = vmatprep.subr.mxu0 %v11744_v44  ;;  %11320 = vmatprep.mubr.msk.f32.mxu0 %vm11745_vm3, %v11744_v44 }
 0xd19   :  { %11319 = vmatpush3.msra.mxu0 %v12550_v18  ;;  %11352 = vmatpush3.msra.mxu1 %v12531_v13 }
 0xd1a   :  { %11353 = vmatprep.mubr.msk.f32.mxu1 %vm11745_vm3, %v11744_v44  ;;  %11321 = vmatmul.mubr.f32.vlgmr.msra.gmra.mxu0 %v7775_v36 }
 0xd1b   :  { %11334 = vmatprep.subr.mxu0 %v11744_v44  ;;  %11354 = vmatmul.mubr.f32.vlgmr.msra.gmra.mxu1 %v7774_v28 }
 0xd1c   :  { %11335 = vmatpush3.msra.mxu0 %v12526_v10  ;;  %11342 = vmatprep.mubr.msk.f32.mxu0 %vm11745_vm3, %v11744_v44 }
 0xd1d   :  { %11336 = vmatprep.subr.mxu0 %v11744_v44  ;;  %11367 = vmatprep.subr.mxu1 %v11744_v44 }
 0xd1e   :  { %11337 = vmatpush3.msra.mxu0 %v12537_v15  ;;  %11368 = vmatpush3.msra.mxu1 %v12563_v35 }
 0xd1f   :  { %11338 = vmatprep.subr.mxu0 %v11744_v44  ;;  %11369 = vmatprep.subr.mxu1 %v11744_v44 }
 0xd20   :  { %11339 = vmatpush3.msra.mxu0 %v12547_v16  ;;  %11370 = vmatpush3.msra.mxu1 %v12575_v4 }
 0xd21   :  { %11340 = vmatprep.subr.mxu0 %v11744_v44  ;;  %11371 = vmatprep.subr.mxu1 %v11744_v44 }
 0xd22   :  { %11341 = vmatpush3.msra.mxu0 %v12568_v20  ;;  %11372 = vmatpush3.msra.mxu1 %v12581_v8 }
 0xd23   :  { %11343 = vmatmul.mubr.f32.vlgmr.msra.gmra.mxu0 %v7774_v28  ;;  %11373 = vmatprep.subr.mxu1 %v11744_v44 }
 0xd24   :  { %11374 = vmatpush3.msra.mxu1 %v12593_v43  ;;  %11356 = vmatprep.subr.mxu0 %v11744_v44 }
 0xd25   :  { %11375 = vmatprep.mubr.msk.f32.mxu1 %vm11745_vm3, %v11744_v44  ;;  %11389 = vmatprep.subr.mxu1 %v11744_v44 }
 0xd26   :  { %11357 = vmatpush3.msra.mxu0 %v12505_v62  ;;  %11364 = vmatprep.mubr.msk.f32.mxu0 %vm11745_vm3, %v11744_v44 }
 0xd27   :  { %11358 = vmatprep.subr.mxu0 %v11744_v44 }
 0xd28   :  { %11359 = vmatpush3.msra.mxu0 %v12509_v2 }
 0xd29   :  { %11360 = vmatprep.subr.mxu0 %v11744_v44 }
 0xd2a   :  { %11361 = vmatpush3.msra.mxu0 %v12516_v38 }
 0xd2b   :  { %11362 = vmatprep.subr.mxu0 %v11744_v44 }
 0xd2c   :  { %11363 = vmatpush3.msra.mxu0 %v12531_v13 }
 0xd2d   :  { %11378 = vmatprep.subr.mxu0 %v11744_v44 }
 0xdc9   :  { %v7871_v7 = vpop.f32.mrf.mxu1 }
 0xdcb   :  { %v11311_v11 = vpop.f32.mrf.mxu1 }
 0xdd1   :  { %v8028_v47 = vpop.f32.mrf.mxu1 }
 0xdd2   :  { %v7780_v50 = vpop.f32.mrf.mxu0 }
 0xdd3   :  { %v11333_v52 = vpop.f32.mrf.mxu1  ;;  %v7872_v26 = vadd.f32 %v7871_v7, %v7780_v50 }
 0xdd4   :  { %v11300_v23 = vpop.f32.mrf.mxu0 }
 0xdda   :  { %v7951_v24 = vpop.f32.mrf.mxu0 }
 0xddb   :  { %v8186_v25 = vpop.f32.mrf.mxu1  ;;  %v7952_v32 = vadd.f32 %v7951_v24, %v7872_v26 }
 0xddc   :  { %v11322_v30 = vpop.f32.mrf.mxu0 }
 0xddd   :  { %v11355_v31 = vpop.f32.mrf.mxu1  ;;  %v8029_v37 = vadd.f32 %v8028_v47, %v7952_v32 }
 0xde3   :  { %v8111_v39 = vpop.f32.mrf.mxu0 }
 0xde4   :  { %v8112_v42 = vadd.f32 %v8111_v39, %v8029_v37 }
 0xde5   :  { %v11344_v46 = vpop.f32.mrf.mxu0 }
 0xde6   :  { %v8187_v48 = vadd.f32 %v8186_v25, %v8112_v42 }
 0xde8   :  { %v8191_v49 = vrot.slane %v8187_v48, 3  ;;  %v8192_v51 = vrot.slane %v8187_v48, 4 }
 0xdea   :  { %v8195_v53 = vadd.f32 %v8191_v49, %v12675_v27  ;;  %v8196_v54 = vadd.f32 %v8192_v51, %v12677_v3 }
 0xdec   :  { %11617 = vtanh.f32 %v8195_v53 }
 0xded   :  { %11619 = vtanh.f32 %v8196_v54 }
 0xdf9   :  { %v11618_v55 = vpop.eup %11617 }
 0xdfa   :  { %v11620_v56 = vpop.eup %11619  ;;  %8199 = vst.msk [vmem:[#allocation2] sm:$0x20] %vm3627_vm10, %v11618_v55  ;;  %v8203_v57 = vrot.slane %v11618_v55, 5 }
 0xdfb   :  { %8200 = vst.msk [vmem:[#allocation2 + $0x8] sm:$0x20] %vm3627_vm10, %v11620_v56  ;;  %v8204_v33 = vrot.slane %v11620_v56, 4 }
 0xdfd   :  { %v8205_v41 = vsel %vm1115_vm5, %v8204_v33, %v8203_v57 }
 0xdfe   :  { %v8206_v58 = vsel %vm612_vm2, %v8205_v41, 0 }
 0xdff   :  { %v8277_v59 = vand.u32 4294901760, %v8206_v58 }
 0xe01   :  { %v8278_v60 = vsub.f32 %v8206_v58, %v8277_v59  ;;  %11376 = vmatmul.mubr.f32.vlgmr.msra.gmra.mxu1 %v8277_v59 }
 0xe02   :  { %11390 = vmatpush3.msra.mxu1 %v12505_v62  ;;  %11397 = vmatprep.mubr.msk.f32.mxu1 %vm11745_vm3, %v11744_v44 }
 0xe03   :  { %11391 = vmatprep.subr.mxu1 %v11744_v44  ;;  %v8279_v61 = vand.u32 4294901760, %v8278_v60 }
 0xe04   :  { %11392 = vmatpush3.msra.mxu1 %v12509_v2 }
 0xe05   :  { %11393 = vmatprep.subr.mxu1 %v11744_v44  ;;  %v8280_v63 = vsub.f32 %v8278_v60, %v8279_v61 }
 0xe06   :  { %11394 = vmatpush3.msra.mxu1 %v12516_v38 }
 0xe07   :  { %11395 = vmatprep.subr.mxu1 %v11744_v44  ;;  %v8281_v0 = vand.u32 4294901760, %v8280_v63 }
 0xe08   :  { %11396 = vmatpush3.msra.mxu1 %v12531_v13 }
 0xe09   :  { %11398 = vmatmul.mubr.f32.vlgmr.msra.gmra.mxu1 %v8279_v61  ;;  %11411 = vmatprep.subr.mxu1 %v11744_v44 }
 0xe0a   :  { %11365 = vmatmul.mubr.f32.vlgmr.msra.gmra.mxu0 %v8281_v0  ;;  %11412 = vmatpush3.msra.mxu1 %v12505_v62 }
 0xe0b   :  { %11379 = vmatpush3.msra.mxu0 %v12514_v29  ;;  %11413 = vmatprep.subr.mxu1 %v11744_v44 }
 0xe0c   :  { %11380 = vmatprep.subr.mxu0 %v11744_v44  ;;  %11414 = vmatpush3.msra.mxu1 %v12509_v2 }
 0xe0d   :  { %11381 = vmatpush3.msra.mxu0 %v12521_v6  ;;  %11415 = vmatprep.subr.mxu1 %v11744_v44 }
 0xe0e   :  { %11382 = vmatprep.subr.mxu0 %v11744_v44  ;;  %11416 = vmatpush3.msra.mxu1 %v12516_v38 }
 0xe0f   :  { %11383 = vmatpush3.msra.mxu0 %v12529_v12  ;;  %11417 = vmatprep.subr.mxu1 %v11744_v44 }
 0xe10   :  { %11384 = vmatprep.subr.mxu0 %v11744_v44  ;;  %11386 = vmatprep.mubr.msk.f32.mxu0 %vm11745_vm3, %v11744_v44 }
 0xe11   :  { %11385 = vmatpush3.msra.mxu0 %v12550_v18  ;;  %11418 = vmatpush3.msra.mxu1 %v12531_v13 }
 0xe12   :  { %11419 = vmatprep.mubr.msk.f32.mxu1 %vm11745_vm3, %v11744_v44  ;;  %11387 = vmatmul.mubr.f32.vlgmr.msra.gmra.mxu0 %v8278_v60 }
 0xe13   :  { %11400 = vmatprep.subr.mxu0 %v11744_v44  ;;  %11420 = vmatmul.mubr.f32.vlgmr.msra.gmra.mxu1 %v8277_v59 }
 0xe14   :  { %11401 = vmatpush3.msra.mxu0 %v12526_v10  ;;  %11408 = vmatprep.mubr.msk.f32.mxu0 %vm11745_vm3, %v11744_v44 }
 0xe15   :  { %11402 = vmatprep.subr.mxu0 %v11744_v44  ;;  %11433 = vmatprep.subr.mxu1 %v11744_v44 }
 0xe16   :  { %11403 = vmatpush3.msra.mxu0 %v12537_v15  ;;  %11434 = vmatpush3.msra.mxu1 %v12563_v35 }
 0xe17   :  { %11404 = vmatprep.subr.mxu0 %v11744_v44  ;;  %11435 = vmatprep.subr.mxu1 %v11744_v44 }
 0xe18   :  { %11405 = vmatpush3.msra.mxu0 %v12547_v16  ;;  %11436 = vmatpush3.msra.mxu1 %v12575_v4 }
 0xe19   :  { %11406 = vmatprep.subr.mxu0 %v11744_v44  ;;  %11437 = vmatprep.subr.mxu1 %v11744_v44 }
 0xe1a   :  { %11407 = vmatpush3.msra.mxu0 %v12568_v20  ;;  %11438 = vmatpush3.msra.mxu1 %v12581_v8 }
 0xe1b   :  { %11409 = vmatmul.mubr.f32.vlgmr.msra.gmra.mxu0 %v8277_v59  ;;  %11439 = vmatprep.subr.mxu1 %v11744_v44 }
 0xe1c   :  { %11440 = vmatpush3.msra.mxu1 %v12593_v43  ;;  %11422 = vmatprep.subr.mxu0 %v11744_v44 }
 0xe1d   :  { %11441 = vmatprep.mubr.msk.f32.mxu1 %vm11745_vm3, %v11744_v44  ;;  %11455 = vmatprep.subr.mxu1 %v11744_v44 }
 0xe1e   :  { %11423 = vmatpush3.msra.mxu0 %v12505_v62  ;;  %11430 = vmatprep.mubr.msk.f32.mxu0 %vm11745_vm3, %v11744_v44 }
 0xe1f   :  { %11424 = vmatprep.subr.mxu0 %v11744_v44 }
 0xe20   :  { %11425 = vmatpush3.msra.mxu0 %v12509_v2 }
 0xe21   :  { %11426 = vmatprep.subr.mxu0 %v11744_v44 }
 0xe22   :  { %11427 = vmatpush3.msra.mxu0 %v12516_v38 }
 0xe23   :  { %11428 = vmatprep.subr.mxu0 %v11744_v44 }
 0xe24   :  { %11429 = vmatpush3.msra.mxu0 %v12531_v13 }
 0xe25   :  { %11444 = vmatprep.subr.mxu0 %v11744_v44 }
 0xec1   :  { %v8374_v35 = vpop.f32.mrf.mxu1 }
 0xec3   :  { %v11377_v4 = vpop.f32.mrf.mxu1 }
 0xec9   :  { %v8531_v8 = vpop.f32.mrf.mxu1 }
 0xeca   :  { %v8283_v43 = vpop.f32.mrf.mxu0 }
 0xecb   :  { %v11399_v1 = vpop.f32.mrf.mxu1  ;;  %v8375_v5 = vadd.f32 %v8374_v35, %v8283_v43 }
 0xecc   :  { %v11366_v14 = vpop.f32.mrf.mxu0 }
 0xed2   :  { %v8454_v22 = vpop.f32.mrf.mxu0 }
 0xed3   :  { %v8689_v40 = vpop.f32.mrf.mxu1  ;;  %v8455_v19 = vadd.f32 %v8454_v22, %v8375_v5 }
 0xed4   :  { %v11388_v9 = vpop.f32.mrf.mxu0 }
 0xed5   :  { %v11421_v17 = vpop.f32.mrf.mxu1  ;;  %v8532_v28 = vadd.f32 %v8531_v8, %v8455_v19 }
 0xedb   :  { %v8614_v36 = vpop.f32.mrf.mxu0 }
 0xedc   :  { %v8615_v21 = vadd.f32 %v8614_v36, %v8532_v28 }
 0xedd   :  { %v11410_v34 = vpop.f32.mrf.mxu0 }
 0xede   :  { %v8690_v45 = vadd.f32 %v8689_v40, %v8615_v21 }
 0xee0   :  { %v8694_v7 = vrot.slane %v8690_v45, 2  ;;  %v8695_v11 = vrot.slane %v8690_v45, 3 }
 0xee2   :  { %v8698_v47 = vadd.f32 %v8694_v7, %v12675_v27  ;;  %v8699_v50 = vadd.f32 %v8695_v11, %v12677_v3 }
 0xee4   :  { %11621 = vtanh.f32 %v8698_v47 }
 0xee5   :  { %11623 = vtanh.f32 %v8699_v50 }
 0xef1   :  { %v11622_v52 = vpop.eup %11621 }
 0xef2   :  { %v11624_v23 = vpop.eup %11623  ;;  %8702 = vst.msk [vmem:[#allocation2] sm:$0x40] %vm4131_vm11, %v11622_v52  ;;  %v8706_v24 = vrot.slane %v11622_v52, 6 }
 0xef3   :  { %8703 = vst.msk [vmem:[#allocation2 + $0x8] sm:$0x40] %vm4131_vm11, %v11624_v23  ;;  %v8707_v25 = vrot.slane %v11624_v23, 5 }
 0xef5   :  { %v8708_v26 = vsel %vm1115_vm5, %v8707_v25, %v8706_v24 }
 0xef6   :  { %v8709_v30 = vsel %vm612_vm2, %v8708_v26, 0 }
 0xef7   :  { %v8780_v31 = vand.u32 4294901760, %v8709_v30 }
 0xef9   :  { %v8781_v32 = vsub.f32 %v8709_v30, %v8780_v31  ;;  %11442 = vmatmul.mubr.f32.vlgmr.msra.gmra.mxu1 %v8780_v31 }
 0xefa   :  { %11456 = vmatpush3.msra.mxu1 %v12505_v62  ;;  %11463 = vmatprep.mubr.msk.f32.mxu1 %vm11745_vm3, %v11744_v44 }
 0xefb   :  { %11457 = vmatprep.subr.mxu1 %v11744_v44  ;;  %v8782_v37 = vand.u32 4294901760, %v8781_v32 }
 0xefc   :  { %11458 = vmatpush3.msra.mxu1 %v12509_v2 }
 0xefd   :  { %11459 = vmatprep.subr.mxu1 %v11744_v44  ;;  %v8783_v39 = vsub.f32 %v8781_v32, %v8782_v37 }
 0xefe   :  { %11460 = vmatpush3.msra.mxu1 %v12516_v38 }
 0xeff   :  { %11461 = vmatprep.subr.mxu1 %v11744_v44  ;;  %v8784_v42 = vand.u32 4294901760, %v8783_v39  ;;  %v9765_v39 = vld [vmem:[%s13237_s9] ss:$0 sm:$0xff] }
 0xf00   :  { %11462 = vmatpush3.msra.mxu1 %v12531_v13 }
 0xf01   :  { %11464 = vmatmul.mubr.f32.vlgmr.msra.gmra.mxu1 %v8782_v37  ;;  %11477 = vmatprep.subr.mxu1 %v11744_v44 }
 0xf02   :  { %11431 = vmatmul.mubr.f32.vlgmr.msra.gmra.mxu0 %v8784_v42  ;;  %11478 = vmatpush3.msra.mxu1 %v12505_v62  ;;  %v9212_v62 = vld [vmem:[%s13236_s8 + $0x18] sm:$0xff] }
 0xf03   :  { %11445 = vmatpush3.msra.mxu0 %v12514_v29  ;;  %11479 = vmatprep.subr.mxu1 %v11744_v44  ;;  %v9211_v29 = vld [vmem:[%s13236_s8 + $0x10] sm:$0xff] }
 0xf04   :  { %11446 = vmatprep.subr.mxu0 %v11744_v44  ;;  %11480 = vmatpush3.msra.mxu1 %v12509_v2  ;;  %v13122_v2 = vand.u32 4294901760, %v9212_v62 }
 0xf05   :  { %11447 = vmatpush3.msra.mxu0 %v12521_v6  ;;  %11481 = vmatprep.subr.mxu1 %v11744_v44  ;;  %v13130_v6 = vand.u32 4294901760, %v9211_v29 }
 0xf06   :  { %11448 = vmatprep.subr.mxu0 %v11744_v44  ;;  %11482 = vmatpush3.msra.mxu1 %v12516_v38  ;;  %v13128_v38 = vsub.f32 %v9212_v62, %v13122_v2 }
 0xf07   :  { %11449 = vmatpush3.msra.mxu0 %v12529_v12  ;;  %11483 = vmatprep.subr.mxu1 %v11744_v44  ;;  %v13141_v12 = vsub.f32 %v9211_v29, %v13130_v6 }
 0xf08   :  { %11450 = vmatprep.subr.mxu0 %v11744_v44  ;;  %11452 = vmatprep.mubr.msk.f32.mxu0 %vm11745_vm3, %v11744_v44 }
 0xf09   :  { %11451 = vmatpush3.msra.mxu0 %v12550_v18  ;;  %11484 = vmatpush3.msra.mxu1 %v12531_v13  ;;  %v13153_v18 = vand.u32 4294901760, %v13141_v12 }
 0xf0a   :  { %11485 = vmatprep.mubr.msk.f32.mxu1 %vm11745_vm3, %v11744_v44  ;;  %11453 = vmatmul.mubr.f32.vlgmr.msra.gmra.mxu0 %v8781_v32 }
 0xf0b   :  { %11466 = vmatprep.subr.mxu0 %v11744_v44  ;;  %11486 = vmatmul.mubr.f32.vlgmr.msra.gmra.mxu1 %v8780_v31  ;;  %v9350_v49 = vsub.f32 %v13141_v12, %v13153_v18 }
 0xf0c   :  { %11467 = vmatpush3.msra.mxu0 %v12526_v10  ;;  %11474 = vmatprep.mubr.msk.f32.mxu0 %vm11745_vm3, %v11744_v44  ;;  %v13138_v10 = vand.u32 4294901760, %v13128_v38 }
 0xf0d   :  { %11468 = vmatprep.subr.mxu0 %v11744_v44  ;;  %v9351_v54 = vand.u32 4294901760, %v9350_v49 }
 0xf0e   :  { %11469 = vmatpush3.msra.mxu0 %v12537_v15  ;;  %v9209_v15 = vld [vmem:[%s13236_s8] sm:$0xff] }
 0xf0f   :  { %11470 = vmatprep.subr.mxu0 %v11744_v44  ;;  %v13158_v46 = vand.u32 4294901760, %v9209_v15 }
 0xf10   :  { %11471 = vmatpush3.msra.mxu0 %v12547_v16  ;;  %v9343_v16 = vsub.f32 %v13128_v38, %v13138_v10 }
 0xf11   :  { %11472 = vmatprep.subr.mxu0 %v11744_v44  ;;  %v9210_v44 = vld [vmem:[%s13236_s8 + $0x8] sm:$0xff]  ;;  %v13168_v53 = vsub.f32 %v9209_v15, %v13158_v46 }
 0xf12   :  { %11473 = vmatpush3.msra.mxu0 %v12568_v20  ;;  %v13143_v13 = vand.u32 4294901760, %v9210_v44  ;;  %v9344_v48 = vand.u32 4294901760, %v9343_v16 }
 0xf13   :  { %11475 = vmatmul.mubr.f32.vlgmr.msra.gmra.mxu0 %v8780_v31  ;;  %11488 = vmatprep.subr.mxu0 %v13122_v2  ;;  %v13175_v56 = vand.u32 4294901760, %v13168_v53 }
 0xf14   :  { %11489 = vmatpush3.msra.mxu0 %v13122_v2  ;;  %v13156_v20 = vsub.f32 %v9210_v44, %v13143_v13  ;;  %11499 = vmatprep.subr.mxu1 %v9344_v48 }
 0xf15   :  { %11490 = vmatprep.subr.mxu0 %v13130_v6  ;;  %11500 = vmatpush3.msra.mxu1 %v9344_v48  ;;  %v9364_v33 = vsub.f32 %v13168_v53, %v13175_v56 }
 0xf16   :  { %11491 = vmatpush3.msra.mxu0 %v13130_v6  ;;  %v13165_v51 = vand.u32 4294901760, %v13156_v20  ;;  %11501 = vmatprep.subr.mxu1 %v9351_v54 }
 0xf17   :  { %11492 = vmatprep.subr.mxu0 %v13143_v13  ;;  %11502 = vmatpush3.msra.mxu1 %v9351_v54  ;;  %v9365_v41 = vand.u32 4294901760, %v9364_v33 }
 0xf18   :  { %11493 = vmatpush3.msra.mxu0 %v13143_v13  ;;  %v9357_v55 = vsub.f32 %v13156_v20, %v13165_v51 }
 0xf19   :  { %11494 = vmatprep.subr.mxu0 %v13158_v46 }
 0xf1a   :  { %11495 = vmatpush3.msra.mxu0 %v13158_v46  ;;  %v9358_v57 = vand.u32 4294901760, %v9357_v55 }
 0xf1b   :  { %11510 = vmatprep.subr.mxu0 %v13128_v38 }
 0xf1c   :  { %11503 = vmatprep.subr.mxu1 %v9358_v57 }
 0xf1d   :  { %11504 = vmatpush3.msra.mxu1 %v9358_v57 }
 0xf1e   :  { %11505 = vmatprep.subr.mxu1 %v9365_v41 }
 0xf1f   :  { %11506 = vmatpush3.msra.mxu1 %v9365_v41 }
 0xf20   :  { %11521 = vmatprep.subr.mxu1 %v13122_v2 }
 0xfb9   :  { %v8877_v58 = vpop.f32.mrf.mxu1 }
 0xfbb   :  { %v11443_v59 = vpop.f32.mrf.mxu1 }
 0xfc1   :  { %v9034_v60 = vpop.f32.mrf.mxu1 }
 0xfc2   :  { %v8786_v61 = vpop.f32.mrf.mxu0 }
 0xfc3   :  { %v11465_v63 = vpop.f32.mrf.mxu1  ;;  %v8878_v8 = vadd.f32 %v8877_v58, %v8786_v61 }
 0xfc4   :  { %v11432_v0 = vpop.f32.mrf.mxu0 }
 0xfca   :  { %v8957_v35 = vpop.f32.mrf.mxu0 }
 0xfcb   :  { %v9192_v4 = vpop.f32.mrf.mxu1  ;;  %v8958_v14 = vadd.f32 %v8957_v35, %v8878_v8 }
 0xfcc   :  { %v11454_v43 = vpop.f32.mrf.mxu0 }
 0xfcd   :  { %v11487_v1 = vpop.f32.mrf.mxu1  ;;  %v9035_v22 = vadd.f32 %v9034_v60, %v8958_v14 }
 0xfd3   :  { %v9117_v40 = vpop.f32.mrf.mxu0 }
 0xfd4   :  { %v9118_v5 = vadd.f32 %v9117_v40, %v9035_v22 }
 0xfd5   :  { %v11476_v9 = vpop.f32.mrf.mxu0 }
 0xfd6   :  { %v9193_v17 = vadd.f32 %v9192_v4, %v9118_v5 }
 0xfd8   :  { %v9197_v19 = vrot.slane %v9193_v17, 1  ;;  %v9198_v28 = vrot.slane %v9193_v17, 2 }
 0xfda   :  { %v9201_v36 = vadd.f32 %v9197_v19, %v12675_v27  ;;  %v9202_v21 = vadd.f32 %v9198_v28, %v12677_v3 }
 0xfdc   :  { %11625 = vtanh.f32 %v9201_v36 }
 0xfdd   :  { %11627 = vtanh.f32 %v9202_v21 }
 0xfe9   :  { %v11626_v34 = vpop.eup %11625 }
 0xfea   :  { %v11628_v45 = vpop.eup %11627  ;;  %9205 = vst.msk [vmem:[#allocation2] sm:$0x80] %vm4635_vm12, %v11626_v34 }
 0xfeb   :  { %9206 = vst.msk [vmem:[#allocation2 + $0x8] sm:$0x80] %vm4635_vm12, %v11628_v45 }
 0xff1   :  { %v9207_v7 = vld [vmem:[#allocation2] sm:$0xff] }
 0xff2   :  { %v9221_v11 = vsel %vm612_vm2, %v9207_v7, 0  ;;  %v9208_v47 = vld [vmem:[#allocation2 + $0x8] sm:$0xff] }
 0xff3   :  { %v9295_v50 = vand.u32 4294901760, %v9221_v11  ;;  %v9224_v52 = vsel %vm612_vm2, %v9208_v47, 0 }
 0xff4   :  { %v9305_v23 = vand.u32 4294901760, %v9224_v52 }
 0xff5   :  { %11507 = vmatprep.mubr.f32.mxu1 %v9295_v50  ;;  %v9296_v27 = vsub.f32 %v9221_v11, %v9295_v50 }
 0xff6   :  { %v9306_v24 = vsub.f32 %v9224_v52, %v9305_v23  ;;  %11508 = vmatmul.mubr.f32.vlgmr.msra.gmra.mxu1 %v9305_v23 }
 0xff7   :  { %11522 = vmatpush3.msra.mxu1 %v13122_v2  ;;  %v9297_v3 = vand.u32 4294901760, %v9296_v27 }
 0xff8   :  { %11523 = vmatprep.subr.mxu1 %v13130_v6  ;;  %v9307_v25 = vand.u32 4294901760, %v9306_v24 }
 0xff9   :  { %11524 = vmatpush3.msra.mxu1 %v13130_v6  ;;  %11529 = vmatprep.mubr.f32.mxu1 %v9297_v3  ;;  %v9298_v26 = vsub.f32 %v9296_v27, %v9297_v3 }
 0xffa   :  { %11525 = vmatprep.subr.mxu1 %v13143_v13  ;;  %v9308_v30 = vsub.f32 %v9306_v24, %v9307_v25 }
 0xffb   :  { %11526 = vmatpush3.msra.mxu1 %v13143_v13  ;;  %v9299_v31 = vand.u32 4294901760, %v9298_v26 }
 0xffc   :  { %11527 = vmatprep.subr.mxu1 %v13158_v46  ;;  %v9309_v32 = vand.u32 4294901760, %v9308_v30 }
 0xffd   :  { %11528 = vmatpush3.msra.mxu1 %v13158_v46  ;;  %11496 = vmatprep.mubr.f32.mxu0 %v9299_v31 }
 0xffe   :  { %11530 = vmatmul.mubr.f32.vlgmr.msra.gmra.mxu1 %v9307_v25  ;;  %11543 = vmatprep.subr.mxu1 %v13122_v2 }
 0xfff   :  { %11497 = vmatmul.mubr.f32.vlgmr.msra.gmra.mxu0 %v9309_v32  ;;  %11544 = vmatpush3.msra.mxu1 %v13122_v2 }
0x1000   :  { %11511 = vmatpush3.msra.mxu0 %v13128_v38  ;;  %11551 = vmatprep.mubr.f32.mxu1 %v9295_v50 }
0x1001   :  { %11512 = vmatprep.subr.mxu0 %v13141_v12  ;;  %11518 = vmatprep.mubr.f32.mxu0 %v9296_v27 }
0x1002   :  { %11545 = vmatprep.subr.mxu1 %v13130_v6  ;;  %11513 = vmatpush3.msra.mxu0 %v13141_v12 }
0x1003   :  { %11546 = vmatpush3.msra.mxu1 %v13130_v6  ;;  %11514 = vmatprep.subr.mxu0 %v13156_v20 }
0x1004   :  { %11547 = vmatprep.subr.mxu1 %v13143_v13  ;;  %11515 = vmatpush3.msra.mxu0 %v13156_v20 }
0x1005   :  { %11548 = vmatpush3.msra.mxu1 %v13143_v13  ;;  %11516 = vmatprep.subr.mxu0 %v13168_v53 }
0x1006   :  { %11549 = vmatprep.subr.mxu1 %v13158_v46  ;;  %11517 = vmatpush3.msra.mxu0 %v13168_v53 }
0x1007   :  { %11550 = vmatpush3.msra.mxu1 %v13158_v46  ;;  %11519 = vmatmul.mubr.f32.vlgmr.msra.gmra.mxu0 %v9306_v24 }
0x1008   :  { %11532 = vmatprep.subr.mxu0 %v13138_v10  ;;  %11552 = vmatmul.mubr.f32.vlgmr.msra.gmra.mxu1 %v9305_v23 }
0x1009   :  { %11533 = vmatpush3.msra.mxu0 %v13138_v10  ;;  %11540 = vmatprep.mubr.f32.mxu0 %v9295_v50 }
0x100a   :  { %11534 = vmatprep.subr.mxu0 %v13153_v18 }
0x100b   :  { %11535 = vmatpush3.msra.mxu0 %v13153_v18 }
0x100c   :  { %11536 = vmatprep.subr.mxu0 %v13165_v51 }
0x100d   :  { %11537 = vmatpush3.msra.mxu0 %v13165_v51 }
0x100e   :  { %11538 = vmatprep.subr.mxu0 %v13175_v56 }
0x100f   :  { %11539 = vmatpush3.msra.mxu0 %v13175_v56 }
0x1010   :  { %11541 = vmatmul.mubr.f32.vlgmr.msra.gmra.mxu0 %v9305_v23 }
0x10b6   :  { %v11509_v42 = vpop.f32.mrf.mxu1 }
0x10b8   :  { %v9402_v6 = vpop.f32.mrf.mxu1 }
0x10be   :  { %v11531_v10 = vpop.f32.mrf.mxu1 }
0x10bf   :  { %v11498_v37 = vpop.f32.mrf.mxu0 }
0x10c0   :  { %v9312_v2 = vadd.f32 %v11498_v37, %v9765_v39  ;;  %v9572_v18 = vpop.f32.mrf.mxu1 }
0x10c1   :  { %v9301_v62 = vpop.f32.mrf.mxu0 }
0x10c2   :  { %v9302_v29 = vadd.f32 %v9765_v39, %v9301_v62  ;;  %v9409_v44 = vadd.f32 %v11509_v42, %v9312_v2 }
0x10c4   :  { %v9403_v15 = vadd.f32 %v9402_v6, %v9302_v29 }
0x10c7   :  { %v11520_v38 = vpop.f32.mrf.mxu0 }
0x10c8   :  { %v9496_v13 = vadd.f32 %v11520_v38, %v9409_v44  ;;  %v11553_v46 = vpop.f32.mrf.mxu1 }
0x10c9   :  { %v9488_v12 = vpop.f32.mrf.mxu0 }
0x10ca   :  { %v9489_v16 = vadd.f32 %v9488_v12, %v9403_v15  ;;  %v9581_v20 = vadd.f32 %v11531_v10, %v9496_v13  ;;  %v9744_v56 = vpop.f32.mrf.mxu1 }
0x10cc   :  { %v9573_v51 = vadd.f32 %v9572_v18, %v9489_v16 }
0x10d0   :  { %v11542_v48 = vpop.f32.mrf.mxu0 }
0x10d1   :  { %v9670_v49 = vadd.f32 %v11542_v48, %v9581_v20 }
0x10d2   :  { %v9663_v53 = vpop.f32.mrf.mxu0 }
0x10d3   :  { %v9751_v54 = vadd.f32 %v11553_v46, %v9670_v49  ;;  %v9664_v55 = vadd.f32 %v9663_v53, %v9573_v51 }
0x10d5   :  { %9755 = vst.msk [vmem:[%s13238_s10 + $0x8] sm:$0xff] %vm111_vm1, %v9751_v54  ;;  %v9745_v57 = vadd.f32 %v9744_v56, %v9664_v55 }
0x10d7   :  { %9754 = vst.msk [vmem:[%s13238_s10] sm:$0xff] %vm111_vm1, %v9745_v57 }
0x10d8   :  { %9760 = vsyncpa [#allocation4], 1 }
0x10d9   :  { %9761 = vsyncpa [#allocation6], 1 }
0x10da   :  { %9762 = vsyncpa [#allocation9], 1 }

</bundles_post_ra>
